<compile_context>
chip_gen: v7x
topology: tpu7x:2x2x1
jax: 0.10.0
libtpu: 0.0.40
codegen_flags: <defaults>
</compile_context>

<pallas_src>
import jax
import jax.numpy as jnp
from jax.experimental import pallas as pl
from jax.experimental.pallas import tpu as pltpu


def _round_up(x, m):
    return ((x + m - 1) // m) * m


def _vmem_limit_bytes():
    """Generation-aware VMEM budget: physical capacity minus headroom."""
    try:
        cap = int(pltpu.get_tpu_info().vmem_capacity_bytes)
        if cap >= 32 * 1024 * 1024:
            return cap - 8 * 1024 * 1024
    except Exception:
        pass
    return 64 * 1024 * 1024


def _make_aspp_kernel(pad, tile_h, W_pad, pyramids, c_in_p, c_out_p, use_im2col):
    """Per-(batch, row-tile) ASPP kernel; all shape constants are static."""
    n_pyr = len(pyramids)
    win_rows = tile_h + 2 * pad

    def kernel(xp_hbm, pooled_ref, wpool_ref, bpool_ref, w0_ref, b0_ref,
               w3_hbm, b3_ref, out_ref, xwin, w3buf, sem_x, sem_w, *rest):
        col_ref = rest[0] if use_im2col else None

        n = pl.program_id(0)
        h = pl.program_id(1)
        n_h = pl.num_programs(1)
        slot = h % 2

        # ---- manual double-buffered halo-window stream of the input --------
        def start_x(hh, s):
            pltpu.make_async_copy(
                xp_hbm.at[n, pl.ds(hh * tile_h, win_rows)],
                xwin.at[s], sem_x.at[s]).start()

        @pl.when(h == 0)            # prime at the first row tile of each image
        def _():
            start_x(0, 0)

        # Kick off the streamed weights for pyramid 0 early; they land while
        # the pool / 1x1 branches run.
        pltpu.make_async_copy(w3_hbm.at[0], w3buf.at[0], sem_w.at[0]).start()

        @pl.when(h + 1 < n_h)       # prefetch the next row tile's halo window
        def _():
            start_x(h + 1, 1 - slot)

        pltpu.make_async_copy(      # wait for the current halo window
            xp_hbm.at[0, pl.ds(0, win_rows)],
            xwin.at[slot], sem_x.at[slot]).wait()

        def tap(dy, dx):
            # Static offsets inside the halo window (rows untiled, cols within
            # the padded W slab) -> no dynamic relayouts.
            return xwin[slot,
                        pad + dy: pad + dy + tile_h,
                        pad + dx: pad + dx + W_pad, :]

        # ---- branch 0: (hoisted) image pool -> 1x1 conv -> ReLU -> broadcast
        hp = jnp.dot(pooled_ref[0], wpool_ref[...],
                     preferred_element_type=jnp.float32)
        hp = jnp.maximum(hp + bpool_ref[...], 0.0)             # (1, c_out_p)
        out_ref[0, :, :, 0:c_out_p] = jnp.broadcast_to(
            hp.reshape(1, 1, c_out_p),
            (tile_h, W_pad, c_out_p)).astype(out_ref.dtype)

        # ---- branch 1: 1x1 conv -> ReLU -------------------------------------
        xc = tap(0, 0).reshape(tile_h * W_pad, c_in_p)   # center tap (reused)
        h0 = jnp.dot(xc, w0_ref[...], preferred_element_type=jnp.float32)
        h0 = jnp.maximum(h0 + b0_ref[...], 0.0)
        out_ref[0, :, :, c_out_p:2 * c_out_p] = (
            h0.reshape(tile_h, W_pad, c_out_p).astype(out_ref.dtype))

        if use_im2col:
            # The center tap (t = 4) is dilation-independent: fill it once.
            col_ref[:, 4 * c_in_p:5 * c_in_p] = xc

        # ---- branches 2..: dilated 3x3 convs -> ReLU -------------------------
        for i, d in enumerate(pyramids):
            s = i % 2
            if i + 1 < n_pyr:       # prefetch next pyramid's streamed weights
                pltpu.make_async_copy(w3_hbm.at[i + 1], w3buf.at[1 - s],
                                      sem_w.at[1 - s]).start()
            pltpu.make_async_copy(w3_hbm.at[0], w3buf.at[s],
                                  sem_w.at[s]).wait()

            if use_im2col:
                # 3 dx-shifted slabs reused for the 3 ky row offsets (row shift
                # lands on an untiled dim -> cheap), then one K = 9*Cin matmul.
                for kx in range(3):
                    dx = (kx - 1) * d
                    slab = xwin[slot,
                                pad - d: pad + d + tile_h,
                                pad + dx: pad + dx + W_pad, :]
                    for ky in range(3):
                        if ky == 1 and kx == 1:
                            continue            # center tap already filled
                        t = ky * 3 + kx
                        col_ref[:, t * c_in_p:(t + 1) * c_in_p] = (
                            slab[ky * d: ky * d + tile_h]
                            .reshape(tile_h * W_pad, c_in_p))
                acc = jnp.dot(col_ref[...], w3buf[s],
                              preferred_element_type=jnp.float32)
            else:
                # Sum-of-dots fallback (preferred on v5e / very large Cin):
                # start from the already-loaded center tap.
                acc = jnp.dot(xc, w3buf[s, 4 * c_in_p:5 * c_in_p, :],
                              preferred_element_type=jnp.float32)
                for ky in range(3):
                    for kx in range(3):
                        if ky == 1 and kx == 1:
                            continue
                        t = ky * 3 + kx
                        xs = tap((ky - 1) * d, (kx - 1) * d).reshape(
                            tile_h * W_pad, c_in_p)
                        acc = acc + jnp.dot(
                            xs, w3buf[s, t * c_in_p:(t + 1) * c_in_p, :],
                            preferred_element_type=jnp.float32)

            hi = jnp.maximum(acc + b3_ref[i:i + 1, :], 0.0)
            out_ref[0, :, :, (2 + i) * c_out_p:(3 + i) * c_out_p] = (
                hi.reshape(tile_h, W_pad, c_out_p).astype(out_ref.dtype))

    return kernel


def aspp_forward(x_nchw, params, pyramids, *, matmul_dtype=jnp.bfloat16,
                 tile_h=8, use_im2col=None):
    """Pallas ASPP forward.  Input/output are NCHW like the PyTorch module.

    matmul_dtype: bf16 by default (f32 accumulation) for MXU throughput; pass
      jnp.float32 for a tight numerical check.
    tile_h: 8 suits v7x's 64 MiB VMEM; 16-32 is better on v5e/v6e (128 MiB).
    use_im2col: None = auto (K = 9*Cin <= 4096).  Pass False on v5e, where the
      im2col scratch copies saturate the single vector-store slot.
    """
    w_pool, b_pool, w0, b0, w3, b3 = params
    n_pyr = len(pyramids)
    pad = max(pyramids)
    n_br = 2 + n_pyr

    x = jnp.transpose(x_nchw, (0, 2, 3, 1)).astype(jnp.float32)   # -> NHWC
    N, H, W, c_in = x.shape
    c_out = w0.shape[-1]

    c_in_p = _round_up(c_in, 128)
    c_out_p = _round_up(c_out, 128)

    # Pool-branch reduction hoisted out of the kernel: one global mean per
    # image (computed over the ORIGINAL, unpadded x).
    pooled = jnp.mean(x, axis=(1, 2))                              # (N, Cin) f32
    pooled = jnp.pad(pooled, ((0, 0), (0, c_in_p - c_in)))
    pooled = pooled.reshape(N, 1, c_in_p).astype(matmul_dtype)

    # Spatial padding: H/W rounded up so every row tile / store is (8,128)
    # dense, plus a halo of `pad` rows/cols of zeros (== per-branch 'same'
    # padding, since each branch uses padding == dilation <= pad).
    H_pad = _round_up(H, tile_h)
    W_pad = _round_up(W, 8)
    Wp = _round_up(W_pad + 2 * pad, 16)      # sublane-align the halo buffer
    xp = jnp.pad(x, ((0, 0),
                     (pad, pad + (H_pad - H)),
                     (pad, Wp - W - pad),
                     (0, c_in_p - c_in)))
    xp = xp.astype(matmul_dtype)

    # BN is already folded into (w, b); lane-pad channels and cast weights.
    def pad_io(a):
        return jnp.pad(a, ((0, c_in_p - a.shape[0]), (0, c_out_p - a.shape[1])))

    wp_p = pad_io(w_pool).astype(matmul_dtype)
    w0_p = pad_io(w0).astype(matmul_dtype)
    bp_p = jnp.pad(b_pool, ((0, 0), (0, c_out_p - c_out))).astype(jnp.float32)
    b0_p = jnp.pad(b0, ((0, 0), (0, c_out_p - c_out))).astype(jnp.float32)
    # (n_pyr,3,3,Cin,Cout) -> (n_pyr, 9*Cin_p, Cout_p), tap-major K order.
    w3_p = jnp.pad(w3, ((0, 0), (0, 0), (0, 0),
                        (0, c_in_p - c_in), (0, c_out_p - c_out)))
    w3_p = w3_p.reshape(n_pyr, 9 * c_in_p, c_out_p).astype(matmul_dtype)
    b3_p = jnp.pad(b3, ((0, 0), (0, c_out_p - c_out))).astype(jnp.float32)

    n_h = H_pad // tile_h
    if use_im2col is None:
        use_im2col = (9 * c_in_p) <= 4096

    win_rows = tile_h + 2 * pad
    kernel = _make_aspp_kernel(pad, tile_h, W_pad, tuple(pyramids),
                               c_in_p, c_out_p, use_im2col)

    scratch = [
        pltpu.VMEM((2, win_rows, Wp, c_in_p), matmul_dtype),   # halo window x2
        pltpu.VMEM((2, 9 * c_in_p, c_out_p), matmul_dtype),    # streamed w3 x2
        pltpu.SemaphoreType.DMA((2,)),                         # input window sems
        pltpu.SemaphoreType.DMA((2,)),                         # w3 stream sems
    ]
    if use_im2col:
        scratch.append(pltpu.VMEM((tile_h * W_pad, 9 * c_in_p), matmul_dtype))

    out = pl.pallas_call(
        kernel,
        out_shape=jax.ShapeDtypeStruct((N, H_pad, W_pad, n_br * c_out_p),
                                       jnp.float32),
        grid_spec=pltpu.PrefetchScalarGridSpec(
            num_scalar_prefetch=0,
            grid=(N, n_h),
            in_specs=[
                pl.BlockSpec(memory_space=pl.ANY),                    # x (HBM, halo DMA)
                pl.BlockSpec((1, 1, c_in_p), lambda n, h: (n, 0, 0)),  # pooled mean
                pl.BlockSpec((c_in_p, c_out_p), lambda n, h: (0, 0)),  # w_pool
                pl.BlockSpec((1, c_out_p), lambda n, h: (0, 0)),       # b_pool
                pl.BlockSpec((c_in_p, c_out_p), lambda n, h: (0, 0)),  # w0
                pl.BlockSpec((1, c_out_p), lambda n, h: (0, 0)),       # b0
                pl.BlockSpec(memory_space=pl.ANY),                     # w3 (HBM, streamed)
                pl.BlockSpec((n_pyr, c_out_p), lambda n, h: (0, 0)),   # b3
            ],
            out_specs=pl.BlockSpec((1, tile_h, W_pad, n_br * c_out_p),
                                   lambda n, h: (n, h, 0, 0)),
            scratch_shapes=tuple(scratch),
        ),
        compiler_params=pltpu.CompilerParams(
            # batch axis parallel (megacore split), h axis arbitrary so the
            # manual double-buffer state carried across row tiles stays valid.
            dimension_semantics=("parallel", "arbitrary"),
            vmem_limit_bytes=_vmem_limit_bytes(),
        ),
    )(xp, pooled, wp_p, bp_p, w0_p, b0_p, w3_p, b3_p)

    # Drop spatial + channel padding, keep torch.cat order, back to NCHW.
    out = out[:, :H, :W, :]
    out = out.reshape(N, H, W, n_br, c_out_p)[..., :c_out]
    out = out.reshape(N, H, W, n_br * c_out)
    return jnp.transpose(out, (0, 3, 1, 2))


def init_params(key, c_in, c_out, pyramids):
    """Deterministic synthetic params with eval-mode BatchNorm folded in."""
    n_pyr = len(pyramids)
    keys = jax.random.split(key, 3 + n_pyr)

    def bn_fold(k):
        k1, k2, k3, k4 = jax.random.split(k, 4)
        gamma = 1.0 + 0.1 * jax.random.normal(k1, (c_out,), jnp.float32)
        beta = 0.1 * jax.random.normal(k2, (c_out,), jnp.float32)
        mean = 0.1 * jax.random.normal(k3, (c_out,), jnp.float32)
        var = jax.random.uniform(k4, (c_out,), jnp.float32, minval=0.5, maxval=1.5)
        scale = gamma / jnp.sqrt(var + 1e-5)
        bias = beta - mean * scale
        return scale, bias

    kp_w, kp_bn = jax.random.split(keys[0])
    s, b = bn_fold(kp_bn)
    w_pool = 0.2 * jax.random.normal(kp_w, (c_in, c_out), jnp.float32) * s
    b_pool = b.reshape(1, c_out)

    k0_w, k0_bn = jax.random.split(keys[1])
    s, b = bn_fold(k0_bn)
    w0 = 0.2 * jax.random.normal(k0_w, (c_in, c_out), jnp.float32) * s
    b0 = b.reshape(1, c_out)

    w3_list, b3_list = [], []
    for i in range(n_pyr):
        ki_w, ki_bn = jax.random.split(keys[2 + i])
        s, b = bn_fold(ki_bn)
        w3_list.append(0.2 * jax.random.normal(ki_w, (3, 3, c_in, c_out), jnp.float32) * s)
        b3_list.append(b)
    w3 = jnp.stack(w3_list, axis=0)            # (n_pyr, 3, 3, Cin, Cout), HWIO
    b3 = jnp.stack(b3_list, axis=0)            # (n_pyr, Cout)

    return (w_pool, b_pool, w0, b0, w3, b3)


def aspp_reference(x_nchw, params, pyramids):
    """Pure-JAX reference (lax convs) for correctness checking."""
    w_pool, b_pool, w0, b0, w3, b3 = params
    x = jnp.transpose(x_nchw, (0, 2, 3, 1)).astype(jnp.float32)
    N, H, W, c_in = x.shape
    c_out = w0.shape[-1]

    def conv(inp, w, dil, pad):
        return jax.lax.conv_general_dilated(
            inp, w, window_strides=(1, 1),
            padding=((pad, pad), (pad, pad)),
            rhs_dilation=(dil, dil),
            dimension_numbers=("NHWC", "HWIO", "NHWC"),
            preferred_element_type=jnp.float32)

    outs = []
    pooled = jnp.mean(x, axis=(1, 2), keepdims=True)
    hp = jnp.maximum(conv(pooled, w_pool.reshape(1, 1, c_in, c_out), 1, 0) + b_pool, 0.0)
    outs.append(jnp.broadcast_to(hp, (N, H, W, c_out)))
    outs.append(jnp.maximum(conv(x, w0.reshape(1, 1, c_in, c_out), 1, 0) + b0, 0.0))
    for i, d in enumerate(pyramids):
        bi = b3[i].reshape(1, 1, 1, c_out)
        outs.append(jnp.maximum(conv(x, w3[i], d, d) + bi, 0.0))
    return jnp.transpose(jnp.concatenate(outs, axis=-1), (0, 3, 1, 2))


if __name__ == "__main__":
    # Small shapes consistent with the module's forward.
    N, C_IN, HH, WW = 2, 4, 16, 16
    C_OUT = 8
    PYRAMIDS = (2, 3)

    key = jax.random.PRNGKey(0)
    kx_, kp_ = jax.random.split(key)
    x = jax.random.normal(kx_, (N, C_IN, HH, WW), jnp.float32)
    params = init_params(kp_, C_IN, C_OUT, PYRAMIDS)

    ref = jax.block_until_ready(aspp_reference(x, params, PYRAMIDS))
    expected_shape = (N, (2 + len(PYRAMIDS)) * C_OUT, HH, WW)

    # Production path: bf16 MXU matmuls, f32 accumulation, im2col.
    out_bf16 = jax.block_until_ready(aspp_forward(x, params, PYRAMIDS))
    assert out_bf16.shape == expected_shape, out_bf16.shape
    if not jnp.allclose(out_bf16, ref, rtol=2e-2, atol=2e-2):
        raise AssertionError("bf16 Pallas ASPP output does not match JAX reference")

    # f32 path for a tight numerical check.
    out_f32 = jax.block_until_ready(
        aspp_forward(x, params, PYRAMIDS, matmul_dtype=jnp.float32))
    assert out_f32.shape == expected_shape, out_f32.shape
    if not jnp.allclose(out_f32, ref, rtol=1e-3, atol=1e-3):
        raise AssertionError("f32 Pallas ASPP output does not match JAX reference")

    # Exercise the sum-of-dots fallback (v5e-friendly / large-Cin path) once.
    out_sod = jax.block_until_ready(
        aspp_forward(x, params, PYRAMIDS, matmul_dtype=jnp.float32,
                     use_im2col=False))
    if not jnp.allclose(out_sod, ref, rtol=1e-3, atol=1e-3):
        raise AssertionError("sum-of-dots Pallas ASPP output does not match JAX reference")

    print("KERNEL_OK")
</pallas_src>

<mosaic_0001>
module attributes {stable_mosaic.version = 11 : i64} {
  func.func @kernel(%arg0: i32, %arg1: i32, %arg2: memref<2x22x32x128xbf16, #tpu.memory_space<any>>, %arg3: memref<1x1x128xbf16, #tpu.memory_space<vmem>>, %arg4: memref<128x128xbf16, #tpu.memory_space<vmem>>, %arg5: memref<1x128xf32, #tpu.memory_space<vmem>>, %arg6: memref<128x128xbf16, #tpu.memory_space<vmem>>, %arg7: memref<1x128xf32, #tpu.memory_space<vmem>>, %arg8: memref<2x1152x128xbf16, #tpu.memory_space<any>>, %arg9: memref<2x128xf32, #tpu.memory_space<vmem>>, %arg10: memref<1x8x16x512xf32, #tpu.memory_space<vmem>>, %arg11: memref<2x14x32x128xbf16, #tpu.memory_space<vmem>>, %arg12: memref<2x1152x128xbf16, #tpu.memory_space<vmem>>, %arg13: memref<2x!tpu.dma_semaphore, #tpu.memory_space<semaphore_mem>>, %arg14: memref<2x!tpu.dma_semaphore, #tpu.memory_space<semaphore_mem>>, %arg15: memref<128x1152xbf16, #tpu.memory_space<vmem>>) attributes {dimension_semantics = [#tpu.dimension_semantics<parallel>, #tpu.dimension_semantics<arbitrary>], iteration_bounds = array<i64: 2, 2>, scalar_prefetch = 0 : i64, scratch_operands = 5 : i64, tpu.core_type = #tpu.core_type<tc>, window_params = [{}, {transform_indices = @transform_1, window_bounds = array<i64: 1, 1, 128>}, {pipeline_mode = #tpu.pipeline_mode<synchronous>, transform_indices = @transform_2, window_bounds = array<i64: 128, 128>}, {pipeline_mode = #tpu.pipeline_mode<synchronous>, transform_indices = @transform_3, window_bounds = array<i64: 1, 128>}, {pipeline_mode = #tpu.pipeline_mode<synchronous>, transform_indices = @transform_4, window_bounds = array<i64: 128, 128>}, {pipeline_mode = #tpu.pipeline_mode<synchronous>, transform_indices = @transform_5, window_bounds = array<i64: 1, 128>}, {}, {pipeline_mode = #tpu.pipeline_mode<synchronous>, transform_indices = @transform_7, window_bounds = array<i64: 2, 128>}, {transform_indices = @transform_8, window_bounds = array<i64: 1, 8, 16, 512>}]} {
    %c2_i32 = arith.constant 2 : i32
    %c0_i32 = arith.constant 0 : i32
    %0 = arith.cmpi eq, %c2_i32, %c0_i32 : i32
    %c1_i32 = arith.constant 1 : i32
    %1 = arith.select %0, %c1_i32, %c2_i32 : i32
    %2 = arith.remsi %arg1, %1 : i32
    %c0_i32_0 = arith.constant 0 : i32
    %3 = arith.cmpi ne, %2, %c0_i32_0 : i32
    %c0_i32_1 = arith.constant 0 : i32
    %4 = arith.cmpi slt, %2, %c0_i32_1 : i32
    %c0_i32_2 = arith.constant 0 : i32
    %5 = arith.cmpi slt, %1, %c0_i32_2 : i32
    %6 = arith.xori %4, %5 : i1
    %7 = arith.andi %6, %3 : i1
    %8 = arith.addi %2, %1 : i32
    %9 = arith.select %7, %8, %2 : i32
    %c0_i32_3 = arith.constant 0 : i32
    %10 = arith.cmpi eq, %arg1, %c0_i32_3 : i32
    %11 = arith.extui %10 : i1 to i32
    %c0_i32_4 = arith.constant 0 : i32
    %12 = arith.cmpi ne, %11, %c0_i32_4 : i32
    scf.if %12 {
      %c0_i32_133 = arith.constant 0 : i32
      %c0_i32_134 = arith.constant 0 : i32
      %c0_i32_135 = arith.constant 0 : i32
      %c0_i32_136 = arith.constant 0 : i32
      %c0_i32_137 = arith.constant 0 : i32
      %169 = tpu.memref_slice %arg2[%arg0, %c0_i32_135, %c0_i32_136, %c0_i32_137] : memref<2x22x32x128xbf16, #tpu.memory_space<any>> -> memref<1x14x32x128xbf16, #tpu.memory_space<any>>
      %170 = tpu.memref_squeeze %169 : memref<1x14x32x128xbf16, #tpu.memory_space<any>> -> memref<14x32x128xbf16, #tpu.memory_space<any>>
      %c0_i32_138 = arith.constant 0 : i32
      %c0_i32_139 = arith.constant 0 : i32
      %c0_i32_140 = arith.constant 0 : i32
      %171 = tpu.memref_slice %arg11[%c0_i32_133, %c0_i32_138, %c0_i32_139, %c0_i32_140] : memref<2x14x32x128xbf16, #tpu.memory_space<vmem>> -> memref<1x14x32x128xbf16, #tpu.memory_space<vmem>>
      %172 = tpu.memref_squeeze %171 : memref<1x14x32x128xbf16, #tpu.memory_space<vmem>> -> memref<14x32x128xbf16, #tpu.memory_space<vmem>>
      %173 = tpu.memref_slice %arg13[%c0_i32_134] : memref<2x!tpu.dma_semaphore, #tpu.memory_space<semaphore_mem>> -> memref<1x!tpu.dma_semaphore, #tpu.memory_space<semaphore_mem>>
      %174 = tpu.memref_squeeze %173 : memref<1x!tpu.dma_semaphore, #tpu.memory_space<semaphore_mem>> -> memref<!tpu.dma_semaphore, #tpu.memory_space<semaphore_mem>>
      tpu.enqueue_dma source(%170 : memref<14x32x128xbf16, #tpu.memory_space<any>>) target(%172 : memref<14x32x128xbf16, #tpu.memory_space<vmem>>) target_semaphore(%174 : memref<!tpu.dma_semaphore, #tpu.memory_space<semaphore_mem>>)
    } else {
    }
    %c0_i32_5 = arith.constant 0 : i32
    %c0_i32_6 = arith.constant 0 : i32
    %c0_i32_7 = arith.constant 0 : i32
    %c0_i32_8 = arith.constant 0 : i32
    %c0_i32_9 = arith.constant 0 : i32
    %13 = tpu.memref_slice %arg8[%c0_i32_5, %c0_i32_8, %c0_i32_9] : memref<2x1152x128xbf16, #tpu.memory_space<any>> -> memref<1x1152x128xbf16, #tpu.memory_space<any>>
    %14 = tpu.memref_squeeze %13 : memref<1x1152x128xbf16, #tpu.memory_space<any>> -> memref<1152x128xbf16, #tpu.memory_space<any>>
    %c0_i32_10 = arith.constant 0 : i32
    %c0_i32_11 = arith.constant 0 : i32
    %15 = tpu.memref_slice %arg12[%c0_i32_6, %c0_i32_10, %c0_i32_11] : memref<2x1152x128xbf16, #tpu.memory_space<vmem>> -> memref<1x1152x128xbf16, #tpu.memory_space<vmem>>
    %16 = tpu.memref_squeeze %15 : memref<1x1152x128xbf16, #tpu.memory_space<vmem>> -> memref<1152x128xbf16, #tpu.memory_space<vmem>>
    %17 = tpu.memref_slice %arg14[%c0_i32_7] : memref<2x!tpu.dma_semaphore, #tpu.memory_space<semaphore_mem>> -> memref<1x!tpu.dma_semaphore, #tpu.memory_space<semaphore_mem>>
    %18 = tpu.memref_squeeze %17 : memref<1x!tpu.dma_semaphore, #tpu.memory_space<semaphore_mem>> -> memref<!tpu.dma_semaphore, #tpu.memory_space<semaphore_mem>>
    tpu.enqueue_dma source(%14 : memref<1152x128xbf16, #tpu.memory_space<any>>) target(%16 : memref<1152x128xbf16, #tpu.memory_space<vmem>>) target_semaphore(%18 : memref<!tpu.dma_semaphore, #tpu.memory_space<semaphore_mem>>)
    %c1_i32_12 = arith.constant 1 : i32
    %19 = arith.addi %arg1, %c1_i32_12 : i32
    %c2_i32_13 = arith.constant 2 : i32
    %20 = arith.cmpi slt, %19, %c2_i32_13 : i32
    %21 = arith.extui %20 : i1 to i32
    %c0_i32_14 = arith.constant 0 : i32
    %22 = arith.cmpi ne, %21, %c0_i32_14 : i32
    scf.if %22 {
      %c1_i32_133 = arith.constant 1 : i32
      %169 = arith.addi %arg1, %c1_i32_133 : i32
      %c1_i32_134 = arith.constant 1 : i32
      %170 = arith.subi %c1_i32_134, %9 : i32
      %c8_i32 = arith.constant 8 : i32
      %171 = arith.muli %169, %c8_i32 : i32
      %c0_i32_135 = arith.constant 0 : i32
      %c0_i32_136 = arith.constant 0 : i32
      %172 = tpu.memref_slice %arg2[%arg0, %171, %c0_i32_135, %c0_i32_136] : memref<2x22x32x128xbf16, #tpu.memory_space<any>> -> memref<1x14x32x128xbf16, #tpu.memory_space<any>>
      %173 = tpu.memref_squeeze %172 : memref<1x14x32x128xbf16, #tpu.memory_space<any>> -> memref<14x32x128xbf16, #tpu.memory_space<any>>
      %c0_i32_137 = arith.constant 0 : i32
      %c0_i32_138 = arith.constant 0 : i32
      %c0_i32_139 = arith.constant 0 : i32
      %174 = tpu.memref_slice %arg11[%170, %c0_i32_137, %c0_i32_138, %c0_i32_139] : memref<2x14x32x128xbf16, #tpu.memory_space<vmem>> -> memref<1x14x32x128xbf16, #tpu.memory_space<vmem>>
      %175 = tpu.memref_squeeze %174 : memref<1x14x32x128xbf16, #tpu.memory_space<vmem>> -> memref<14x32x128xbf16, #tpu.memory_space<vmem>>
      %176 = tpu.memref_slice %arg13[%170] : memref<2x!tpu.dma_semaphore, #tpu.memory_space<semaphore_mem>> -> memref<1x!tpu.dma_semaphore, #tpu.memory_space<semaphore_mem>>
      %177 = tpu.memref_squeeze %176 : memref<1x!tpu.dma_semaphore, #tpu.memory_space<semaphore_mem>> -> memref<!tpu.dma_semaphore, #tpu.memory_space<semaphore_mem>>
      tpu.enqueue_dma source(%173 : memref<14x32x128xbf16, #tpu.memory_space<any>>) target(%175 : memref<14x32x128xbf16, #tpu.memory_space<vmem>>) target_semaphore(%177 : memref<!tpu.dma_semaphore, #tpu.memory_space<semaphore_mem>>)
    } else {
    }
    %c0_i32_15 = arith.constant 0 : i32
    %c0_i32_16 = arith.constant 0 : i32
    %c0_i32_17 = arith.constant 0 : i32
    %c0_i32_18 = arith.constant 0 : i32
    %23 = tpu.memref_slice %arg2[%c0_i32_15, %c0_i32_16, %c0_i32_17, %c0_i32_18] : memref<2x22x32x128xbf16, #tpu.memory_space<any>> -> memref<1x14x32x128xbf16, #tpu.memory_space<any>>
    %24 = tpu.memref_squeeze %23 : memref<1x14x32x128xbf16, #tpu.memory_space<any>> -> memref<14x32x128xbf16, #tpu.memory_space<any>>
    %c0_i32_19 = arith.constant 0 : i32
    %c0_i32_20 = arith.constant 0 : i32
    %c0_i32_21 = arith.constant 0 : i32
    %25 = tpu.memref_slice %arg11[%9, %c0_i32_19, %c0_i32_20, %c0_i32_21] : memref<2x14x32x128xbf16, #tpu.memory_space<vmem>> -> memref<1x14x32x128xbf16, #tpu.memory_space<vmem>>
    %26 = tpu.memref_squeeze %25 : memref<1x14x32x128xbf16, #tpu.memory_space<vmem>> -> memref<14x32x128xbf16, #tpu.memory_space<vmem>>
    %27 = tpu.memref_slice %arg13[%9] : memref<2x!tpu.dma_semaphore, #tpu.memory_space<semaphore_mem>> -> memref<1x!tpu.dma_semaphore, #tpu.memory_space<semaphore_mem>>
    %28 = tpu.memref_squeeze %27 : memref<1x!tpu.dma_semaphore, #tpu.memory_space<semaphore_mem>> -> memref<!tpu.dma_semaphore, #tpu.memory_space<semaphore_mem>>
    tpu.wait_dma2 semaphore(%28 : memref<!tpu.dma_semaphore, #tpu.memory_space<semaphore_mem>>) src(%24 : memref<14x32x128xbf16, #tpu.memory_space<any>>) dst(%26 : memref<14x32x128xbf16, #tpu.memory_space<vmem>>)
    %c0 = arith.constant 0 : index
    %c0_22 = arith.constant 0 : index
    %c0_23 = arith.constant 0 : index
    %29 = vector.load %arg3[%c0, %c0_22, %c0_23] : memref<1x1x128xbf16, #tpu.memory_space<vmem>>, vector<1x1x128xbf16>
    %30 = vector.shape_cast %29 : vector<1x1x128xbf16> to vector<1x128xbf16>
    %c0_24 = arith.constant 0 : index
    %c0_25 = arith.constant 0 : index
    %31 = vector.load %arg4[%c0_24, %c0_25] : memref<128x128xbf16, #tpu.memory_space<vmem>>, vector<128x128xbf16>
    %cst = arith.constant dense<0.000000e+00> : vector<1x128xf32>
    %32 = tpu.matmul %30, %31, %cst {dimension_numbers = #tpu.dot_dimension_numbers<[1], [0], [0], [1], [0, 0, 1, 1], [], []>} : vector<1x128xbf16>, vector<128x128xbf16>, vector<1x128xf32> -> vector<1x128xf32>
    %c0_26 = arith.constant 0 : index
    %c0_27 = arith.constant 0 : index
    %33 = vector.load %arg5[%c0_26, %c0_27] : memref<1x128xf32, #tpu.memory_space<vmem>>, vector<1x128xf32>
    %34 = arith.addf %32, %33 : vector<1x128xf32>
    %cst_28 = arith.constant 0.000000e+00 : f32
    %35 = vector.broadcast %cst_28 : f32 to vector<1x128xf32>
    %36 = arith.maximumf %34, %35 : vector<1x128xf32>
    %37 = vector.shape_cast %36 : vector<1x128xf32> to vector<1x1x128xf32>
    %38 = vector.shape_cast %37 : vector<1x1x128xf32> to vector<1x1x128xf32>
    %39 = vector.broadcast %38 : vector<1x1x128xf32> to vector<8x16x128xf32>
    %c0_29 = arith.constant 0 : index
    %c0_30 = arith.constant 0 : index
    %c0_31 = arith.constant 0 : index
    %c0_32 = arith.constant 0 : index
    %40 = vector.load %arg10[%c0_29, %c0_30, %c0_31, %c0_32] : memref<1x8x16x512xf32, #tpu.memory_space<vmem>>, vector<1x8x16x128xf32>
    %41 = vector.shape_cast %40 : vector<1x8x16x128xf32> to vector<8x16x128xf32>
    %42 = vector.shape_cast %39 : vector<8x16x128xf32> to vector<1x8x16x128xf32>
    tpu.vector_store %arg10[%c0_29, %c0_30, %c0_31, %c0_32], %42 {strides = array<i32>} : memref<1x8x16x512xf32, #tpu.memory_space<vmem>>, vector<1x8x16x128xf32>,
    %43 = arith.index_cast %9 : i32 to index
    %c3 = arith.constant 3 : index
    %c3_33 = arith.constant 3 : index
    %c0_34 = arith.constant 0 : index
    %44 = vector.load %arg11[%43, %c3, %c3_33, %c0_34] : memref<2x14x32x128xbf16, #tpu.memory_space<vmem>>, vector<1x8x16x128xbf16>
    %45 = vector.shape_cast %44 : vector<1x8x16x128xbf16> to vector<8x16x128xbf16>
    %46 = vector.shape_cast %45 : vector<8x16x128xbf16> to vector<128x128xbf16>
    %c0_35 = arith.constant 0 : index
    %c0_36 = arith.constant 0 : index
    %47 = vector.load %arg6[%c0_35, %c0_36] : memref<128x128xbf16, #tpu.memory_space<vmem>>, vector<128x128xbf16>
    %cst_37 = arith.constant dense<0.000000e+00> : vector<128x128xf32>
    %48 = tpu.matmul %46, %47, %cst_37 {dimension_numbers = #tpu.dot_dimension_numbers<[1], [0], [0], [1], [0, 0, 1, 1], [], []>} : vector<128x128xbf16>, vector<128x128xbf16>, vector<128x128xf32> -> vector<128x128xf32>
    %c0_38 = arith.constant 0 : index
    %c0_39 = arith.constant 0 : index
    %49 = vector.load %arg7[%c0_38, %c0_39] : memref<1x128xf32, #tpu.memory_space<vmem>>, vector<1x128xf32>
    %50 = vector.broadcast %49 : vector<1x128xf32> to vector<128x128xf32>
    %51 = arith.addf %48, %50 : vector<128x128xf32>
    %cst_40 = arith.constant 0.000000e+00 : f32
    %52 = vector.broadcast %cst_40 : f32 to vector<128x128xf32>
    %53 = arith.maximumf %51, %52 : vector<128x128xf32>
    %54 = vector.shape_cast %53 : vector<128x128xf32> to vector<8x16x128xf32>
    %c0_41 = arith.constant 0 : index
    %c0_42 = arith.constant 0 : index
    %c0_43 = arith.constant 0 : index
    %c128 = arith.constant 128 : index
    %55 = vector.load %arg10[%c0_41, %c0_42, %c0_43, %c128] : memref<1x8x16x512xf32, #tpu.memory_space<vmem>>, vector<1x8x16x128xf32>
    %56 = vector.shape_cast %55 : vector<1x8x16x128xf32> to vector<8x16x128xf32>
    %57 = vector.shape_cast %54 : vector<8x16x128xf32> to vector<1x8x16x128xf32>
    tpu.vector_store %arg10[%c0_41, %c0_42, %c0_43, %c128], %57 {strides = array<i32>} : memref<1x8x16x512xf32, #tpu.memory_space<vmem>>, vector<1x8x16x128xf32>,
    %c0_44 = arith.constant 0 : index
    %c512 = arith.constant 512 : index
    %58 = vector.load %arg15[%c0_44, %c512] : memref<128x1152xbf16, #tpu.memory_space<vmem>>, vector<128x128xbf16>
    tpu.vector_store %arg15[%c0_44, %c512], %46 {strides = array<i32>} : memref<128x1152xbf16, #tpu.memory_space<vmem>>, vector<128x128xbf16>,
    %c1_i32_45 = arith.constant 1 : i32
    %c1_i32_46 = arith.constant 1 : i32
    %c1_i32_47 = arith.constant 1 : i32
    %c0_i32_48 = arith.constant 0 : i32
    %c0_i32_49 = arith.constant 0 : i32
    %59 = tpu.memref_slice %arg8[%c1_i32_45, %c0_i32_48, %c0_i32_49] : memref<2x1152x128xbf16, #tpu.memory_space<any>> -> memref<1x1152x128xbf16, #tpu.memory_space<any>>
    %60 = tpu.memref_squeeze %59 : memref<1x1152x128xbf16, #tpu.memory_space<any>> -> memref<1152x128xbf16, #tpu.memory_space<any>>
    %c0_i32_50 = arith.constant 0 : i32
    %c0_i32_51 = arith.constant 0 : i32
    %61 = tpu.memref_slice %arg12[%c1_i32_46, %c0_i32_50, %c0_i32_51] : memref<2x1152x128xbf16, #tpu.memory_space<vmem>> -> memref<1x1152x128xbf16, #tpu.memory_space<vmem>>
    %62 = tpu.memref_squeeze %61 : memref<1x1152x128xbf16, #tpu.memory_space<vmem>> -> memref<1152x128xbf16, #tpu.memory_space<vmem>>
    %63 = tpu.memref_slice %arg14[%c1_i32_47] : memref<2x!tpu.dma_semaphore, #tpu.memory_space<semaphore_mem>> -> memref<1x!tpu.dma_semaphore, #tpu.memory_space<semaphore_mem>>
    %64 = tpu.memref_squeeze %63 : memref<1x!tpu.dma_semaphore, #tpu.memory_space<semaphore_mem>> -> memref<!tpu.dma_semaphore, #tpu.memory_space<semaphore_mem>>
    tpu.enqueue_dma source(%60 : memref<1152x128xbf16, #tpu.memory_space<any>>) target(%62 : memref<1152x128xbf16, #tpu.memory_space<vmem>>) target_semaphore(%64 : memref<!tpu.dma_semaphore, #tpu.memory_space<semaphore_mem>>)
    %c0_i32_52 = arith.constant 0 : i32
    %c0_i32_53 = arith.constant 0 : i32
    %c0_i32_54 = arith.constant 0 : i32
    %c0_i32_55 = arith.constant 0 : i32
    %c0_i32_56 = arith.constant 0 : i32
    %65 = tpu.memref_slice %arg8[%c0_i32_52, %c0_i32_55, %c0_i32_56] : memref<2x1152x128xbf16, #tpu.memory_space<any>> -> memref<1x1152x128xbf16, #tpu.memory_space<any>>
    %66 = tpu.memref_squeeze %65 : memref<1x1152x128xbf16, #tpu.memory_space<any>> -> memref<1152x128xbf16, #tpu.memory_space<any>>
    %c0_i32_57 = arith.constant 0 : i32
    %c0_i32_58 = arith.constant 0 : i32
    %67 = tpu.memref_slice %arg12[%c0_i32_53, %c0_i32_57, %c0_i32_58] : memref<2x1152x128xbf16, #tpu.memory_space<vmem>> -> memref<1x1152x128xbf16, #tpu.memory_space<vmem>>
    %68 = tpu.memref_squeeze %67 : memref<1x1152x128xbf16, #tpu.memory_space<vmem>> -> memref<1152x128xbf16, #tpu.memory_space<vmem>>
    %69 = tpu.memref_slice %arg14[%c0_i32_54] : memref<2x!tpu.dma_semaphore, #tpu.memory_space<semaphore_mem>> -> memref<1x!tpu.dma_semaphore, #tpu.memory_space<semaphore_mem>>
    %70 = tpu.memref_squeeze %69 : memref<1x!tpu.dma_semaphore, #tpu.memory_space<semaphore_mem>> -> memref<!tpu.dma_semaphore, #tpu.memory_space<semaphore_mem>>
    tpu.wait_dma2 semaphore(%70 : memref<!tpu.dma_semaphore, #tpu.memory_space<semaphore_mem>>) src(%66 : memref<1152x128xbf16, #tpu.memory_space<any>>) dst(%68 : memref<1152x128xbf16, #tpu.memory_space<vmem>>)
    %71 = arith.index_cast %9 : i32 to index
    %c1 = arith.constant 1 : index
    %c1_59 = arith.constant 1 : index
    %c0_60 = arith.constant 0 : index
    %72 = vector.load %arg11[%71, %c1, %c1_59, %c0_60] : memref<2x14x32x128xbf16, #tpu.memory_space<vmem>>, vector<1x12x16x128xbf16>
    %73 = vector.shape_cast %72 : vector<1x12x16x128xbf16> to vector<12x16x128xbf16>
    %74 = vector.extract_strided_slice %73 {offsets = [0, 0, 0], sizes = [8, 16, 128], strides = [1, 1, 1]} : vector<12x16x128xbf16> to vector<8x16x128xbf16>
    %75 = vector.shape_cast %74 : vector<8x16x128xbf16> to vector<128x128xbf16>
    %c0_61 = arith.constant 0 : index
    %c0_62 = arith.constant 0 : index
    %76 = vector.load %arg15[%c0_61, %c0_62] : memref<128x1152xbf16, #tpu.memory_space<vmem>>, vector<128x128xbf16>
    tpu.vector_store %arg15[%c0_61, %c0_62], %75 {strides = array<i32>} : memref<128x1152xbf16, #tpu.memory_space<vmem>>, vector<128x128xbf16>,
    %77 = vector.extract_strided_slice %73 {offsets = [2, 0, 0], sizes = [8, 16, 128], strides = [1, 1, 1]} : vector<12x16x128xbf16> to vector<8x16x128xbf16>
    %78 = vector.shape_cast %77 : vector<8x16x128xbf16> to vector<128x128xbf16>
    %c0_63 = arith.constant 0 : index
    %c384 = arith.constant 384 : index
    %79 = vector.load %arg15[%c0_63, %c384] : memref<128x1152xbf16, #tpu.memory_space<vmem>>, vector<128x128xbf16>
    tpu.vector_store %arg15[%c0_63, %c384], %78 {strides = array<i32>} : memref<128x1152xbf16, #tpu.memory_space<vmem>>, vector<128x128xbf16>,
    %80 = vector.extract_strided_slice %73 {offsets = [4, 0, 0], sizes = [8, 16, 128], strides = [1, 1, 1]} : vector<12x16x128xbf16> to vector<8x16x128xbf16>
    %81 = vector.shape_cast %80 : vector<8x16x128xbf16> to vector<128x128xbf16>
    %c0_64 = arith.constant 0 : index
    %c768 = arith.constant 768 : index
    %82 = vector.load %arg15[%c0_64, %c768] : memref<128x1152xbf16, #tpu.memory_space<vmem>>, vector<128x128xbf16>
    tpu.vector_store %arg15[%c0_64, %c768], %81 {strides = array<i32>} : memref<128x1152xbf16, #tpu.memory_space<vmem>>, vector<128x128xbf16>,
    %83 = arith.index_cast %9 : i32 to index
    %c1_65 = arith.constant 1 : index
    %c3_66 = arith.constant 3 : index
    %c0_67 = arith.constant 0 : index
    %84 = vector.load %arg11[%83, %c1_65, %c3_66, %c0_67] : memref<2x14x32x128xbf16, #tpu.memory_space<vmem>>, vector<1x12x16x128xbf16>
    %85 = vector.shape_cast %84 : vector<1x12x16x128xbf16> to vector<12x16x128xbf16>
    %86 = vector.extract_strided_slice %85 {offsets = [0, 0, 0], sizes = [8, 16, 128], strides = [1, 1, 1]} : vector<12x16x128xbf16> to vector<8x16x128xbf16>
    %87 = vector.shape_cast %86 : vector<8x16x128xbf16> to vector<128x128xbf16>
    %c0_68 = arith.constant 0 : index
    %c128_69 = arith.constant 128 : index
    %88 = vector.load %arg15[%c0_68, %c128_69] : memref<128x1152xbf16, #tpu.memory_space<vmem>>, vector<128x128xbf16>
    tpu.vector_store %arg15[%c0_68, %c128_69], %87 {strides = array<i32>} : memref<128x1152xbf16, #tpu.memory_space<vmem>>, vector<128x128xbf16>,
    %89 = vector.extract_strided_slice %85 {offsets = [4, 0, 0], sizes = [8, 16, 128], strides = [1, 1, 1]} : vector<12x16x128xbf16> to vector<8x16x128xbf16>
    %90 = vector.shape_cast %89 : vector<8x16x128xbf16> to vector<128x128xbf16>
    %c0_70 = arith.constant 0 : index
    %c896 = arith.constant 896 : index
    %91 = vector.load %arg15[%c0_70, %c896] : memref<128x1152xbf16, #tpu.memory_space<vmem>>, vector<128x128xbf16>
    tpu.vector_store %arg15[%c0_70, %c896], %90 {strides = array<i32>} : memref<128x1152xbf16, #tpu.memory_space<vmem>>, vector<128x128xbf16>,
    %92 = arith.index_cast %9 : i32 to index
    %c1_71 = arith.constant 1 : index
    %c5 = arith.constant 5 : index
    %c0_72 = arith.constant 0 : index
    %93 = vector.load %arg11[%92, %c1_71, %c5, %c0_72] : memref<2x14x32x128xbf16, #tpu.memory_space<vmem>>, vector<1x12x16x128xbf16>
    %94 = vector.shape_cast %93 : vector<1x12x16x128xbf16> to vector<12x16x128xbf16>
    %95 = vector.extract_strided_slice %94 {offsets = [0, 0, 0], sizes = [8, 16, 128], strides = [1, 1, 1]} : vector<12x16x128xbf16> to vector<8x16x128xbf16>
    %96 = vector.shape_cast %95 : vector<8x16x128xbf16> to vector<128x128xbf16>
    %c0_73 = arith.constant 0 : index
    %c256 = arith.constant 256 : index
    %97 = vector.load %arg15[%c0_73, %c256] : memref<128x1152xbf16, #tpu.memory_space<vmem>>, vector<128x128xbf16>
    tpu.vector_store %arg15[%c0_73, %c256], %96 {strides = array<i32>} : memref<128x1152xbf16, #tpu.memory_space<vmem>>, vector<128x128xbf16>,
    %98 = vector.extract_strided_slice %94 {offsets = [2, 0, 0], sizes = [8, 16, 128], strides = [1, 1, 1]} : vector<12x16x128xbf16> to vector<8x16x128xbf16>
    %99 = vector.shape_cast %98 : vector<8x16x128xbf16> to vector<128x128xbf16>
    %c0_74 = arith.constant 0 : index
    %c640 = arith.constant 640 : index
    %100 = vector.load %arg15[%c0_74, %c640] : memref<128x1152xbf16, #tpu.memory_space<vmem>>, vector<128x128xbf16>
    tpu.vector_store %arg15[%c0_74, %c640], %99 {strides = array<i32>} : memref<128x1152xbf16, #tpu.memory_space<vmem>>, vector<128x128xbf16>,
    %101 = vector.extract_strided_slice %94 {offsets = [4, 0, 0], sizes = [8, 16, 128], strides = [1, 1, 1]} : vector<12x16x128xbf16> to vector<8x16x128xbf16>
    %102 = vector.shape_cast %101 : vector<8x16x128xbf16> to vector<128x128xbf16>
    %c0_75 = arith.constant 0 : index
    %c1024 = arith.constant 1024 : index
    %103 = vector.load %arg15[%c0_75, %c1024] : memref<128x1152xbf16, #tpu.memory_space<vmem>>, vector<128x128xbf16>
    tpu.vector_store %arg15[%c0_75, %c1024], %102 {strides = array<i32>} : memref<128x1152xbf16, #tpu.memory_space<vmem>>, vector<128x128xbf16>,
    %c0_76 = arith.constant 0 : index
    %c0_77 = arith.constant 0 : index
    %104 = vector.load %arg15[%c0_76, %c0_77] : memref<128x1152xbf16, #tpu.memory_space<vmem>>, vector<128x1152xbf16>
    %c0_78 = arith.constant 0 : index
    %c0_79 = arith.constant 0 : index
    %c0_80 = arith.constant 0 : index
    %105 = vector.load %arg12[%c0_78, %c0_79, %c0_80] : memref<2x1152x128xbf16, #tpu.memory_space<vmem>>, vector<1x1152x128xbf16>
    %106 = vector.shape_cast %105 : vector<1x1152x128xbf16> to vector<1152x128xbf16>
    %cst_81 = arith.constant dense<0.000000e+00> : vector<128x128xf32>
    %107 = tpu.matmul %104, %106, %cst_81 {dimension_numbers = #tpu.dot_dimension_numbers<[1], [0], [0], [1], [0, 0, 1, 1], [], []>} : vector<128x1152xbf16>, vector<1152x128xbf16>, vector<128x128xf32> -> vector<128x128xf32>
    %c0_82 = arith.constant 0 : index
    %c0_83 = arith.constant 0 : index
    %108 = vector.load %arg9[%c0_82, %c0_83] : memref<2x128xf32, #tpu.memory_space<vmem>>, vector<1x128xf32>
    %109 = vector.broadcast %108 : vector<1x128xf32> to vector<128x128xf32>
    %110 = arith.addf %107, %109 : vector<128x128xf32>
    %cst_84 = arith.constant 0.000000e+00 : f32
    %111 = vector.broadcast %cst_84 : f32 to vector<128x128xf32>
    %112 = arith.maximumf %110, %111 : vector<128x128xf32>
    %113 = vector.shape_cast %112 : vector<128x128xf32> to vector<8x16x128xf32>
    %c0_85 = arith.constant 0 : index
    %c0_86 = arith.constant 0 : index
    %c0_87 = arith.constant 0 : index
    %c256_88 = arith.constant 256 : index
    %114 = vector.load %arg10[%c0_85, %c0_86, %c0_87, %c256_88] : memref<1x8x16x512xf32, #tpu.memory_space<vmem>>, vector<1x8x16x128xf32>
    %115 = vector.shape_cast %114 : vector<1x8x16x128xf32> to vector<8x16x128xf32>
    %116 = vector.shape_cast %113 : vector<8x16x128xf32> to vector<1x8x16x128xf32>
    tpu.vector_store %arg10[%c0_85, %c0_86, %c0_87, %c256_88], %116 {strides = array<i32>} : memref<1x8x16x512xf32, #tpu.memory_space<vmem>>, vector<1x8x16x128xf32>,
    %c0_i32_89 = arith.constant 0 : i32
    %c1_i32_90 = arith.constant 1 : i32
    %c1_i32_91 = arith.constant 1 : i32
    %c0_i32_92 = arith.constant 0 : i32
    %c0_i32_93 = arith.constant 0 : i32
    %117 = tpu.memref_slice %arg8[%c0_i32_89, %c0_i32_92, %c0_i32_93] : memref<2x1152x128xbf16, #tpu.memory_space<any>> -> memref<1x1152x128xbf16, #tpu.memory_space<any>>
    %118 = tpu.memref_squeeze %117 : memref<1x1152x128xbf16, #tpu.memory_space<any>> -> memref<1152x128xbf16, #tpu.memory_space<any>>
    %c0_i32_94 = arith.constant 0 : i32
    %c0_i32_95 = arith.constant 0 : i32
    %119 = tpu.memref_slice %arg12[%c1_i32_90, %c0_i32_94, %c0_i32_95] : memref<2x1152x128xbf16, #tpu.memory_space<vmem>> -> memref<1x1152x128xbf16, #tpu.memory_space<vmem>>
    %120 = tpu.memref_squeeze %119 : memref<1x1152x128xbf16, #tpu.memory_space<vmem>> -> memref<1152x128xbf16, #tpu.memory_space<vmem>>
    %121 = tpu.memref_slice %arg14[%c1_i32_91] : memref<2x!tpu.dma_semaphore, #tpu.memory_space<semaphore_mem>> -> memref<1x!tpu.dma_semaphore, #tpu.memory_space<semaphore_mem>>
    %122 = tpu.memref_squeeze %121 : memref<1x!tpu.dma_semaphore, #tpu.memory_space<semaphore_mem>> -> memref<!tpu.dma_semaphore, #tpu.memory_space<semaphore_mem>>
    tpu.wait_dma2 semaphore(%122 : memref<!tpu.dma_semaphore, #tpu.memory_space<semaphore_mem>>) src(%118 : memref<1152x128xbf16, #tpu.memory_space<any>>) dst(%120 : memref<1152x128xbf16, #tpu.memory_space<vmem>>)
    %123 = arith.index_cast %9 : i32 to index
    %c0_96 = arith.constant 0 : index
    %c0_97 = arith.constant 0 : index
    %c0_98 = arith.constant 0 : index
    %124 = vector.load %arg11[%123, %c0_96, %c0_97, %c0_98] : memref<2x14x32x128xbf16, #tpu.memory_space<vmem>>, vector<1x14x16x128xbf16>
    %125 = vector.shape_cast %124 : vector<1x14x16x128xbf16> to vector<14x16x128xbf16>
    %126 = vector.extract_strided_slice %125 {offsets = [0, 0, 0], sizes = [8, 16, 128], strides = [1, 1, 1]} : vector<14x16x128xbf16> to vector<8x16x128xbf16>
    %127 = vector.shape_cast %126 : vector<8x16x128xbf16> to vector<128x128xbf16>
    %c0_99 = arith.constant 0 : index
    %c0_100 = arith.constant 0 : index
    %128 = vector.load %arg15[%c0_99, %c0_100] : memref<128x1152xbf16, #tpu.memory_space<vmem>>, vector<128x128xbf16>
    tpu.vector_store %arg15[%c0_99, %c0_100], %127 {strides = array<i32>} : memref<128x1152xbf16, #tpu.memory_space<vmem>>, vector<128x128xbf16>,
    %129 = vector.extract_strided_slice %125 {offsets = [3, 0, 0], sizes = [8, 16, 128], strides = [1, 1, 1]} : vector<14x16x128xbf16> to vector<8x16x128xbf16>
    %130 = vector.shape_cast %129 : vector<8x16x128xbf16> to vector<128x128xbf16>
    %c0_101 = arith.constant 0 : index
    %c384_102 = arith.constant 384 : index
    %131 = vector.load %arg15[%c0_101, %c384_102] : memref<128x1152xbf16, #tpu.memory_space<vmem>>, vector<128x128xbf16>
    tpu.vector_store %arg15[%c0_101, %c384_102], %130 {strides = array<i32>} : memref<128x1152xbf16, #tpu.memory_space<vmem>>, vector<128x128xbf16>,
    %132 = vector.extract_strided_slice %125 {offsets = [6, 0, 0], sizes = [8, 16, 128], strides = [1, 1, 1]} : vector<14x16x128xbf16> to vector<8x16x128xbf16>
    %133 = vector.shape_cast %132 : vector<8x16x128xbf16> to vector<128x128xbf16>
    %c0_103 = arith.constant 0 : index
    %c768_104 = arith.constant 768 : index
    %134 = vector.load %arg15[%c0_103, %c768_104] : memref<128x1152xbf16, #tpu.memory_space<vmem>>, vector<128x128xbf16>
    tpu.vector_store %arg15[%c0_103, %c768_104], %133 {strides = array<i32>} : memref<128x1152xbf16, #tpu.memory_space<vmem>>, vector<128x128xbf16>,
    %135 = arith.index_cast %9 : i32 to index
    %c0_105 = arith.constant 0 : index
    %c3_106 = arith.constant 3 : index
    %c0_107 = arith.constant 0 : index
    %136 = vector.load %arg11[%135, %c0_105, %c3_106, %c0_107] : memref<2x14x32x128xbf16, #tpu.memory_space<vmem>>, vector<1x14x16x128xbf16>
    %137 = vector.shape_cast %136 : vector<1x14x16x128xbf16> to vector<14x16x128xbf16>
    %138 = vector.extract_strided_slice %137 {offsets = [0, 0, 0], sizes = [8, 16, 128], strides = [1, 1, 1]} : vector<14x16x128xbf16> to vector<8x16x128xbf16>
    %139 = vector.shape_cast %138 : vector<8x16x128xbf16> to vector<128x128xbf16>
    %c0_108 = arith.constant 0 : index
    %c128_109 = arith.constant 128 : index
    %140 = vector.load %arg15[%c0_108, %c128_109] : memref<128x1152xbf16, #tpu.memory_space<vmem>>, vector<128x128xbf16>
    tpu.vector_store %arg15[%c0_108, %c128_109], %139 {strides = array<i32>} : memref<128x1152xbf16, #tpu.memory_space<vmem>>, vector<128x128xbf16>,
    %141 = vector.extract_strided_slice %137 {offsets = [6, 0, 0], sizes = [8, 16, 128], strides = [1, 1, 1]} : vector<14x16x128xbf16> to vector<8x16x128xbf16>
    %142 = vector.shape_cast %141 : vector<8x16x128xbf16> to vector<128x128xbf16>
    %c0_110 = arith.constant 0 : index
    %c896_111 = arith.constant 896 : index
    %143 = vector.load %arg15[%c0_110, %c896_111] : memref<128x1152xbf16, #tpu.memory_space<vmem>>, vector<128x128xbf16>
    tpu.vector_store %arg15[%c0_110, %c896_111], %142 {strides = array<i32>} : memref<128x1152xbf16, #tpu.memory_space<vmem>>, vector<128x128xbf16>,
    %144 = arith.index_cast %9 : i32 to index
    %c0_112 = arith.constant 0 : index
    %c6 = arith.constant 6 : index
    %c0_113 = arith.constant 0 : index
    %145 = vector.load %arg11[%144, %c0_112, %c6, %c0_113] : memref<2x14x32x128xbf16, #tpu.memory_space<vmem>>, vector<1x14x16x128xbf16>
    %146 = vector.shape_cast %145 : vector<1x14x16x128xbf16> to vector<14x16x128xbf16>
    %147 = vector.extract_strided_slice %146 {offsets = [0, 0, 0], sizes = [8, 16, 128], strides = [1, 1, 1]} : vector<14x16x128xbf16> to vector<8x16x128xbf16>
    %148 = vector.shape_cast %147 : vector<8x16x128xbf16> to vector<128x128xbf16>
    %c0_114 = arith.constant 0 : index
    %c256_115 = arith.constant 256 : index
    %149 = vector.load %arg15[%c0_114, %c256_115] : memref<128x1152xbf16, #tpu.memory_space<vmem>>, vector<128x128xbf16>
    tpu.vector_store %arg15[%c0_114, %c256_115], %148 {strides = array<i32>} : memref<128x1152xbf16, #tpu.memory_space<vmem>>, vector<128x128xbf16>,
    %150 = vector.extract_strided_slice %146 {offsets = [3, 0, 0], sizes = [8, 16, 128], strides = [1, 1, 1]} : vector<14x16x128xbf16> to vector<8x16x128xbf16>
    %151 = vector.shape_cast %150 : vector<8x16x128xbf16> to vector<128x128xbf16>
    %c0_116 = arith.constant 0 : index
    %c640_117 = arith.constant 640 : index
    %152 = vector.load %arg15[%c0_116, %c640_117] : memref<128x1152xbf16, #tpu.memory_space<vmem>>, vector<128x128xbf16>
    tpu.vector_store %arg15[%c0_116, %c640_117], %151 {strides = array<i32>} : memref<128x1152xbf16, #tpu.memory_space<vmem>>, vector<128x128xbf16>,
    %153 = vector.extract_strided_slice %146 {offsets = [6, 0, 0], sizes = [8, 16, 128], strides = [1, 1, 1]} : vector<14x16x128xbf16> to vector<8x16x128xbf16>
    %154 = vector.shape_cast %153 : vector<8x16x128xbf16> to vector<128x128xbf16>
    %c0_118 = arith.constant 0 : index
    %c1024_119 = arith.constant 1024 : index
    %155 = vector.load %arg15[%c0_118, %c1024_119] : memref<128x1152xbf16, #tpu.memory_space<vmem>>, vector<128x128xbf16>
    tpu.vector_store %arg15[%c0_118, %c1024_119], %154 {strides = array<i32>} : memref<128x1152xbf16, #tpu.memory_space<vmem>>, vector<128x128xbf16>,
    %c0_120 = arith.constant 0 : index
    %c0_121 = arith.constant 0 : index
    %156 = vector.load %arg15[%c0_120, %c0_121] : memref<128x1152xbf16, #tpu.memory_space<vmem>>, vector<128x1152xbf16>
    %c1_122 = arith.constant 1 : index
    %c0_123 = arith.constant 0 : index
    %c0_124 = arith.constant 0 : index
    %157 = vector.load %arg12[%c1_122, %c0_123, %c0_124] : memref<2x1152x128xbf16, #tpu.memory_space<vmem>>, vector<1x1152x128xbf16>
    %158 = vector.shape_cast %157 : vector<1x1152x128xbf16> to vector<1152x128xbf16>
    %cst_125 = arith.constant dense<0.000000e+00> : vector<128x128xf32>
    %159 = tpu.matmul %156, %158, %cst_125 {dimension_numbers = #tpu.dot_dimension_numbers<[1], [0], [0], [1], [0, 0, 1, 1], [], []>} : vector<128x1152xbf16>, vector<1152x128xbf16>, vector<128x128xf32> -> vector<128x128xf32>
    %c1_126 = arith.constant 1 : index
    %c0_127 = arith.constant 0 : index
    %160 = vector.load %arg9[%c1_126, %c0_127] : memref<2x128xf32, #tpu.memory_space<vmem>>, vector<1x128xf32>
    %161 = vector.broadcast %160 : vector<1x128xf32> to vector<128x128xf32>
    %162 = arith.addf %159, %161 : vector<128x128xf32>
    %cst_128 = arith.constant 0.000000e+00 : f32
    %163 = vector.broadcast %cst_128 : f32 to vector<128x128xf32>
    %164 = arith.maximumf %162, %163 : vector<128x128xf32>
    %165 = vector.shape_cast %164 : vector<128x128xf32> to vector<8x16x128xf32>
    %c0_129 = arith.constant 0 : index
    %c0_130 = arith.constant 0 : index
    %c0_131 = arith.constant 0 : index
    %c384_132 = arith.constant 384 : index
    %166 = vector.load %arg10[%c0_129, %c0_130, %c0_131, %c384_132] : memref<1x8x16x512xf32, #tpu.memory_space<vmem>>, vector<1x8x16x128xf32>
    %167 = vector.shape_cast %166 : vector<1x8x16x128xf32> to vector<8x16x128xf32>
    %168 = vector.shape_cast %165 : vector<8x16x128xf32> to vector<1x8x16x128xf32>
    tpu.vector_store %arg10[%c0_129, %c0_130, %c0_131, %c384_132], %168 {strides = array<i32>} : memref<1x8x16x512xf32, #tpu.memory_space<vmem>>, vector<1x8x16x128xf32>,
    return
  }
  func.func @transform_1(%arg0: i32, %arg1: i32) -> (i32, i32, i32) {
    %c0_i32 = arith.constant 0 : i32
    %c0_i32_0 = arith.constant 0 : i32
    %c0_i32_1 = arith.constant 0 : i32
    return %arg0, %c0_i32, %c0_i32_0 : i32, i32, i32
  }
  func.func @transform_2(%arg0: i32, %arg1: i32) -> (i32, i32) {
    %c0_i32 = arith.constant 0 : i32
    %c0_i32_0 = arith.constant 0 : i32
    %c0_i32_1 = arith.constant 0 : i32
    return %c0_i32, %c0_i32_0 : i32, i32
  }
  func.func @transform_3(%arg0: i32, %arg1: i32) -> (i32, i32) {
    %c0_i32 = arith.constant 0 : i32
    %c0_i32_0 = arith.constant 0 : i32
    %c0_i32_1 = arith.constant 0 : i32
    return %c0_i32, %c0_i32_0 : i32, i32
  }
  func.func @transform_4(%arg0: i32, %arg1: i32) -> (i32, i32) {
    %c0_i32 = arith.constant 0 : i32
    %c0_i32_0 = arith.constant 0 : i32
    %c0_i32_1 = arith.constant 0 : i32
    return %c0_i32, %c0_i32_0 : i32, i32
  }
  func.func @transform_5(%arg0: i32, %arg1: i32) -> (i32, i32) {
    %c0_i32 = arith.constant 0 : i32
    %c0_i32_0 = arith.constant 0 : i32
    %c0_i32_1 = arith.constant 0 : i32
    return %c0_i32, %c0_i32_0 : i32, i32
  }
  func.func @transform_7(%arg0: i32, %arg1: i32) -> (i32, i32) {
    %c0_i32 = arith.constant 0 : i32
    %c0_i32_0 = arith.constant 0 : i32
    %c0_i32_1 = arith.constant 0 : i32
    return %c0_i32, %c0_i32_0 : i32, i32
  }
  func.func @transform_8(%arg0: i32, %arg1: i32) -> (i32, i32, i32, i32) {
    %c0_i32 = arith.constant 0 : i32
    %c0_i32_0 = arith.constant 0 : i32
    %c0_i32_1 = arith.constant 0 : i32
    return %arg0, %arg1, %c0_i32, %c0_i32_0 : i32, i32, i32, i32
  }
}

</mosaic_0001>

<bundles_post_ra>
// kernel: tpu_custom_call.1
= control target key start
LH: loop header
LB: loop body
LE: loop exit
PB: predicated region body
PF: predicated region fallthrough
CT: control target
= control target key end

     0   :  { %s6442_s0 = inlined_call_operand.hbm [shape: bf16[2,22,32,128], index: 0, kind: input, shape index: {}]   ;;  %s6443_s1 = inlined_call_operand.hbm [shape: bf16[2,1,128], index: 1, kind: input, shape index: {}]   ;;  %s6444_s2 = inlined_call_operand.hbm [shape: bf16[128,128], index: 2, kind: input, shape index: {}]   ;;  %s6445_s3 = inlined_call_operand.hbm [shape: f32[1,128], index: 3, kind: input, shape index: {}]   ;;  %s6446_s4 = inlined_call_operand.hbm [shape: bf16[128,128], index: 4, kind: input, shape index: {}]   ;;  %s6447_s5 = inlined_call_operand.hbm [shape: f32[1,128], index: 5, kind: input, shape index: {}]   ;;  %s6448_s6 = inlined_call_operand.hbm [shape: bf16[2,1152,128], index: 6, kind: input, shape index: {}]   ;;  %s6449_s7 = inlined_call_operand.hbm [shape: f32[2,128], index: 7, kind: input, shape index: {}]   ;;  %s6450_s8 = inlined_call_operand.hbm [shape: f32[2,16,16,512], index: 8, kind: output, shape index: {}]  }
   0x1   :  { %6479 = sst [smem:[#allocation51_spill]] %s6442_s0 }
   0x2   :  { %6480 = sst [smem:[#allocation52_spill]] %s6443_s1 }
   0x3   :  { %6481 = sst [smem:[#allocation53_spill]] %s6444_s2 }
   0x4   :  { %6482 = sst [smem:[#allocation54_spill]] %s6445_s3 }
   0x5   :  { %6483 = sst [smem:[#allocation55_spill]] %s6446_s4 }
   0x6   :  { %6484 = sst [smem:[#allocation56_spill]] %s6447_s5 }
   0x7   :  { %6485 = sst [smem:[#allocation57_spill]] %s6448_s6 }
   0x8   :  { %6486 = sst [smem:[#allocation58_spill]] %s6449_s7 }
   0x9   :  { %6487 = sst [smem:[#allocation59_spill]] %s6450_s8 }
   0xa   :  { %13 = vsyncpa [#allocation8], 0 }
   0xb   :  { %15 = vsyncpa [#allocation8 + $0x1], 0 }
   0xc   :  { %16 = vsyncpa [#allocation11], 0 }
   0xd   :  { %17 = vsyncpa [#allocation14], 0 }
   0xe   :  { %18 = vsyncpa [#allocation17], 0 }
   0xf   :  { %19 = vsyncpa [#allocation9], 0 }
  0x10   :  { %21 = vsyncpa [#allocation9 + $0x1], 0  ;;  %s5171_s27 = smov 0   ;;  %s5173_s28 = smov 0  }
  0x11   :  { %s5175_s29 = smov 0   ;;  %s5177_s30 = smov 0  }
  0x12   :  { %s5179_s9 = smov 0   ;;  %s5181_s10 = smov 0  }
  0x13   :  { %s5183_s11 = smov 0   ;;  %s5185_s12 = smov 0  }
  0x14   :  { %s5187_s13 = smov 0   ;;  %s5189_s14 = smov 0  }
  0x15   :  { %s5191_s15 = smov 0  }
  0x16 LB: > { %6488 = sst [smem:[#allocation37_spill]] %s5068_s27  ;;  %s3674_s16 = sadd.s32 4294967295, %s5108_s15   ;;  %s5108_s15 = sphi %s5191_s15, %s27_s15   ;;  %s5104_s14 = sphi %s5189_s14, %s6550_s14   ;;  %s5100_s13 = sphi %s5187_s13, %s6549_s13   ;;  %s5096_s12 = sphi %s5185_s12, %s6548_s12   ;;  %s5092_s11 = sphi %s5183_s11, %s6547_s11   ;;  %s5088_s10 = sphi %s5181_s10, %s6546_s10   ;;  %s5084_s9 = sphi %s5179_s9, %s6545_s9   ;;  %s5080_s30 = sphi %s5177_s30, %s6544_s30   ;;  %s5076_s29 = sphi %s5175_s29, %s6543_s29   ;;  %s5072_s28 = sphi %s5173_s28, %s6552_s28   ;;  %s5068_s27 = sphi %s5171_s27, %s6551_s27  }
  0x17   : > { %6489 = sst [smem:[#allocation38_spill]] %s5076_s29  ;;  %p3676_p0 = scmp.ge.s32.totalorder %s5108_s15, 1 }
  0x18   : > { %6490 = sst [smem:[#allocation39_spill]] %s5084_s9  ;;  %p5228_p1 = scmp.eq.s32.totalorder %s3674_s16, 0 }
  0x19   : > { %6491 = sst [smem:[#allocation40_spill]] %s5088_s10  ;;  %p5232_p2 = scmp.eq.s32.totalorder %s3674_s16, 3 }
  0x1a   : > { %6492 = sst [smem:[#allocation41_spill]] %s5092_s11  ;;  %p203_p3 = scmp.lt.s32.totalorder %s5108_s15, 5 }
  0x1b   : > { %6493 = sst [smem:[#allocation42_spill]] %s5096_s12  ;;  %s5110_s20 = smov [#allocation10]  }
  0x1c   : > { %6494 = sst [smem:[#allocation43_spill]] %s5100_s13  ;;  %p5237_p4 = pnand %p3676_p0, %p203_p3 }
  0x1d   : > { %6495 = sst [smem:[#allocation44_spill]] %s5104_s14  ;;  %s215_s21 = sshll.u32 %s5110_s20, 4  ;;  %s5241_s21 = int_to_ptr.vmem [resolvable:$true] %s215_s21 }
  0x1e   : > { %s6496_s17 = scalar_select %p5228_p1, 1, 0 }
  0x1f   : > { %s6497_s18 = scalar_select %p5232_p2, 1, 0 }
  0x20   : > { %s6499_s19 = scalar_select %p5237_p4, 1, 0 }
  0x21   : > { %6498 = sst [smem:[#allocation45_spill]] %s6497_s18  ;;  %p4538_p5 = pneg %p5237_p4 }
  0x22   : > { %6500 = sst [smem:[#allocation46_spill]] %s6499_s19  ;;  %s5111_s23 = smov [#allocation13]  }
  0x23   : > { %p5247_p6 = pnand %p4538_p5, %p5228_p1  ;;  %s239_s24 = sshll.u32 %s5111_s23, 4  ;;  %s5251_s24 = int_to_ptr.vmem [resolvable:$true] %s239_s24 }
  0x24   : > { %s5112_s25 = smov [#allocation12]   ;;  %s6502_s2 = sld [smem:[#allocation53_spill]] }
  0x25   : > { %s229_s26 = sshll.u32 %s5112_s25, 4  ;;  %p5263_p8 = pneg %p5247_p6  ;;  %s5253_s26 = int_to_ptr.vmem [resolvable:$true] %s229_s26 }
  0x2a   : > { %s4694_s8 = scalar_lea.hbm %s6502_s2, 1024 }
  0x2b   : > { %p4695_p7 = scmp.ne.s32.totalorder %s6502_s2, %s4694_s8  ;;  %p4701_p11 = scmp.lt.u32.totalorder %s4694_s8, %s6502_s2 }
  0x2d   : > { %p4697_p9 = pnand %p5263_p8, %p4695_p7 }
  0x2f   : > { %p4698_p10 = pneg %p4697_p9 }
  0x31   : > { %p4703_p12 = pnand %p4701_p11, %p4698_p10 }
  0x33   : > { %4706 = shalt.err (!%p4703_p12)
}
  0x34   : > { %s4707_s0 = scalar_lea.vmem %s5241_s21, 1024  ;;  %p4715_p5 = scmp.lt.s32.totalorder %s5241_s21, %s5241_s21 }
  0x35   : > { %p4708_p13 = scmp.ne.s32.totalorder %s5241_s21, %s4707_s0  ;;  %p4716_p4 = scmp.lt.s32.totalorder %s4707_s0, %s4707_s0 }
  0x37   : > { %p4710_p0 = pnand %p4708_p13, %p5263_p8  ;;  %p4717_p7 = por %p4716_p4, %p4715_p5 }
  0x39   : > { %p4711_p3 = pneg %p4710_p0 }
  0x3b   : > { %p4718_p9 = pnand %p4717_p7, %p4711_p3 }
  0x3d   : > { %4721 = shalt.err (!%p4718_p9)
}
  0x3e   : > { %s5113_s6 = smov 64   ;;  %s5114_s8 = smov 4  }
  0x3f   : > { %4541 = dma.hbm_to_vmem [thread:$0]  (!%p5247_p6), %s6502_s2, 1024, %s5241_s21, [#allocation11], %s5113_s6, %s5113_s6, %s5114_s8  }
  0x40   : > { %s6504_s4 = sld [smem:[#allocation55_spill]] }
  0x46   : > { %s4722_s11 = scalar_lea.hbm %s6504_s4, 1024 }
  0x47   : > { %p4723_p4 = scmp.ne.s32.totalorder %s6504_s4, %s4722_s11  ;;  %p4729_p12 = scmp.lt.u32.totalorder %s4722_s11, %s6504_s4 }
  0x49   : > { %p4725_p10 = pnand %p4723_p4, %p5263_p8 }
  0x4b   : > { %p4726_p11 = pneg %p4725_p10 }
  0x4d   : > { %p4731_p13 = pnand %p4729_p12, %p4726_p11 }
  0x4f   : > { %4734 = shalt.err (!%p4731_p13)
}
  0x50   : > { %s4735_s21 = scalar_lea.vmem %s5251_s24, 1024  ;;  %p4743_p7 = scmp.lt.s32.totalorder %s5251_s24, %s5251_s24 }
  0x51   : > { %p4736_p0 = scmp.ne.s32.totalorder %s5251_s24, %s4735_s21  ;;  %p4744_p9 = scmp.lt.s32.totalorder %s4735_s21, %s4735_s21 }
  0x53   : > { %p4738_p3 = pnand %p4736_p0, %p5263_p8  ;;  %p4745_p4 = por %p4744_p9, %p4743_p7 }
  0x55   : > { %p4739_p5 = pneg %p4738_p3 }
  0x57   : > { %p4746_p10 = pnand %p4745_p4, %p4739_p5 }
  0x59   : > { %4749 = shalt.err (!%p4746_p10)
}
  0x5a   : > { %4547 = dma.hbm_to_vmem [thread:$0]  (!%p5247_p6), %s6504_s4, 1024, %s5251_s24, [#allocation14], %s5113_s6, %s5113_s6, %s5114_s8  }
  0x5b   : > { %s6505_s3 = sld [smem:[#allocation54_spill]] }
  0x61   : > { %s4750_s16 = scalar_lea.hbm %s6505_s3, 16 }
  0x62   : > { %p4751_p11 = scmp.ne.s32.totalorder %s6505_s3, %s4750_s16  ;;  %p4757_p0 = scmp.lt.u32.totalorder %s4750_s16, %s6505_s3 }
  0x64   : > { %p4753_p12 = pnand %p4751_p11, %p5263_p8 }
  0x66   : > { %p4754_p13 = pneg %p4753_p12 }
  0x68   : > { %p4759_p3 = pnand %p4757_p0, %p4754_p13 }
  0x6a   : > { %4762 = shalt.err (!%p4759_p3)
}
  0x6b   : > { %s4763_s24 = scalar_lea.vmem %s5253_s26, 16  ;;  %s4770_s6 = scalar_lea.vmem %s5253_s26, 32 }
  0x6c   : > { %p4764_p5 = scmp.ne.s32.totalorder %s5253_s26, %s4763_s24  ;;  %p4771_p4 = scmp.lt.s32.totalorder %s5253_s26, %s5253_s26 }
  0x6d   : > { %p4772_p10 = scmp.lt.s32.totalorder %s4770_s6, %s4763_s24 }
  0x6e   : > { %p4766_p7 = pnand %p4764_p5, %p5263_p8 }
  0x6f   : > { %p4773_p11 = por %p4772_p10, %p4771_p4 }
  0x70   : > { %p4767_p9 = pneg %p4766_p7 }
  0x72   : > { %p4774_p12 = pnand %p4773_p11, %p4767_p9 }
  0x74   : > { %4777 = shalt.err (!%p4774_p12)
}
  0x75   : > { %4544 = dma.hbm_to_vmem [thread:$0]  (!%p5247_p6), %s6505_s3, 16, %s5253_s26, [#allocation11]  }
  0x76   : > { %s5115_s1 = smov [#allocation15]   ;;  %s5116_s18 = smov [#allocation16]  }
  0x77   : > { %s253_s11 = sshll.u32 %s5115_s1, 4  ;;  %s264_s19 = sshll.u32 %s5116_s18, 4  ;;  %s254_s11 = int_to_ptr.vmem [resolvable:$true] %s253_s11  ;;  %s5331_s19 = int_to_ptr.vmem [resolvable:$true] %s264_s19 }
  0x78   : > { %s6506_s5 = sld [smem:[#allocation56_spill]] }
  0x7e   : > { %s4778_s23 = scalar_lea.hbm %s6506_s5, 16 }
  0x7f   : > { %p4779_p13 = scmp.ne.s32.totalorder %s6506_s5, %s4778_s23  ;;  %p4785_p5 = scmp.lt.u32.totalorder %s4778_s23, %s6506_s5 }
  0x81   : > { %p4781_p0 = pnand %p4779_p13, %p5263_p8 }
  0x83   : > { %p4782_p3 = pneg %p4781_p0 }
  0x85   : > { %p4787_p7 = pnand %p4785_p5, %p4782_p3 }
  0x87   : > { %4790 = shalt.err (!%p4787_p7)
}
  0x88   : > { %s4791_s6 = scalar_lea.vmem %s254_s11, 16  ;;  %s4798_s8 = scalar_lea.vmem %s254_s11, 32 }
  0x89   : > { %p4792_p9 = scmp.ne.s32.totalorder %s254_s11, %s4791_s6  ;;  %p4799_p11 = scmp.lt.s32.totalorder %s254_s11, %s254_s11 }
  0x8a   : > { %p4800_p12 = scmp.lt.s32.totalorder %s4798_s8, %s4791_s6 }
  0x8b   : > { %p4794_p4 = pnand %p4792_p9, %p5263_p8 }
  0x8c   : > { %p4801_p2 = por %p4800_p12, %p4799_p11 }
  0x8d   : > { %p4795_p10 = pneg %p4794_p4 }
  0x8f   : > { %p4802_p1 = pnand %p4801_p2, %p4795_p10 }
  0x91   : > { %4805 = shalt.err (!%p4802_p1)
}
  0x92   : > { %4550 = dma.hbm_to_vmem [thread:$0]  (!%p5247_p6), %s6506_s5, 16, %s254_s11, [#allocation14]  }
  0x93   : > { %s6507_s7 = sld [smem:[#allocation58_spill]] }
  0x99   : > { %s4806_s20 = scalar_lea.hbm %s6507_s7, 32 }
  0x9a   : > { %p4807_p13 = scmp.ne.s32.totalorder %s6507_s7, %s4806_s20  ;;  %p4813_p1 = scmp.lt.u32.totalorder %s4806_s20, %s6507_s7 }
  0x9c   : > { %p4809_p0 = pnand %p4807_p13, %p5263_p8 }
  0x9e   : > { %p4810_p3 = pneg %p4809_p0 }
  0xa0   : > { %p4815_p2 = pnand %p4813_p1, %p4810_p3 }
  0xa2   : > { %4818 = shalt.err (!%p4815_p2)
}
  0xa3   : > { %s4819_s11 = scalar_lea.vmem %s5331_s19, 32  ;;  %p4827_p4 = scmp.lt.s32.totalorder %s5331_s19, %s5331_s19 }
  0xa4   : > { %p4820_p5 = scmp.ne.s32.totalorder %s5331_s19, %s4819_s11  ;;  %p4828_p10 = scmp.lt.s32.totalorder %s4819_s11, %s4819_s11 }
  0xa6   : > { %p4822_p7 = pnand %p4820_p5, %p5263_p8  ;;  %p4829_p11 = por %p4828_p10, %p4827_p4 }
  0xa8   : > { %p4823_p9 = pneg %p4822_p7 }
  0xaa   : > { %p4830_p12 = pnand %p4829_p11, %p4823_p9 }
  0xac   : > { %4833 = shalt.err (!%p4830_p12)
}
  0xad   : > { %4553 = dma.hbm_to_vmem [thread:$0]  (!%p5247_p6), %s6507_s7, 32, %s5331_s19, [#allocation17]  }
  0xae   : > { %s3675_s12 = sadd.s32 4294967294, %s5108_s15   ;;  %s36_s22 = sadd.s32 1, %s5100_s13 }
  0xaf   : > { %p37_p8 = scmp.ge.s32.totalorder %s36_s22, 2  ;;  %s39_s8 = sadd.s32 1, %s5104_s14 }
  0xb0   : > { %s46_s21 = sadd.s32 1, %s5088_s10  ;;  %p53_p13 = scmp.ne.s32.totalorder %s5088_s10, %s5084_s9 }
  0xb1   : > { %s6554_s22 = smov (%p37_p8, %s36_s22), 0  ;;  %s6509_s1 = sld [smem:[#allocation45_spill]] }
  0xb2   : > { %6508 = sst [smem:[#allocation47_spill]] %s6554_s22  ;;  %s6556_s8 = smov (!%p37_p8, %s39_s8), %s5104_s14 }
  0xb3   : > { %p54_p0 = scmp.eq.s32.totalorder %s5108_s15, 0  ;;  %p59_p6 = scmp.ne.s32.totalorder %s5084_s9, %s5080_s30 }
  0xb4   : > { %p41_p3 = scmp.ge.s32.totalorder %s6556_s8, 2  ;;  %s175_s19 = ssub.s32 %s5100_s13, %s6554_s22 }
  0xb5   : > { %p5388_p1 = por %p54_p0, %p53_p13  ;;  %p6511_p2 = scmp.ne.s32.totalorder %s6496_s17, 0 }
  0xb6   : > { %s6558_s8 = smov (%p41_p3, %s6556_s8), 0  ;;  %s179_s20 = sadd.s32 1, %s5076_s29 }
  0xb7   : > { %p5394_p5 = por %p6511_p2, %p59_p6  ;;  %6513 = sst [smem:[#allocation48_spill]] %s6558_s8 }
  0xb8   : > { %p189_p7 = scmp.ne.s32.totalorder %s5076_s29, %s5072_s28  ;;  %s43_s30 = ssub.s32 %s5104_s14, %s6558_s8 }
  0xb9   : > { %p195_p9 = scmp.ne.s32.totalorder %s5072_s28, %s5068_s27  ;;  %p44_p4 = scmp.eq.s32.totalorder %s43_s30, 0 }
  0xba   : > { %s176_s23 = sor.u32 %s175_s19, %s43_s30  ;;  %p6514_p11 = scmp.ne.s32.totalorder %s6509_s1, 0 }
  0xbb   : > { %p177_p10 = scmp.eq.s32.totalorder %s176_s23, 0  ;;  %p196_p8 = scmp.eq.s32.totalorder %s3675_s12, 3 }
  0xbc   : > { %p5409_p12 = por %p6514_p11, %p189_p7  ;;  %p4567_p13 = scmp.lt.s32.totalorder %s5108_s15, 4 }
  0xbd   : > { %s5414_s0 = scalar_select %p44_p4, %s5088_s10, %s46_s21  }
  0xbe   : > { %s6515_s25 = scalar_select %p5409_p12, 1, 0 }
  0xbf   : > { %6516 = sst [smem:[#allocation49_spill]] %s5414_s0  ;;  %s275_s11 = sand.u32 1, %s5088_s10  }
  0xc0   : > { %s5417_s24 = scalar_select %p177_p10, %s5076_s29, %s179_s20  }
  0xc1   : > { %s3683_s26 = sshll.u32 %s5104_s14, 4  ;;  %p5422_p0 = por %p196_p8, %p195_p9 }
  0xc2   : > { %6517 = sst [smem:[#allocation50_spill]] %s5417_s24  ;;  %s278_s21 = scalar_lea.vmem [#allocation7], %s275_s11 }
  0xc3   : > { %s6518_s6 = scalar_select %p5422_p0, 1, 0 }
  0xc4   : > { %s6520_s30 = sld [smem:[#allocation52_spill]]  ;;  %s285_s20 = sshll.u32 %s278_s21, 4  ;;  %s5437_s20 = int_to_ptr.vmem [resolvable:$true] %s285_s20 }
  0xc5   : > { %6519 = sst [smem:[#allocation45_spill]] %s6518_s6  ;;  %p5433_p6 = pnand %p4567_p13, %p5388_p1 }
  0xc6   : > { %s276_s3 = scalar_lea.sflag [#allocation8], %s275_s11 }
  0xc7   : > { %p4836_p2 = pneg %p5433_p6 }
  0xca   : > { %s6521_s23 = smov %s6520_s30  ;;  %s5429_s1 = scalar_lea.hbm %s6520_s30, %s3683_s26 }
  0xcb   : > { %s4834_s4 = scalar_lea.hbm %s5429_s1, 16  ;;  %s4839_s18 = scalar_lea.hbm %s6521_s23, 32 }
  0xcc   : > { %p4835_p3 = scmp.ne.s32.totalorder %s5429_s1, %s4834_s4  ;;  %p4840_p1 = scmp.lt.u32.totalorder %s5429_s1, %s6521_s23 }
  0xcd   : > { %p4841_p4 = scmp.lt.u32.totalorder %s4839_s18, %s4834_s4  ;;  %p4843_p11 = scmp.lt.u32.totalorder %s4834_s4, %s5429_s1 }
  0xce   : > { %p4837_p7 = pnand %p4836_p2, %p4835_p3 }
  0xcf   : > { %p4842_p10 = por %p4841_p4, %p4840_p1 }
  0xd0   : > { %p4838_p9 = pneg %p4837_p7 }
  0xd1   : > { %p4844_p8 = por %p4843_p11, %p4842_p10 }
  0xd3   : > { %p4845_p13 = pnand %p4844_p8, %p4838_p9 }
  0xd5   : > { %4848 = shalt.err (!%p4845_p13)
}
  0xd6   : > { %s4849_s11 = scalar_lea.vmem %s5437_s20, 16  ;;  %s5117_s21 = smov [#allocation7]  }
  0xd7   : > { %p4850_p3 = scmp.ne.s32.totalorder %s5437_s20, %s4849_s11  ;;  %s4854_s2 = sshll.u32 %s5117_s21, 4  ;;  %s4855_s2 = int_to_ptr.vmem [resolvable:$false] %s4854_s2 }
  0xd8   : > { %s4856_s26 = scalar_lea.vmem %s4855_s2, 32  ;;  %p4857_p12 = scmp.lt.s32.totalorder %s5437_s20, %s4855_s2 }
  0xd9   : > { %p4852_p7 = pnand %p4850_p3, %p4836_p2  ;;  %p4858_p1 = scmp.lt.s32.totalorder %s4856_s26, %s4849_s11 }
  0xdb   : > { %p4853_p0 = pneg %p4852_p7  ;;  %p4859_p4 = por %p4858_p1, %p4857_p12 }
  0xdd   : > { %p4860_p10 = pnand %p4859_p4, %p4853_p0 }
  0xdf   : > { %4863 = shalt.err (!%p4860_p10)
}
  0xe0   : > { %4557 = dma.hbm_to_vmem [thread:$0]  (!%p5433_p6), %s5429_s1, 16, %s5437_s20, %s276_s3  }
  0xe1   : > { %s6523_s4 = sld [smem:[#allocation46_spill]] }
  0xe7   : > { %p6524_p9 = scmp.ne.s32.totalorder %s6523_s4, 0 }
  0xe8   : > { %s296_s18 = sand.u32 (!%p6524_p9), 1, %s5084_s9  }
  0xe9   : > { %294 = sbr.rel (%p6524_p9) target bundleno = 1443 (0x5a3), region = 44  ;;  %s297_s19 = scalar_lea.sflag (!%p6524_p9), [#allocation8], %s296_s18 }
  0xea   : > { %s5467_s30 = scalar_lea.vmem (!%p6524_p9), [#allocation7], %s296_s18 }
  0xf0   : > { %5041 = dma.done.wait (%p5394_p5), %s297_s19, 16  }
  0xf1   : > { %5043 = vsyncadd (%p5394_p5), %s297_s19, 4294967280  ;;  %p6525_p12 = scmp.ne.s32.totalorder %s6496_s17, 0 }
  0xf3   : > { %5045 = dma.done.wait (%p6525_p12), [#allocation11], 1040  }
  0xf4   : > { %5047 = vsyncadd (%p6525_p12), [#allocation11], 4294966256 }
  0xf5   : > { %5049 = dma.done.wait (%p6525_p12), [#allocation14], 1040  }
  0xf6   : > { %5051 = vsyncadd (%p6525_p12), [#allocation14], 4294966256 }
  0xf7   : > { %5053 = dma.done.wait (%p6525_p12), [#allocation17], 32  }
  0xf8   : > { %5055 = vsyncadd (%p6525_p12), [#allocation17], 4294967264  ;;  %s6526_s3 = sld [smem:[#allocation41_spill]]  ;;  %s6527_s16 = sld [smem:[#allocation42_spill]] }
  0xf9   : > { %s6463_s1 = sand.u32 1, %s5072_s28   ;;  %s6528_s2 = sld [smem:[#allocation51_spill]] }
  0xfa   : > { %s5488_s20 = sshll.u32 %s6463_s1, 9  ;;  %s5118_s4 = smov [#allocation2]  }
  0xfb   : > { %s375_s18 = sshll.u32 %s5118_s4, 4  ;;  %s5119_s17 = smov [#allocation3]   ;;  %s5495_s18 = int_to_ptr.vmem [resolvable:$true] %s375_s18 }
  0xfc   : > { %s386_s19 = sshll.u32 %s5119_s17, 4  ;;  %s5521_s19 = int_to_ptr.vmem [resolvable:$true] %s386_s19 }
  0xfe   : > { %p4573_p5 = scmp.eq.s32.totalorder %s6526_s3, 0  ;;  %s3821_s12 = smul.u32 5632, %s6527_s16 }
  0xff   : > { %s6468_s23 = scalar_lea.hbm %s6528_s2, 11264 }
 0x100   : > { %s367_s26 = scalar_lea.hbm %s6528_s2, %s3821_s12 }
 0x101   : > { %s4864_s5 = scalar_lea.hbm %s367_s26, 3584  ;;  %p4869_p11 = scmp.lt.u32.totalorder %s367_s26, %s6528_s2 }
 0x102   : > { %p4865_p0 = scmp.ne.s32.totalorder %s367_s26, %s4864_s5  ;;  %p4870_p8 = scmp.lt.u32.totalorder %s6468_s23, %s4864_s5 }
 0x103   : > { %p4872_p3 = scmp.lt.u32.totalorder %s4864_s5, %s367_s26 }
 0x104   : > { %p4866_p6 = pnand %p4865_p0, %p4573_p5  ;;  %p4871_p13 = por %p4870_p8, %p4869_p11 }
 0x106   : > { %p4867_p2 = pneg %p4866_p6  ;;  %p4873_p7 = por %p4872_p3, %p4871_p13 }
 0x108   : > { %p4874_p1 = pnand %p4873_p7, %p4867_p2 }
 0x10a   : > { %4877 = shalt.err (!%p4874_p1)  }
 0x10b   : > { %s4878_s7 = scalar_lea.vmem %s5495_s18, 3584  ;;  %s6467_s22 = scalar_lea.vmem %s5495_s18, 7168 }
 0x10c   : > { %p4879_p4 = scmp.ne.s32.totalorder %s5495_s18, %s4878_s7  ;;  %p4885_p12 = scmp.lt.s32.totalorder %s5495_s18, %s5495_s18 }
 0x10d   : > { %p4886_p0 = scmp.lt.s32.totalorder %s6467_s22, %s4878_s7 }
 0x10e   : > { %p4880_p10 = pnand %p4879_p4, %p4573_p5 }
 0x10f   : > { %p4887_p6 = por %p4886_p0, %p4885_p12 }
 0x110   : > { %p4881_p9 = pneg %p4880_p10 }
 0x112   : > { %p4888_p11 = pnand %p4887_p6, %p4881_p9 }
 0x114   : > { %4891 = shalt.err (!%p4888_p11)  }
 0x115   : > { %4533 = dma.hbm_to_vmem [thread:$0]  (%p4573_p5), %s367_s26, 3584, %s5495_s18, [#allocation4] }
 0x116   : > { %p349_p2 = scmp.lt.s32.totalorder %s6526_s3, 0  ;;  %s6529_s1 = sld [smem:[#allocation57_spill]] }
 0x11c   : > { %s5527_s21 = scalar_lea.hbm %s6529_s1, 9216  ;;  %s5536_s26 = scalar_lea.hbm %s6529_s1, 18432 }
 0x11d   : > { %p4893_p8 = scmp.ne.s32.totalorder %s6529_s1, %s5527_s21  ;;  %p6477_p5 = scmp.lt.u32.totalorder %s5536_s26, %s5527_s21 }
 0x11e   : > { %p6478_p13 = scmp.lt.u32.totalorder %s5527_s21, %s6529_s1 }
 0x120   : > { %p4897_p3 = por %p6478_p13, %p6477_p5 }
 0x122   : > { %p4898_p7 = pnand %p4897_p3, %p4893_p8 }
 0x124   : > { %4901 = shalt.err (!%p4898_p7)  }
 0x125   : > { %s4902_s17 = scalar_lea.vmem %s5521_s19, 9216  ;;  %s6469_s12 = scalar_lea.vmem %s5521_s19, 18432 }
 0x126   : > { %p4903_p1 = scmp.ne.s32.totalorder %s5521_s19, %s4902_s17  ;;  %p4907_p4 = scmp.lt.s32.totalorder %s5521_s19, %s5521_s19 }
 0x127   : > { %p4908_p10 = scmp.lt.s32.totalorder %s6469_s12, %s4902_s17 }
 0x129   : > { %p4909_p9 = por %p4908_p10, %p4907_p4 }
 0x12b   : > { %p4910_p12 = pnand %p4909_p9, %p4903_p1 }
 0x12d   : > { %4913 = shalt.err (!%p4910_p12)  }
 0x12e   : > { %389 = dma.hbm_to_vmem [thread:$0]  %s6529_s1, 9216, %s5521_s19, [#allocation5] }
 0x12f   : > { %s350_s5 = ssub.s32 0, %s6526_s3  ;;  %s390_s8 = sadd.s32 1, %s6526_s3 }
 0x130   : > { %s3691_s4 = smin.u32 %s6526_s3, %s350_s5  ;;  %s3697_s17 = sshll.u32 %s6526_s3, 5 }
 0x131   : > { %s352_s22 = sand.u32 1, %s3691_s4   ;;  %s3564_s12 = smul.u32 88, %s6527_s16 }
 0x132   : > { %s353_s23 = ssub.s32 0, %s352_s22  ;;  %p5572_p6 = scmp.lt.s32.totalorder %s390_s8, 2 }
 0x133   : > { %s6560_s23 = smov (!%p349_p2, %s353_s23), %s352_s22  ;;  %s3565_s13 = sadd.s32 %s3697_s17, %s3564_s12 }
 0x134   : > { %p3693_p0 = scmp.lt.s32.totalorder %s6560_s23, 0  ;;  %s359_s14 = sadd.s32 2, %s6560_s23 }
 0x135   : > { %s3698_s7 = sshll.u32 %s3565_s13, 6  ;;  %s6531_s0 = scalar_lea.hbm %s6528_s2, 11264 }
 0x136   : > { %s6562_s14 = smov (!%p3693_p0, %s359_s14), %s6560_s23  ;;  %s3567_s10 = scalar_lea.hbm %s6528_s2, %s3698_s7 }
 0x137   : > { %s395_s5 = ssub.s32 1, %s6562_s14  ;;  %s3568_s22 = scalar_lea.hbm %s3567_s10, 2048 }
 0x138   : > { %s3822_s9 = smul.u32 224, %s395_s5  ;;  %s405_s23 = scalar_lea.sflag [#allocation4], %s395_s5 }
 0x139   : > { %s3823_s24 = smul.u32 224, %s6562_s14  ;;  %s4942_s17 = scalar_lea.hbm %s3567_s10, 5632 }
 0x13a   : > { %s404_s29 = scalar_lea.vmem [#allocation2], %s3822_s9  ;;  %p4915_p11 = scmp.ne.s32.totalorder %s3568_s22, %s4942_s17 }
 0x13b   : > { %s413_s12 = sshll.u32 %s404_s29, 4  ;;  %p4919_p3 = scmp.lt.u32.totalorder %s3568_s22, %s6528_s2  ;;  %s414_s12 = int_to_ptr.vmem [resolvable:$true] %s413_s12 }
 0x13c   : > { %p4916_p2 = pnand %p4915_p11, %p5572_p6  ;;  %p4920_p7 = scmp.lt.u32.totalorder %s6531_s0, %s4942_s17 }
 0x13d   : > { %p4922_p4 = scmp.lt.u32.totalorder %s4942_s17, %s3568_s22 }
 0x13e   : > { %p4917_p8 = pneg %p4916_p2  ;;  %p4921_p1 = por %p4920_p7, %p4919_p3 }
 0x140   : > { %p4923_p10 = por %p4922_p4, %p4921_p1 }
 0x142   : > { %p4924_p9 = pnand %p4923_p10, %p4917_p8 }
 0x144   : > { %4927 = shalt.err (!%p4924_p9)  }
 0x145   : > { %s4928_s29 = scalar_lea.vmem %s414_s12, 3584  ;;  %p4935_p2 = scmp.lt.s32.totalorder %s414_s12, %s5495_s18 }
 0x146   : > { %p4929_p12 = scmp.ne.s32.totalorder %s414_s12, %s4928_s29  ;;  %s6532_s9 = scalar_lea.vmem %s5495_s18, 7168 }
 0x147   : > { %p4936_p5 = scmp.lt.s32.totalorder %s6532_s9, %s4928_s29 }
 0x148   : > { %p4930_p0 = pnand %p4929_p12, %p5572_p6 }
 0x149   : > { %p4937_p13 = por %p4936_p5, %p4935_p2 }
 0x14a   : > { %p4931_p11 = pneg %p4930_p0 }
 0x14c   : > { %p4938_p3 = pnand %p4937_p13, %p4931_p11 }
 0x14e   : > { %4941 = shalt.err (!%p4938_p3)  }
 0x14f   : > { %4535 = dma.hbm_to_vmem [thread:$0]  (%p5572_p6), %s3568_s22, 3584, %s414_s12, %s405_s23 }
 0x150   : > { %s5598_s27 = scalar_lea.vmem [#allocation18], %s5488_s20  ;;  %s5600_s10 = scalar_lea.vmem [#allocation2], %s3823_s24 }
 0x151   : > { %s420_s6 = scalar_lea.sflag [#allocation4], %s6562_s14 }
 0x152   : > { %5056 = dma.done.wait %s420_s6, 3584 }
 0x153   : > { %5057 = vsyncadd %s420_s6, 4294963712  ;;  %v5120_v0 = vmov 0.0   ;;  %vm5121_vm0 = vmmov 0   ;;  %v4678_v1 = vld [vmem:[#allocation13] sm:$0xff]   ;;  %v4679_v2 = vld [vmem:[#allocation13 + $0x8] sm:$0xff]   ;;  %s5122_s14 = smov [#allocation3 + $0x240]   ;;  %p4944_p5 = scmp.ne.s32.totalorder %s5527_s21, %s5536_s26 }
 0x154   : > { %4394 = vmatprep.subr.bf16.mxu0 %v5120_v0  ;;  %4410 = vmatprep.mubr.msk.bf16.mxu0 %vm5121_vm0, %v5120_v0  ;;  %v4680_v3 = vld [vmem:[#allocation13 + $0x10] sm:$0xff]   ;;  %v4684_v4 = vld [vmem:[#allocation10] sm:$0xff]   ;;  %v4686_v6 = vld [vmem:[#allocation10 + $0x8] sm:$0xff]   ;;  %vm572_vm1 = vsmask.f32 6400  ;;  %s935_s24 = sshll.u32 %s5122_s14, 4  ;;  %p4947_p13 = scmp.lt.u32.totalorder %s5536_s26, %s5536_s26  ;;  %s936_s24 = int_to_ptr.vmem [resolvable:$true] %s935_s24 }
 0x155   : > { %4414 = vmatprep.subr.bf16.mxu1 %v4678_v1  ;;  %v4681_v5 = vld [vmem:[#allocation13 + $0x18] sm:$0xff]   ;;  %4395 = vmatpush3.bf16.msra.mxu0 %v4684_v4  ;;  %v4682_v7 = vld [vmem:[#allocation13 + $0x20] sm:$0xff]   ;;  %v4688_v8 = vld [vmem:[#allocation10 + $0x10] sm:$0xff]   ;;  %p6533_p6 = scmp.lt.u32.totalorder %s5527_s21, %s6529_s1  ;;  %p6534_p7 = scmp.lt.u32.totalorder %s5536_s26, %s5527_s21 }
 0x156   : > { %4415 = vmatpush3.bf16.msra.mxu1 %v4678_v1  ;;  %4396 = vmatprep.subr.bf16.mxu0 %v5120_v0  ;;  %v3710_v9 = vld [vmem:[%s5600_s10 + $0x30] sm:$0xfe]  ;;  %v3711_v10 = vld [vmem:[%s5600_s10 + $0x38] sm:$0x3]  ;;  %v3712_v15 = vld [vmem:[%s5600_s10 + $0x40] sm:$0xfe] }
 0x157   : > { %4416 = vmatprep.subr.bf16.mxu1 %v4679_v2  ;;  %v574_v11 = vshrl.u32 %v3710_v9, 16  ;;  %v577_v12 = vshll.u32 %v3710_v9, 16  ;;  %v582_v13 = vshrl.u32 %v3711_v10, 16  ;;  %v585_v14 = vshll.u32 %v3711_v10, 16  ;;  %v3713_v16 = vld [vmem:[%s5600_s10 + $0x48] sm:$0x3]  ;;  %p4948_p8 = por %p4947_p13, %p6533_p6 }
 0x158   : > { %v4683_v21 = vld [vmem:[#allocation13 + $0x28] sm:$0xff]   ;;  %v591_v22 = vshrl.u32 %v3712_v15, 16  ;;  %v594_v23 = vshll.u32 %v3712_v15, 16  ;;  %v4689_v24 = vld [vmem:[#allocation10 + $0x18] sm:$0xff]   ;;  %v599_v28 = vshrl.u32 %v3713_v16, 16  ;;  %v602_v29 = vshll.u32 %v3713_v16, 16 }
 0x159   : > { %4397 = vmatpush3.bf16.msra.mxu0 %v4686_v6  ;;  %v576_v17 = vrot.slane %v574_v11, 1  ;;  %v579_v18 = vrot.slane %v577_v12, 2  ;;  %v584_v19 = vrot.slane %v582_v13, 1  ;;  %v587_v20 = vrot.slane %v585_v14, 2  ;;  %v3714_v27 = vld [vmem:[%s5600_s10 + $0x50] sm:$0xfe]  ;;  %p4950_p1 = por %p4948_p8, %p6534_p7 }
 0x15a   : > { %4417 = vmatpush3.bf16.msra.mxu1 %v4679_v2  ;;  %4398 = vmatprep.subr.bf16.mxu0 %v5120_v0  ;;  %v3715_v30 = vld [vmem:[%s5600_s10 + $0x58] sm:$0x3]  ;;  %v593_v33 = vrot.slane %v591_v22, 1  ;;  %v608_v34 = vshrl.u32 %v3714_v27, 16  ;;  %v611_v35 = vshll.u32 %v3714_v27, 16  ;;  %v596_v36 = vrot.slane %v594_v23, 2 }
 0x15b   : > { %4418 = vmatprep.subr.bf16.mxu1 %v4680_v3  ;;  %v580_v25 = vor.u32 %v579_v18, %v576_v17  ;;  %v588_v26 = vor.u32 %v587_v20, %v584_v19  ;;  %v4685_v32 = vld [vmem:[#allocation13 + $0x30] sm:$0xff]   ;;  %v4690_v37 = vld [vmem:[#allocation10 + $0x20] sm:$0xff]   ;;  %v616_v38 = vshrl.u32 %v3715_v30, 16  ;;  %v619_v39 = vshll.u32 %v3715_v30, 16  ;;  %v4691_v47 = vld [vmem:[#allocation10 + $0x28] sm:$0xff]   ;;  %p4951_p4 = pnand %p4950_p1, %p4944_p5 }
 0x15c   : > { %v601_v40 = vrot.slane %v599_v28, 1  ;;  %v604_v41 = vrot.slane %v602_v29, 2  ;;  %v3716_v42 = vld [vmem:[%s5600_s10 + $0x60] sm:$0xfe]  ;;  %v610_v44 = vrot.slane %v608_v34, 1  ;;  %v613_v45 = vrot.slane %v611_v35, 2 }
 0x15d   : > { %4399 = vmatpush3.bf16.msra.mxu0 %v4688_v8  ;;  %v5615_v31 = vsel %vm572_vm1, %v580_v25, %v588_v26  ;;  %v4687_v43 = vld [vmem:[#allocation13 + $0x38] sm:$0xff]   ;;  %v3717_v46 = vld [vmem:[%s5600_s10 + $0x68] sm:$0x3]  ;;  %v618_v48 = vrot.slane %v616_v38, 1  ;;  %v621_v49 = vrot.slane %v619_v39, 2  ;;  %v597_v52 = vor.u32 %v596_v36, %v593_v33  ;;  %v4692_v1 = vld [vmem:[#allocation10 + $0x30] sm:$0xff]  }
 0x15e   : > { %4419 = vmatpush3.bf16.msra.mxu1 %v4680_v3  ;;  %4400 = vmatprep.subr.bf16.mxu0 %v5120_v0  ;;  %v3718_v50 = vld [vmem:[%s5600_s10 + $0x70] sm:$0xfe]  ;;  %v3719_v51 = vld [vmem:[%s5600_s10 + $0x78] sm:$0x3]  ;;  %v605_v53 = vor.u32 %v604_v41, %v601_v40  ;;  %v625_v54 = vshrl.u32 %v3716_v42, 16  ;;  %v628_v55 = vshll.u32 %v3716_v42, 16  ;;  %v614_v62 = vor.u32 %v613_v45, %v610_v44 }
 0x15f   : > { %4420 = vmatprep.subr.bf16.mxu1 %v4681_v5  ;;  %4430 = vmatprep.mubr.bf16.mxu1 %v5615_v31  ;;  %v633_v56 = vshrl.u32 %v3717_v46, 16  ;;  %v636_v57 = vshll.u32 %v3717_v46, 16  ;;  %v642_v58 = vshrl.u32 %v3718_v50, 16  ;;  %v645_v59 = vshll.u32 %v3718_v50, 16  ;;  %v3720_v11 = vld [vmem:[%s5600_s10 + $0x80] sm:$0xfe] }
 0x160   : > { %v650_v60 = vshrl.u32 %v3719_v51, 16  ;;  %v653_v61 = vshll.u32 %v3719_v51, 16  ;;  %v622_v63 = vor.u32 %v621_v49, %v618_v48  ;;  %v5625_v2 = vsel %vm572_vm1, %v597_v52, %v605_v53  ;;  %v3721_v13 = vld [vmem:[%s5600_s10 + $0x88] sm:$0x3]  ;;  %v4693_v14 = vld [vmem:[#allocation10 + $0x38] sm:$0xff]  }
 0x161   : > { %4401 = vmatpush3.bf16.msra.mxu0 %v4689_v24  ;;  %v627_v3 = vrot.slane %v625_v54, 1  ;;  %v630_v4 = vrot.slane %v628_v55, 2  ;;  %v638_v6 = vrot.slane %v636_v57, 2  ;;  %v647_v8 = vrot.slane %v645_v59, 2  ;;  %v3722_v15 = vld [vmem:[%s5600_s10 + $0x90] sm:$0xfe] }
 0x162   : > { %4421 = vmatpush3.bf16.msra.mxu1 %v4681_v5  ;;  %4402 = vmatprep.subr.bf16.mxu0 %v5120_v0  ;;  %v635_v5 = vrot.slane %v633_v56, 1  ;;  %v652_v9 = vrot.slane %v650_v60, 1  ;;  %v655_v10 = vrot.slane %v653_v61, 2  ;;  %v5630_v12 = vsel %vm572_vm1, %v614_v62, %v622_v63  ;;  %v3723_v16 = vld [vmem:[%s5600_s10 + $0x98] sm:$0x3] }
 0x163   : > { %4422 = vmatprep.subr.bf16.mxu1 %v4682_v7  ;;  %v631_v17 = vor.u32 %v630_v4, %v627_v3  ;;  %v659_v19 = vshrl.u32 %v3720_v11, 16  ;;  %v662_v20 = vshll.u32 %v3720_v11, 16  ;;  %v667_v23 = vshrl.u32 %v3721_v13, 16  ;;  %v426_v25 = vld [vmem:[%s5467_s30] sm:$0x1] }
 0x164   : > { %v639_v18 = vor.u32 %v638_v6, %v635_v5  ;;  %v656_v22 = vor.u32 %v655_v10, %v652_v9  ;;  %v670_v24 = vshll.u32 %v3721_v13, 16  ;;  %v676_v26 = vshrl.u32 %v3722_v15, 16  ;;  %v3724_v36 = vld [vmem:[%s5600_s10 + $0xa0] sm:$0xfe]  ;;  %v3725_v41 = vld [vmem:[%s5600_s10 + $0xa8] sm:$0x3] }
 0x165   : > { %4403 = vmatpush3.bf16.msra.mxu0 %v4690_v37  ;;  %v684_v27 = vshrl.u32 %v3723_v16, 16  ;;  %v687_v28 = vshll.u32 %v3723_v16, 16  ;;  %v661_v29 = vrot.slane %v659_v19, 1  ;;  %v664_v30 = vrot.slane %v662_v20, 2 }
 0x166   : > { %4423 = vmatpush3.bf16.msra.mxu1 %v4682_v7  ;;  %4404 = vmatprep.subr.bf16.mxu0 %v5120_v0  ;;  %v644_v7 = vrot.slane %v642_v58, 1  ;;  %v669_v34 = vrot.slane %v667_v23, 1  ;;  %v672_v35 = vrot.slane %v670_v24, 2  ;;  %v678_v37 = vrot.slane %v676_v26, 1 }
 0x167   : > { %4424 = vmatprep.subr.bf16.mxu1 %v4683_v21  ;;  %v686_v39 = vrot.slane %v684_v27, 1  ;;  %v689_v40 = vrot.slane %v687_v28, 2  ;;  %v665_v42 = vor.u32 %v664_v30, %v661_v29  ;;  %v696_v45 = vshll.u32 %v3724_v36, 16 }
 0x168   : > { %v673_v44 = vor.u32 %v672_v35, %v669_v34  ;;  %v701_v46 = vshrl.u32 %v3725_v41, 16 }
 0x169   : > { %4405 = vmatpush3.bf16.msra.mxu0 %v4691_v47  ;;  %v704_v47 = vshll.u32 %v3725_v41, 16  ;;  %v690_v49 = vor.u32 %v689_v40, %v686_v39  ;;  %v698_v52 = vrot.slane %v696_v45, 2 }
 0x16a   : > { %4425 = vmatpush3.bf16.msra.mxu1 %v4683_v21  ;;  %4406 = vmatprep.subr.bf16.mxu0 %v5120_v0  ;;  %v648_v21 = vor.u32 %v647_v8, %v644_v7  ;;  %v5650_v51 = vsel %vm572_vm1, %v665_v42, %v673_v44  ;;  %v703_v53 = vrot.slane %v701_v46, 1 }
 0x16b   : > { %4426 = vmatprep.subr.bf16.mxu1 %v4685_v32  ;;  %v706_v54 = vrot.slane %v704_v47, 2 }
 0x16c   : > { %v5643_v33 = vsel %vm572_vm1, %v648_v21, %v656_v22 }
 0x16d   : > { %4407 = vmatpush3.bf16.msra.mxu0 %v4692_v1  ;;  %v707_v57 = vor.u32 %v706_v54, %v703_v53 }
 0x16e   : > { %4427 = vmatpush3.bf16.msra.mxu1 %v4685_v32  ;;  %4408 = vmatprep.subr.bf16.mxu0 %v5120_v0  ;;  %v679_v0 = vshll.u32 %v3722_v15, 16  ;;  %v5640_v32 = vsel %vm572_vm1, %v631_v17, %v639_v18 }
 0x16f   : > { %4428 = vmatprep.subr.bf16.mxu1 %v4687_v43 }
 0x170   : > { %v681_v38 = vrot.slane %v679_v0, 2 }
 0x171   : > { %4409 = vmatpush3.bf16.msra.mxu0 %v4693_v14 }
 0x172   : > { %4429 = vmatpush3.bf16.msra.mxu1 %v4687_v43  ;;  %v693_v43 = vshrl.u32 %v3724_v36, 16  ;;  %v682_v48 = vor.u32 %v681_v38, %v678_v37 }
 0x174   : > { %4411 = vmatmul.mubr.bf16.vlgmr.msra.gmra.mrb[0].mxu0 %v426_v25  ;;  %v695_v50 = vrot.slane %v693_v43, 1  ;;  %v5653_v55 = vsel %vm572_vm1, %v682_v48, %v690_v49 }
 0x175   : > { %4431 = vmatmul.mubr.bf16.vlgmr.msra.gmra.mrb[0].mxu1 %v5625_v2 }
 0x176   : > { %4434 = vmatprep.mubr.bf16.mxu1 %v5630_v12  ;;  %v699_v56 = vor.u32 %v698_v52, %v695_v50 }
 0x178   : > { %v5658_v58 = vsel %vm572_vm1, %v699_v56, %v707_v57 }
 0x17d   : > { %4435 = vmatmul.mubr.bf16.gmra.mrb[4].mxu1 %v5640_v32 }
 0x17e   : > { %4438 = vmatprep.mubr.bf16.mxu1 %v5643_v33 }
 0x185   : > { %4439 = vmatmul.mubr.bf16.gmra.mrb[8].mxu1 %v5650_v51 }
 0x186   : > { %4442 = vmatprep.mubr.bf16.mxu1 %v5653_v55 }
 0x18d   : > { %4443 = vmatmul.mubr.bf16.gmra.mrb[12].mxu1 %v5658_v58 }
 0x18e   : > { %4954 = shalt.err (!%p4951_p4)  }
 0x18f   : > { %s4955_s18 = scalar_lea.vmem %s936_s24, 9216  ;;  %p4960_p9 = scmp.lt.s32.totalorder %s936_s24, %s5521_s19 }
 0x190   : > { %p4956_p10 = scmp.ne.s32.totalorder %s936_s24, %s4955_s18  ;;  %s6535_s11 = scalar_lea.vmem %s5521_s19, 18432 }
 0x191   : > { %p4961_p12 = scmp.lt.s32.totalorder %s6535_s11, %s4955_s18 }
 0x193   : > { %p4962_p0 = por %p4961_p12, %p4960_p9 }
 0x195   : > { %p4963_p11 = pnand %p4962_p0, %p4956_p10 }
 0x197   : > { %4966 = shalt.err (!%p4963_p11)  }
 0x198   : > { %938 = dma.hbm_to_vmem [thread:$0]  %s5527_s21, 9216, %s936_s24, [#allocation5 + $0x1]  ;;  %v5677_v59 = vld [vmem:[#allocation15] ss:$0 sm:$0xff]  ;;  %v533_v60 = vlaneseq  ;;  %v443_v8 = vld [vmem:[#allocation12] sm:$0x1] }
 0x19a   : > { %v534_v4 = vshrl.u32 %v533_v60, 7 }
 0x19c   : > { %v535_v16 = vsub.s32 0, %v534_v4 }
 0x247   : > { %v526_v13 = vpop.f32.mrb[0].mxu0 }
 0x248   : > { %v4432_v61 = vpop.f32.mrb[0].mxu1  ;;  %v527_v15 = vadd.f32 %v526_v13, %v443_v8  ;;  %v4412_v17 = vpop.f32.mrb[1].mxu0 }
 0x249   : > { %v831_v62 = vadd.f32 %v4432_v61, %v5677_v59  ;;  %v822_v63 = vpop.f32.mrb[1].mxu1  ;;  %v529_v18 = vpop.f32.mrb[2].mxu0 }
 0x24a   : > { %v823_v1 = vadd.f32 %v5677_v59, %v822_v63  ;;  %v4433_v3 = vpop.f32.mrb[2].mxu1  ;;  %v532_v20 = vmax.f32 %v527_v15, 0.0  ;;  %v4413_v21 = vpop.f32.mrb[3].mxu0 }
 0x24b   : > { %v887_v5 = vmax.f32 %v831_v62, 0.0  ;;  %v834_v6 = vadd.f32 %v4433_v3, %v5677_v59  ;;  %v825_v7 = vpop.f32.mrb[3].mxu1 }
 0x24c   : > { %v885_v9 = vmax.f32 %v823_v1, 0.0  ;;  %v826_v10 = vadd.f32 %v5677_v59, %v825_v7  ;;  %v536_v26 = vrot.slane %v532_v20, %v535_v16 }
 0x24d   : > { %903 = vst [vmem:[%s5598_s27 + $0x48] sm:$0xff] %v887_v5  ;;  %v888_v11 = vmax.f32 %v834_v6, 0.0 }
 0x24e   : > { %901 = vst [vmem:[%s5598_s27 + $0x8] sm:$0xff] %v885_v9  ;;  %v886_v14 = vmax.f32 %v826_v10, 0.0  ;;  %537 = vst [vmem:[%s5598_s27] sm:$0xff] %v536_v26 }
 0x24f   : > { %904 = vst [vmem:[%s5598_s27 + $0x68] sm:$0xff] %v888_v11  ;;  %538 = vst [vmem:[%s5598_s27 + $0x20] sm:$0xff] %v536_v26 }
 0x250   : > { %902 = vst [vmem:[%s5598_s27 + $0x28] sm:$0xff] %v886_v14  ;;  %v4436_v19 = vpop.f32.mrb[4].mxu1  ;;  %539 = vst [vmem:[%s5598_s27 + $0x40] sm:$0xff] %v536_v26 }
 0x251   : > { %v847_v22 = vadd.f32 %v4436_v19, %v5677_v59  ;;  %v838_v23 = vpop.f32.mrb[5].mxu1  ;;  %540 = vst [vmem:[%s5598_s27 + $0x60] sm:$0xff] %v536_v26  ;;  %541 = vst [vmem:[%s5598_s27 + $0x80] sm:$0xff] %v536_v26 }
 0x252   : > { %v839_v24 = vadd.f32 %v5677_v59, %v838_v23  ;;  %v4437_v25 = vpop.f32.mrb[6].mxu1  ;;  %542 = vst [vmem:[%s5598_s27 + $0xa0] sm:$0xff] %v536_v26  ;;  %543 = vst [vmem:[%s5598_s27 + $0xc0] sm:$0xff] %v536_v26 }
 0x253   : > { %v891_v0 = vmax.f32 %v847_v22, 0.0  ;;  %v850_v27 = vadd.f32 %v4437_v25, %v5677_v59  ;;  %v841_v28 = vpop.f32.mrb[7].mxu1  ;;  %544 = vst [vmem:[%s5598_s27 + $0xe0] sm:$0xff] %v536_v26  ;;  %545 = vst [vmem:[%s5598_s27 + $0x100] sm:$0xff] %v536_v26 }
 0x254   : > { %v889_v29 = vmax.f32 %v839_v24, 0.0  ;;  %v842_v30 = vadd.f32 %v5677_v59, %v841_v28  ;;  %546 = vst [vmem:[%s5598_s27 + $0x120] sm:$0xff] %v536_v26  ;;  %547 = vst [vmem:[%s5598_s27 + $0x140] sm:$0xff] %v536_v26 }
 0x255   : > { %548 = vst [vmem:[%s5598_s27 + $0x160] sm:$0xff] %v536_v26  ;;  %549 = vst [vmem:[%s5598_s27 + $0x180] sm:$0xff] %v536_v26  ;;  %v892_v34 = vmax.f32 %v850_v27, 0.0 }
 0x256   : > { %550 = vst [vmem:[%s5598_s27 + $0x1a0] sm:$0xff] %v536_v26  ;;  %551 = vst [vmem:[%s5598_s27 + $0x1c0] sm:$0xff] %v536_v26  ;;  %v890_v35 = vmax.f32 %v842_v30, 0.0 }
 0x257   : > { %552 = vst [vmem:[%s5598_s27 + $0x1e0] sm:$0xff] %v536_v26  ;;  %907 = vst [vmem:[%s5598_s27 + $0xc8] sm:$0xff] %v891_v0 }
 0x258   : > { %905 = vst [vmem:[%s5598_s27 + $0x88] sm:$0xff] %v889_v29  ;;  %908 = vst [vmem:[%s5598_s27 + $0xe8] sm:$0xff] %v892_v34  ;;  %v4440_v36 = vpop.f32.mrb[8].mxu1 }
 0x259   : > { %906 = vst [vmem:[%s5598_s27 + $0xa8] sm:$0xff] %v890_v35  ;;  %v863_v37 = vadd.f32 %v4440_v36, %v5677_v59  ;;  %v854_v38 = vpop.f32.mrb[9].mxu1 }
 0x25a   : > { %v855_v39 = vadd.f32 %v5677_v59, %v854_v38  ;;  %v4441_v40 = vpop.f32.mrb[10].mxu1 }
 0x25b   : > { %v895_v41 = vmax.f32 %v863_v37, 0.0  ;;  %v866_v42 = vadd.f32 %v4441_v40, %v5677_v59  ;;  %v857_v43 = vpop.f32.mrb[11].mxu1 }
 0x25c   : > { %v893_v44 = vmax.f32 %v855_v39, 0.0  ;;  %v858_v45 = vadd.f32 %v5677_v59, %v857_v43 }
 0x25d   : > { %911 = vst [vmem:[%s5598_s27 + $0x148] sm:$0xff] %v895_v41  ;;  %v896_v46 = vmax.f32 %v866_v42, 0.0 }
 0x25e   : > { %909 = vst [vmem:[%s5598_s27 + $0x108] sm:$0xff] %v893_v44  ;;  %v894_v47 = vmax.f32 %v858_v45, 0.0 }
 0x25f   : > { %912 = vst [vmem:[%s5598_s27 + $0x168] sm:$0xff] %v896_v46 }
 0x260   : > { %910 = vst [vmem:[%s5598_s27 + $0x128] sm:$0xff] %v894_v47  ;;  %v4444_v48 = vpop.f32.mrb[12].mxu1 }
 0x261   : > { %v879_v49 = vadd.f32 %v4444_v48, %v5677_v59  ;;  %v870_v50 = vpop.f32.mrb[13].mxu1 }
 0x262   : > { %v871_v52 = vadd.f32 %v5677_v59, %v870_v50  ;;  %v4445_v53 = vpop.f32.mrb[14].mxu1 }
 0x263   : > { %v899_v54 = vmax.f32 %v879_v49, 0.0  ;;  %v882_v56 = vadd.f32 %v4445_v53, %v5677_v59  ;;  %v873_v57 = vpop.f32.mrb[15].mxu1 }
 0x264   : > { %v897_v60 = vmax.f32 %v871_v52, 0.0  ;;  %v874_v61 = vadd.f32 %v5677_v59, %v873_v57 }
 0x265   : > { %915 = vst [vmem:[%s5598_s27 + $0x1c8] sm:$0xff] %v899_v54  ;;  %v900_v62 = vmax.f32 %v882_v56, 0.0 }
 0x266   : > { %913 = vst [vmem:[%s5598_s27 + $0x188] sm:$0xff] %v897_v60  ;;  %v898_v63 = vmax.f32 %v874_v61, 0.0 }
 0x267   : > { %916 = vst [vmem:[%s5598_s27 + $0x1e8] sm:$0xff] %v900_v62 }
 0x268   : > { %914 = vst [vmem:[%s5598_s27 + $0x1a8] sm:$0xff] %v898_v63 }
 0x269   : > { %5058 = dma.done.wait [#allocation5], 9216 }
 0x26a   : > { %5059 = vsyncadd [#allocation5], 4294958080  ;;  %v1752_v1 = vld [vmem:[#allocation3 + $0x40] sm:$0xff]  ;;  %v1753_v6 = vld [vmem:[#allocation3 + $0x48] sm:$0xff]  ;;  %vm970_vm2 = vsmask.f32 7424 }
 0x26b   : > { %v1744_v3 = vld [vmem:[#allocation3] sm:$0xff]  ;;  %3850 = vmatprep.subr.bf16.mxu0 %v1752_v1  ;;  %v1769_v7 = vld [vmem:[#allocation3 + $0xc8] sm:$0xff]  ;;  %v1754_v9 = vld [vmem:[#allocation3 + $0x50] sm:$0xff]  ;;  %vm1431_vm3 = vsmask.f32 5376 }
 0x26c   : > { %v1768_v4 = vld [vmem:[#allocation3 + $0xc0] sm:$0xff]  ;;  %3851 = vmatpush3.bf16.msra.mxu0 %v1744_v3  ;;  %v1745_v59 = vld [vmem:[#allocation3 + $0x8] sm:$0xff]  ;;  %v1770_v10 = vld [vmem:[#allocation3 + $0xd0] sm:$0xff] }
 0x26d   : > { %3914 = vmatprep.subr.bf16.mxu1 %v1768_v4  ;;  %v1760_v5 = vld [vmem:[#allocation3 + $0x80] sm:$0xff]  ;;  %3852 = vmatprep.subr.bf16.mxu0 %v1753_v6  ;;  %v1761_v8 = vld [vmem:[#allocation3 + $0x88] sm:$0xff]  ;;  %v1746_v11 = vld [vmem:[#allocation3 + $0x10] sm:$0xff] }
 0x26e   : > { %3915 = vmatpush3.bf16.msra.mxu1 %v1760_v5  ;;  %v1762_v13 = vld [vmem:[#allocation3 + $0x90] sm:$0xff]  ;;  %v1755_v14 = vld [vmem:[#allocation3 + $0x58] sm:$0xff]  ;;  %v1756_v20 = vld [vmem:[#allocation3 + $0x60] sm:$0xff] }
 0x26f   : > { %3916 = vmatprep.subr.bf16.mxu1 %v1769_v7  ;;  %v1771_v15 = vld [vmem:[#allocation3 + $0xd8] sm:$0xff]  ;;  %v3760_v18 = vld [vmem:[%s5600_s10 + $0x10] sm:$0xfe]  ;;  %v1772_v26 = vld [vmem:[#allocation3 + $0xe0] sm:$0xff] }
 0x270   : > { %3853 = vmatpush3.bf16.msra.mxu0 %v1745_v59  ;;  %v1747_v16 = vld [vmem:[#allocation3 + $0x18] sm:$0xff]  ;;  %v1176_v21 = vshrl.u32 %v3760_v18, 16  ;;  %v1179_v22 = vshll.u32 %v3760_v18, 16  ;;  %v3736_v25 = vld [vmem:[%s5600_s10 + $0x10] sm:$0xff]  ;;  %v1748_v30 = vld [vmem:[#allocation3 + $0x20] sm:$0xff] }
 0x271   : > { %3854 = vmatprep.subr.bf16.mxu0 %v1754_v9  ;;  %v1763_v17 = vld [vmem:[#allocation3 + $0x98] sm:$0xff]  ;;  %v972_v27 = vshrl.u32 %v3736_v25, 16  ;;  %v974_v28 = vshll.u32 %v3736_v25, 16  ;;  %v3740_v29 = vld [vmem:[%s5600_s10 + $0x30] sm:$0xff]  ;;  %v1764_v39 = vld [vmem:[#allocation3 + $0xa0] sm:$0xff] }
 0x272   : > { %3917 = vmatpush3.bf16.msra.mxu1 %v1761_v8  ;;  %v3761_v19 = vld [vmem:[%s5600_s10 + $0x18] sm:$0x3]  ;;  %v1178_v34 = vrot.slane %v1176_v21, 1  ;;  %v1181_v35 = vrot.slane %v1179_v22, 2  ;;  %v1757_v40 = vld [vmem:[#allocation3 + $0x68] sm:$0xff]  ;;  %v996_v43 = vshrl.u32 %v3740_v29, 16 }
 0x273   : > { %3918 = vmatprep.subr.bf16.mxu1 %v1770_v10  ;;  %v1184_v23 = vshrl.u32 %v3761_v19, 16  ;;  %v1187_v24 = vshll.u32 %v3761_v19, 16  ;;  %v3737_v0 = vld [vmem:[%s5600_s10 + $0x18] sm:$0x1]  ;;  %v976_v41 = vrot.slane %v974_v28, 1  ;;  %v998_v44 = vshll.u32 %v3740_v29, 16 }
 0x274   : > { %3855 = vmatpush3.bf16.msra.mxu0 %v1746_v11  ;;  %v3741_v38 = vld [vmem:[%s5600_s10 + $0x38] sm:$0x1]  ;;  %v979_v42 = vshll.u32 %v3737_v0, 16  ;;  %v1182_v45 = vor.u32 %v1181_v35, %v1178_v34  ;;  %v3784_v48 = vld [vmem:[%s5600_s10 + $0x10] sm:$0xfc]  ;;  %v5736_v50 = vld [vmem:[%s5600_s10 + $0x20] sm:$0xff] }
 0x275   : > { %3856 = vmatprep.subr.bf16.mxu0 %v1755_v14  ;;  %v1186_v36 = vrot.slane %v1184_v23, 1  ;;  %v1189_v37 = vrot.slane %v1187_v24, 2  ;;  %v1003_v47 = vshll.u32 %v3741_v38, 16  ;;  %v3785_v49 = vld [vmem:[%s5600_s10 + $0x18] sm:$0x7]  ;;  %v1773_v52 = vld [vmem:[#allocation3 + $0xe8] sm:$0xff]  ;;  %v977_v53 = vor.u32 %v976_v41, %v972_v27 }
 0x276   : > { %3919 = vmatpush3.bf16.msra.mxu1 %v1762_v13  ;;  %v1000_v54 = vrot.slane %v998_v44, 1  ;;  %v1433_v56 = vshrl.u32 %v3784_v48, 16  ;;  %v3762_v57 = vld [vmem:[%s5600_s10 + $0x20] sm:$0xfe]  ;;  %v984_v60 = vshrl.u32 %v5736_v50, 16  ;;  %v1436_v63 = vshll.u32 %v3784_v48, 16 }
 0x277   : > { %3920 = vmatprep.subr.bf16.mxu1 %v1771_v15  ;;  %v1190_v46 = vor.u32 %v1189_v37, %v1186_v36  ;;  %v1005_v62 = vrot.slane %v1003_v47, 1  ;;  %v1441_v1 = vshrl.u32 %v3785_v49, 16  ;;  %v3763_v3 = vld [vmem:[%s5600_s10 + $0x28] sm:$0x3]  ;;  %v981_v6 = vrot.slane %v979_v42, 1  ;;  %v1758_v15 = vld [vmem:[#allocation3 + $0x70] sm:$0xff] }
 0x278   : > { %3857 = vmatpush3.bf16.msra.mxu0 %v1747_v16  ;;  %v1749_v4 = vld [vmem:[#allocation3 + $0x28] sm:$0xff]  ;;  %v1001_v7 = vor.u32 %v1000_v54, %v996_v43  ;;  %v1435_v59 = vrot.slane %v1433_v56, 2  ;;  %v1444_v8 = vshll.u32 %v3785_v49, 16  ;;  %v1438_v9 = vrot.slane %v1436_v63, 3  ;;  %v1774_v16 = vld [vmem:[#allocation3 + $0xf0] sm:$0xff]  ;;  %v3742_v21 = vld [vmem:[%s5600_s10 + $0x40] sm:$0xff] }
 0x279   : > { %3858 = vmatprep.subr.bf16.mxu0 %v1756_v20  ;;  %v1191_v61 = vsel %vm572_vm1, %v1182_v45, %v1190_v46  ;;  %v1765_v5 = vld [vmem:[#allocation3 + $0xa8] sm:$0xff]  ;;  %v1443_v10 = vrot.slane %v1441_v1, 2  ;;  %v1193_v11 = vshrl.u32 %v3762_v57, 16  ;;  %v1196_v13 = vshll.u32 %v3762_v57, 16  ;;  %v1750_v0 = vld [vmem:[#allocation3 + $0x30] sm:$0xff]  ;;  %v1775_v41 = vld [vmem:[#allocation3 + $0xf8] sm:$0xff] }
 0x27a   : > { %3921 = vmatpush3.bf16.msra.mxu1 %v1763_v17  ;;  %v3739_v14 = vld [vmem:[%s5600_s10 + $0x28] sm:$0x1]  ;;  %1853 = vmatprep.mubr.bf16.mxu0 %v1191_v61  ;;  %v5744_v17 = vsel %vm970_vm2, %v1001_v7, %v1005_v62  ;;  %v1446_v18 = vrot.slane %v1444_v8, 3  ;;  %v1201_v19 = vshrl.u32 %v3763_v3, 16  ;;  %v1204_v20 = vshll.u32 %v3763_v3, 16  ;;  %v1766_v35 = vld [vmem:[#allocation3 + $0xb0] sm:$0xff] }
 0x27b   : > { %3922 = vmatprep.subr.bf16.mxu1 %v1772_v26  ;;  %1950 = vmatprep.mubr.bf16.mxu1 %v5744_v17  ;;  %v1439_v22 = vor.u32 %v1438_v9, %v1435_v59  ;;  %v1195_v23 = vrot.slane %v1193_v11, 1  ;;  %v1198_v24 = vrot.slane %v1196_v13, 2  ;;  %v986_v25 = vshll.u32 %v5736_v50, 16  ;;  %v3743_v26 = vld [vmem:[%s5600_s10 + $0x48] sm:$0x1]  ;;  %v1751_v46 = vld [vmem:[#allocation3 + $0x38] sm:$0xff] }
 0x27c   : > { %3859 = vmatpush3.bf16.msra.mxu0 %v1748_v30  ;;  %v1447_v27 = vor.u32 %v1446_v18, %v1443_v10  ;;  %v1203_v28 = vrot.slane %v1201_v19, 1  ;;  %v1206_v29 = vrot.slane %v1204_v20, 2  ;;  %v991_v30 = vshll.u32 %v3739_v14, 16  ;;  %v3786_v34 = vld [vmem:[%s5600_s10 + $0x20] sm:$0xfc]  ;;  %v1767_v56 = vld [vmem:[#allocation3 + $0xb8] sm:$0xff] }
 0x27d   : > { %3860 = vmatprep.subr.bf16.mxu0 %v1757_v40  ;;  %v988_v36 = vrot.slane %v986_v25, 1  ;;  %v1008_v37 = vshrl.u32 %v3742_v21, 16  ;;  %v1010_v38 = vshll.u32 %v3742_v21, 16  ;;  %v1759_v40 = vld [vmem:[#allocation3 + $0x78] sm:$0xff]  ;;  %v982_v42 = vsel %vm970_vm2, %v977_v53, %v981_v6  ;;  %v3764_v54 = vld [vmem:[%s5600_s10 + $0x30] sm:$0xfe] }
 0x27e   : > { %3923 = vmatpush3.bf16.msra.mxu1 %v1764_v39  ;;  %v3787_v39 = vld [vmem:[%s5600_s10 + $0x28] sm:$0x7]  ;;  %v1448_v43 = vsel %vm1431_vm3, %v1439_v22, %v1447_v27  ;;  %v1199_v44 = vor.u32 %v1198_v24, %v1195_v23  ;;  %v1015_v45 = vshll.u32 %v3743_v26, 16  ;;  %v1207_v47 = vor.u32 %v1206_v29, %v1203_v28  ;;  %v3765_v63 = vld [vmem:[%s5600_s10 + $0x38] sm:$0x3]  ;;  %v1784_v1 = vld [vmem:[#allocation3 + $0x140] sm:$0xff] }
 0x27f   : > { %3924 = vmatprep.subr.bf16.mxu1 %v1773_v52  ;;  %v1012_v48 = vrot.slane %v1010_v38, 1  ;;  %v1450_v49 = vshrl.u32 %v3786_v34, 16  ;;  %v1453_v52 = vshll.u32 %v3786_v34, 16  ;;  %v989_v57 = vor.u32 %v988_v36, %v984_v60  ;;  %v3745_v7 = vld [vmem:[%s5600_s10 + $0x58] sm:$0x1]  ;;  %v3744_v60 = vld [vmem:[%s5600_s10 + $0x50] sm:$0xff] }
 0x280   : > { %3861 = vmatpush3.bf16.msra.mxu0 %v1749_v4  ;;  %v993_v61 = vrot.slane %v991_v30, 1  ;;  %v1458_v53 = vshrl.u32 %v3787_v39, 16  ;;  %v1461_v62 = vshll.u32 %v3787_v39, 16  ;;  %v1017_v4 = vrot.slane %v1015_v45, 1  ;;  %v1800_v10 = vld [vmem:[#allocation3 + $0x1c0] sm:$0xff]  ;;  %v1785_v29 = vld [vmem:[#allocation3 + $0x148] sm:$0xff] }
 0x281   : > { %3862 = vmatprep.subr.bf16.mxu0 %v1758_v15  ;;  %v1013_v3 = vor.u32 %v1012_v48, %v1008_v37  ;;  %v1455_v6 = vrot.slane %v1453_v52, 3  ;;  %v1210_v9 = vshrl.u32 %v3764_v54, 16  ;;  %v1213_v50 = vshll.u32 %v3764_v54, 16  ;;  %v1776_v18 = vld [vmem:[#allocation3 + $0x100] sm:$0xff]  ;;  %v3789_v23 = vld [vmem:[%s5600_s10 + $0x38] sm:$0x7] }
 0x282   : > { %3925 = vmatpush3.bf16.msra.mxu1 %v1765_v5  ;;  %v1452_v5 = vrot.slane %v1450_v49, 2  ;;  %v1460_v59 = vrot.slane %v1458_v53, 2  ;;  %v1463_v8 = vrot.slane %v1461_v62, 3  ;;  %v1208_v11 = vsel %vm572_vm1, %v1199_v44, %v1207_v47  ;;  %v3766_v27 = vld [vmem:[%s5600_s10 + $0x40] sm:$0xfe]  ;;  %v1777_v44 = vld [vmem:[#allocation3 + $0x108] sm:$0xff] }
 0x283   : > { %3926 = vmatprep.subr.bf16.mxu1 %v1774_v16  ;;  %v1218_v14 = vshrl.u32 %v3765_v63, 16  ;;  %v1221_v15 = vshll.u32 %v3765_v63, 16  ;;  %v3788_v16 = vld [vmem:[%s5600_s10 + $0x30] sm:$0xfc]  ;;  %v1212_v20 = vrot.slane %v1210_v9, 1  ;;  %v1215_v21 = vrot.slane %v1213_v50, 2 }
 0x284   : > { %3863 = vmatpush3.bf16.msra.mxu0 %v1750_v0  ;;  %v1456_v13 = vor.u32 %v1455_v6, %v1452_v5  ;;  %v1464_v19 = vor.u32 %v1463_v8, %v1460_v59  ;;  %v1020_v22 = vshrl.u32 %v3744_v60, 16  ;;  %v1022_v26 = vshll.u32 %v3744_v60, 16  ;;  %v1786_v49 = vld [vmem:[#allocation3 + $0x150] sm:$0xff]  ;;  %v3791_v59 = vld [vmem:[%s5600_s10 + $0x48] sm:$0x7] }
 0x285   : > { %3864 = vmatprep.subr.bf16.mxu0 %v1759_v40  ;;  %v1220_v24 = vrot.slane %v1218_v14, 1  ;;  %v1223_v25 = vrot.slane %v1221_v15, 2  ;;  %v1027_v0 = vshll.u32 %v3745_v7, 16  ;;  %v994_v28 = vsel %vm970_vm2, %v989_v57, %v993_v61  ;;  %v3767_v40 = vld [vmem:[%s5600_s10 + $0x48] sm:$0x3]  ;;  %v3746_v57 = vld [vmem:[%s5600_s10 + $0x60] sm:$0xff] }
 0x286   : > { %3927 = vmatpush3.bf16.msra.mxu1 %v1766_v35  ;;  %v5766_v30 = vsel %vm970_vm2, %v1013_v3, %v1017_v4  ;;  %v1467_v34 = vshrl.u32 %v3788_v16, 16  ;;  %v1470_v35 = vshll.u32 %v3788_v16, 16  ;;  %v1216_v36 = vor.u32 %v1215_v21, %v1212_v20  ;;  %v3747_v61 = vld [vmem:[%s5600_s10 + $0x68] sm:$0x1]  ;;  %v3790_v3 = vld [vmem:[%s5600_s10 + $0x40] sm:$0xfc] }
 0x287   : > { %3928 = vmatprep.subr.bf16.mxu1 %v1775_v41  ;;  %v1224_v37 = vor.u32 %v1223_v25, %v1220_v24  ;;  %v1024_v38 = vrot.slane %v1022_v26, 1  ;;  %v1475_v39 = vshrl.u32 %v3789_v23, 16  ;;  %v1792_v41 = vld [vmem:[#allocation3 + $0x180] sm:$0xff]  ;;  %v1478_v47 = vshll.u32 %v3789_v23, 16  ;;  %v1793_v8 = vld [vmem:[#allocation3 + $0x188] sm:$0xff]  ;;  %v1802_v24 = vld [vmem:[#allocation3 + $0x1d0] sm:$0xff] }
 0x288   : > { %3865 = vmatpush3.bf16.msra.mxu0 %v1751_v46  ;;  %v5769_v45 = vrot.slane %v1467_v34, 2  ;;  %v5771_v46 = vrot.slane %v1470_v35, 3  ;;  %v1227_v48 = vshrl.u32 %v3766_v27, 16  ;;  %v1029_v54 = vrot.slane %v1027_v0, 1  ;;  %v3768_v16 = vld [vmem:[%s5600_s10 + $0x50] sm:$0xfe] }
 0x289   : > { %3978 = vmatprep.subr.bf16.mxu0 %v1784_v1  ;;  %v1025_v52 = vor.u32 %v1024_v38, %v1020_v22  ;;  %v1477_v53 = vrot.slane %v1475_v39, 2  ;;  %v1480_v62 = vrot.slane %v1478_v47, 3  ;;  %v1235_v1 = vshrl.u32 %v3767_v40, 16  ;;  %v3769_v23 = vld [vmem:[%s5600_s10 + $0x58] sm:$0x3]  ;;  %v1794_v34 = vld [vmem:[#allocation3 + $0x190] sm:$0xff] }
 0x28a   : > { %3929 = vmatpush3.bf16.msra.mxu1 %v1767_v56  ;;  %v1230_v56 = vshll.u32 %v3766_v27, 16  ;;  %v5777_v63 = vrot.slane %v1227_v48, 1  ;;  %v1225_v4 = vsel %vm572_vm1, %v1216_v36, %v1224_v37  ;;  %v1473_v5 = vor.u32 %v5771_v46, %v5769_v45  ;;  %v1787_v26 = vld [vmem:[#allocation3 + $0x158] sm:$0xff]  ;;  %v3748_v39 = vld [vmem:[%s5600_s10 + $0x70] sm:$0xff] }
 0x28b   : > { %4042 = vmatprep.subr.bf16.mxu1 %v1800_v10  ;;  %1854 = vmatmul.mubr.bf16.vlgmr.msra.gmra.mrb[4].mxu0 %v982_v42  ;;  %v1801_v42 = vld [vmem:[#allocation3 + $0x1c8] sm:$0xff]  ;;  %v1238_v7 = vshll.u32 %v3767_v40, 16  ;;  %v1237_v9 = vrot.slane %v1235_v1, 1  ;;  %v1032_v50 = vshrl.u32 %v3746_v57, 16  ;;  %v1034_v60 = vshll.u32 %v3746_v57, 16  ;;  %v1803_v40 = vld [vmem:[#allocation3 + $0x1d8] sm:$0xff] }
 0x28c   : > { %3979 = vmatpush3.bf16.msra.mxu0 %v1776_v18  ;;  %1861 = vmatprep.mubr.bf16.mxu0 %v1208_v11  ;;  %v1232_v6 = vrot.slane %v1230_v56, 2  ;;  %v1039_v10 = vshll.u32 %v3747_v61, 16  ;;  %v5785_v11 = vsel %vm970_vm2, %v1025_v52, %v1029_v54  ;;  %v1484_v14 = vshrl.u32 %v3790_v3, 16  ;;  %v1778_v18 = vld [vmem:[#allocation3 + $0x110] sm:$0xff]  ;;  %v3749_v46 = vld [vmem:[%s5600_s10 + $0x78] sm:$0x1] }
 0x28d   : > { %1951 = vmatmul.mubr.bf16.vlgmr.msra.gmra.mrb[16].mxu1 %v1448_v43  ;;  %3980 = vmatprep.subr.bf16.mxu0 %v1785_v29  ;;  %v1465_v43 = vsel %vm1431_vm3, %v1456_v13, %v1464_v19  ;;  %v1240_v13 = vrot.slane %v1238_v7, 2  ;;  %v1487_v15 = vshll.u32 %v3790_v3, 16  ;;  %v1481_v19 = vor.u32 %v1480_v62, %v1477_v53  ;;  %v3792_v52 = vld [vmem:[%s5600_s10 + $0x50] sm:$0xfc]  ;;  %v3793_v53 = vld [vmem:[%s5600_s10 + $0x58] sm:$0x7] }
 0x28e   : > { %1958 = vmatprep.mubr.bf16.mxu1 %v5766_v30  ;;  %4043 = vmatpush3.bf16.msra.mxu1 %v1792_v41  ;;  %v1233_v20 = vor.u32 %v1232_v6, %v5777_v63  ;;  %v1036_v21 = vrot.slane %v1034_v60, 1  ;;  %v1492_v22 = vshrl.u32 %v3791_v59, 16  ;;  %v1041_v0 = vrot.slane %v1039_v10, 1  ;;  %v1795_v62 = vld [vmem:[#allocation3 + $0x198] sm:$0xff]  ;;  %v1780_v60 = vld [vmem:[#allocation3 + $0x120] sm:$0xff] }
 0x28f   : > { %4044 = vmatprep.subr.bf16.mxu1 %v1801_v42  ;;  %v1241_v25 = vor.u32 %v1240_v13, %v1237_v9  ;;  %v5790_v27 = vrot.slane %v1484_v14, 2  ;;  %v1495_v29 = vshll.u32 %v3791_v59, 16  ;;  %v1489_v36 = vrot.slane %v1487_v15, 3  ;;  %v3771_v9 = vld [vmem:[%s5600_s10 + $0x68] sm:$0x3]  ;;  %v1804_v15 = vld [vmem:[#allocation3 + $0x1e0] sm:$0xff] }
 0x290   : > { %3981 = vmatpush3.bf16.msra.mxu0 %v1777_v44  ;;  %v1037_v35 = vor.u32 %v1036_v21, %v1032_v50  ;;  %v1244_v37 = vshrl.u32 %v3768_v16, 16  ;;  %v1247_v38 = vshll.u32 %v3768_v16, 16  ;;  %v1494_v41 = vrot.slane %v1492_v22, 2  ;;  %v1796_v21 = vld [vmem:[#allocation3 + $0x1a0] sm:$0xff] }
 0x291   : > { %3982 = vmatprep.subr.bf16.mxu0 %v1786_v49  ;;  %v1497_v44 = vrot.slane %v1495_v29, 3  ;;  %v1252_v45 = vshrl.u32 %v3769_v23, 16  ;;  %v5796_v47 = vsel %vm1431_vm3, %v1473_v5, %v1481_v19  ;;  %v1788_v49 = vld [vmem:[#allocation3 + $0x160] sm:$0xff]  ;;  %v1242_v54 = vsel %vm572_vm1, %v1233_v20, %v1241_v25  ;;  %v1789_v20 = vld [vmem:[#allocation3 + $0x168] sm:$0xff] }
 0x292   : > { %4045 = vmatpush3.bf16.msra.mxu1 %v1793_v8  ;;  %v1246_v48 = vrot.slane %v1244_v37, 1  ;;  %v1249_v42 = vrot.slane %v1247_v38, 2  ;;  %v1044_v57 = vshrl.u32 %v3748_v39, 16  ;;  %v1046_v61 = vshll.u32 %v3748_v39, 16  ;;  %v3770_v5 = vld [vmem:[%s5600_s10 + $0x60] sm:$0xfe] }
 0x293   : > { %1862 = vmatmul.mubr.bf16.gmra.mrb[8].mxu0 %v994_v28  ;;  %v1779_v28 = vld [vmem:[#allocation3 + $0x118] sm:$0xff]  ;;  %4046 = vmatprep.subr.bf16.mxu1 %v1802_v24  ;;  %v1254_v56 = vrot.slane %v1252_v45, 1  ;;  %v5802_v63 = vsel %vm970_vm2, %v1037_v35, %v1041_v0  ;;  %v1490_v1 = vor.u32 %v1489_v36, %v5790_v27  ;;  %v1498_v6 = vor.u32 %v1497_v44, %v1494_v41  ;;  %v3750_v24 = vld [vmem:[%s5600_s10 + $0x80] sm:$0xff]  ;;  %v3751_v25 = vld [vmem:[%s5600_s10 + $0x88] sm:$0x1] }
 0x294   : > { %1869 = vmatprep.mubr.bf16.mxu0 %v1225_v4  ;;  %3983 = vmatpush3.bf16.msra.mxu0 %v1778_v18  ;;  %v1051_v4 = vshll.u32 %v3749_v46, 16  ;;  %v1250_v7 = vor.u32 %v1249_v42, %v1246_v48  ;;  %v1048_v59 = vrot.slane %v1046_v61, 1  ;;  %v1501_v8 = vshrl.u32 %v3792_v52, 16  ;;  %v3794_v29 = vld [vmem:[%s5600_s10 + $0x60] sm:$0xfc]  ;;  %v1781_v39 = vld [vmem:[#allocation3 + $0x128] sm:$0xff] }
 0x295   : > { %1959 = vmatmul.mubr.bf16.gmra.mrb[20].mxu1 %v1465_v43  ;;  %3984 = vmatprep.subr.bf16.mxu0 %v1787_v26  ;;  %v1255_v43 = vshll.u32 %v3769_v23, 16  ;;  %v1504_v10 = vshll.u32 %v3792_v52, 16  ;;  %v1509_v13 = vshrl.u32 %v3793_v53, 16  ;;  %v1512_v14 = vshll.u32 %v3793_v53, 16  ;;  %v1805_v26 = vld [vmem:[#allocation3 + $0x1e8] sm:$0xff]  ;;  %v1790_v46 = vld [vmem:[#allocation3 + $0x170] sm:$0xff] }
 0x296   : > { %1966 = vmatprep.mubr.bf16.mxu1 %v5785_v11  ;;  %4047 = vmatpush3.bf16.msra.mxu1 %v1794_v34  ;;  %v1049_v16 = vor.u32 %v1048_v59, %v1044_v57  ;;  %v1053_v18 = vrot.slane %v1051_v4, 1  ;;  %v1261_v19 = vshrl.u32 %v3770_v5, 16  ;;  %v1264_v22 = vshll.u32 %v3770_v5, 16  ;;  %v3795_v34 = vld [vmem:[%s5600_s10 + $0x68] sm:$0x7]  ;;  %v1806_v4 = vld [vmem:[#allocation3 + $0x1f0] sm:$0xff] }
 0x297   : > { %4048 = vmatprep.subr.bf16.mxu1 %v1803_v40  ;;  %v1257_v3 = vrot.slane %v1255_v43, 2  ;;  %v1269_v23 = vshrl.u32 %v3771_v9, 16  ;;  %v5815_v0 = vrot.slane %v1501_v8, 2  ;;  %v1272_v27 = vshll.u32 %v3771_v9, 16  ;;  %v3772_v40 = vld [vmem:[%s5600_s10 + $0x70] sm:$0xfe] }
 0x298   : > { %3985 = vmatpush3.bf16.msra.mxu0 %v1779_v28  ;;  %v5822_v36 = vrot.slane %v1504_v10, 3  ;;  %v5824_v37 = vrot.slane %v1509_v13, 2  ;;  %v5826_v38 = vrot.slane %v1512_v14, 3  ;;  %v5830_v28 = vsel %vm970_vm2, %v1049_v16, %v1053_v18  ;;  %v1797_v48 = vld [vmem:[#allocation3 + $0x1a8] sm:$0xff]  ;;  %v3752_v8 = vld [vmem:[%s5600_s10 + $0x90] sm:$0xff]  ;;  %v1791_v9 = vld [vmem:[#allocation3 + $0x178] sm:$0xff] }
 0x299   : > { %v1258_v50 = vor.u32 %v1257_v3, %v1254_v56  ;;  %3986 = vmatprep.subr.bf16.mxu0 %v1788_v49  ;;  %v5832_v41 = vrot.slane %v1261_v19, 1  ;;  %v5834_v44 = vrot.slane %v1264_v22, 2  ;;  %v1058_v45 = vshll.u32 %v3750_v24, 16  ;;  %v1782_v3 = vld [vmem:[#allocation3 + $0x130] sm:$0xff]  ;;  %v1807_v14 = vld [vmem:[#allocation3 + $0x1f8] sm:$0xff] }
 0x29a   : > { %4049 = vmatpush3.bf16.msra.mxu1 %v1795_v62  ;;  %v1271_v42 = vrot.slane %v1269_v23, 1  ;;  %v1274_v43 = vrot.slane %v1272_v27, 2  ;;  %v1056_v49 = vshrl.u32 %v3750_v24, 16  ;;  %v1063_v52 = vshll.u32 %v3751_v25, 16  ;;  %v1783_v25 = vld [vmem:[#allocation3 + $0x138] sm:$0xff] }
 0x29b   : > { %1870 = vmatmul.mubr.bf16.gmra.mrb[12].mxu0 %v5744_v17  ;;  %v5813_v17 = vsel %vm1431_vm3, %v1490_v1, %v1498_v6  ;;  %4050 = vmatprep.subr.bf16.mxu1 %v1804_v15  ;;  %v5820_v35 = vsel %vm572_vm1, %v1250_v7, %v1258_v50  ;;  %v1060_v56 = vrot.slane %v1058_v45, 1  ;;  %v1518_v57 = vshrl.u32 %v3794_v29, 16  ;;  %v1798_v50 = vld [vmem:[#allocation3 + $0x1b0] sm:$0xff]  ;;  %v3774_v45 = vld [vmem:[%s5600_s10 + $0x80] sm:$0xfe] }
 0x29c   : > { %1877 = vmatprep.mubr.bf16.mxu0 %v1242_v54  ;;  %3987 = vmatpush3.bf16.msra.mxu0 %v1780_v60  ;;  %v3773_v54 = vld [vmem:[%s5600_s10 + $0x78] sm:$0x3]  ;;  %v1521_v61 = vshll.u32 %v3794_v29, 16  ;;  %v1526_v53 = vshrl.u32 %v3795_v34, 16  ;;  %v1529_v62 = vshll.u32 %v3795_v34, 16  ;;  %v1278_v1 = vshrl.u32 %v3772_v40, 16 }
 0x29d   : > { %1967 = vmatmul.mubr.bf16.gmra.mrb[24].mxu1 %v5796_v47  ;;  %3988 = vmatprep.subr.bf16.mxu0 %v1789_v20  ;;  %v1507_v5 = vor.u32 %v5822_v36, %v5815_v0  ;;  %v1515_v6 = vor.u32 %v5826_v38, %v5824_v37  ;;  %v1281_v7 = vshll.u32 %v3772_v40, 16  ;;  %v1286_v59 = vshrl.u32 %v3773_v54, 16  ;;  %v3753_v20 = vld [vmem:[%s5600_s10 + $0x98] sm:$0x1]  ;;  %v3796_v27 = vld [vmem:[%s5600_s10 + $0x70] sm:$0xfc] }
 0x29e   : > { %1974 = vmatprep.mubr.bf16.mxu1 %v5802_v63  ;;  %4051 = vmatpush3.bf16.msra.mxu1 %v1796_v21  ;;  %v1275_v60 = vor.u32 %v1274_v43, %v1271_v42  ;;  %v1065_v10 = vrot.slane %v1063_v52, 1  ;;  %v1289_v13 = vshll.u32 %v3773_v54, 16  ;;  %v1061_v15 = vor.u32 %v1060_v56, %v1056_v49  ;;  %v1799_v29 = vld [vmem:[#allocation3 + $0x1b8] sm:$0xff]  ;;  %v5850_v34 = vld [vmem:[#allocation3 + $0x200] sm:$0xff]  ;;  %v3775_v49 = vld [vmem:[%s5600_s10 + $0x88] sm:$0x3] }
 0x29f   : > { %4052 = vmatprep.subr.bf16.mxu1 %v1805_v26  ;;  %v1520_v16 = vrot.slane %v1518_v57, 2  ;;  %v1523_v18 = vrot.slane %v1521_v61, 3  ;;  %v1528_v19 = vrot.slane %v1526_v53, 2  ;;  %v1531_v21 = vrot.slane %v1529_v62, 3  ;;  %v3797_v40 = vld [vmem:[%s5600_s10 + $0x78] sm:$0x7] }
 0x2a0   : > { %3989 = vmatpush3.bf16.msra.mxu0 %v1781_v39  ;;  %v1280_v22 = vrot.slane %v1278_v1, 1  ;;  %v1283_v23 = vrot.slane %v1281_v7, 2  ;;  %v1086_v24 = vshll.u32 %v3752_v8, 16  ;;  %v1288_v26 = vrot.slane %v1286_v59, 1  ;;  %v3754_v52 = vld [vmem:[%s5600_s10 + $0xa0] sm:$0xff] }
 0x2a1   : > { %3990 = vmatprep.subr.bf16.mxu0 %v1790_v46  ;;  %v1291_v0 = vrot.slane %v1289_v13, 2  ;;  %v5853_v36 = vsel %vm1431_vm3, %v1507_v5, %v1515_v6  ;;  %v1084_v37 = vshrl.u32 %v3752_v8, 16  ;;  %v1091_v39 = vshll.u32 %v3753_v20, 16  ;;  %v3755_v8 = vld [vmem:[%s5600_s10 + $0xa8] sm:$0x1] }
 0x2a2   : > { %4053 = vmatpush3.bf16.msra.mxu1 %v1797_v48  ;;  %v1088_v38 = vrot.slane %v1086_v24, 1  ;;  %v1524_v46 = vor.u32 %v1523_v18, %v1520_v16  ;;  %v1532_v48 = vor.u32 %v1531_v21, %v1528_v19  ;;  %v1284_v42 = vor.u32 %v1283_v23, %v1280_v22  ;;  %v3798_v16 = vld [vmem:[%s5600_s10 + $0x80] sm:$0xfc]  ;;  %v3799_v22 = vld [vmem:[%s5600_s10 + $0x88] sm:$0x7] }
 0x2a3   : > { %1878 = vmatmul.mubr.bf16.gmra.mrb[16].mxu0 %v5766_v30  ;;  %v1267_v30 = vor.u32 %v5834_v44, %v5832_v41  ;;  %4054 = vmatprep.subr.bf16.mxu1 %v1806_v4  ;;  %v5860_v44 = vsel %vm970_vm2, %v1061_v15, %v1065_v10  ;;  %v1535_v43 = vshrl.u32 %v3796_v27, 16  ;;  %v1292_v54 = vor.u32 %v1291_v0, %v1288_v26 }
 0x2a4   : > { %1885 = vmatprep.mubr.bf16.mxu0 %v5820_v35  ;;  %3991 = vmatpush3.bf16.msra.mxu0 %v1782_v3  ;;  %v1538_v56 = vshll.u32 %v3796_v27, 16  ;;  %v1543_v57 = vshrl.u32 %v3797_v40, 16  ;;  %v1546_v61 = vshll.u32 %v3797_v40, 16  ;;  %v1089_v53 = vor.u32 %v1088_v38, %v1084_v37 }
 0x2a5   : > { %1975 = vmatmul.mubr.bf16.gmra.mrb[28].mxu1 %v5813_v17  ;;  %3992 = vmatprep.subr.bf16.mxu0 %v1791_v9  ;;  %v5857_v41 = vsel %vm572_vm1, %v1267_v30, %v1275_v60  ;;  %v1093_v62 = vrot.slane %v1091_v39, 1  ;;  %v1295_v1 = vshrl.u32 %v3774_v45, 16  ;;  %v1298_v3 = vshll.u32 %v3774_v45, 16 }
 0x2a6   : > { %1982 = vmatprep.mubr.bf16.mxu1 %v5830_v28  ;;  %4055 = vmatpush3.bf16.msra.mxu1 %v1798_v50  ;;  %v1303_v4 = vshrl.u32 %v3775_v49, 16  ;;  %v1306_v5 = vshll.u32 %v3775_v49, 16  ;;  %v1098_v6 = vshll.u32 %v3754_v52, 16  ;;  %v5871_v7 = vsel %vm1431_vm3, %v1524_v46, %v1532_v48 }
 0x2a7   : > { %4056 = vmatprep.subr.bf16.mxu1 %v1807_v14  ;;  %v1537_v59 = vrot.slane %v1535_v43, 2  ;;  %v1293_v9 = vsel %vm572_vm1, %v1284_v42, %v1292_v54  ;;  %v1540_v50 = vrot.slane %v1538_v56, 3  ;;  %v1545_v30 = vrot.slane %v1543_v57, 2  ;;  %v1809_v57 = vld [vmem:[#allocation3 + $0x208] sm:$0xff] }
 0x2a8   : > { %3993 = vmatpush3.bf16.msra.mxu0 %v1783_v25  ;;  %v1548_v60 = vrot.slane %v1546_v61, 3  ;;  %v5876_v10 = vsel %vm970_vm2, %v1089_v53, %v1093_v62  ;;  %v1297_v13 = vrot.slane %v1295_v1, 1  ;;  %v1300_v14 = vrot.slane %v1298_v3, 2  ;;  %v1810_v61 = vld [vmem:[#allocation3 + $0x210] sm:$0xff]  ;;  %v3777_v62 = vld [vmem:[%s5600_s10 + $0x98] sm:$0x3] }
 0x2a9   : > { %4446 = vmatprep.subr.bf16.mxu0 %v5850_v34  ;;  %v1096_v15 = vshrl.u32 %v3754_v52, 16  ;;  %v1305_v18 = vrot.slane %v1303_v4, 1  ;;  %v1308_v19 = vrot.slane %v1306_v5, 2  ;;  %v1100_v20 = vrot.slane %v1098_v6, 1  ;;  %v3776_v53 = vld [vmem:[%s5600_s10 + $0x90] sm:$0xfe] }
 0x2aa   : > { %4057 = vmatpush3.bf16.msra.mxu1 %v1799_v29  ;;  %v1103_v21 = vshll.u32 %v3755_v8, 16  ;;  %v1541_v23 = vor.u32 %v1540_v50, %v1537_v59  ;;  %v1549_v24 = vor.u32 %v1548_v60, %v1545_v30  ;;  %v1552_v25 = vshrl.u32 %v3798_v16, 16  ;;  %v3778_v6 = vld [vmem:[%s5600_s10 + $0xa0] sm:$0xfe]  ;;  %v1813_v59 = vld [vmem:[#allocation3 + $0x228] sm:$0xff] }
 0x2ab   : > { %1886 = vmatmul.mubr.bf16.gmra.mrb[20].mxu0 %v5785_v11  ;;  %v1555_v26 = vshll.u32 %v3798_v16, 16  ;;  %v1560_v0 = vshrl.u32 %v3799_v22, 16  ;;  %v1563_v27 = vshll.u32 %v3799_v22, 16  ;;  %v1301_v29 = vor.u32 %v1300_v14, %v1297_v13  ;;  %v3800_v14 = vld [vmem:[%s5600_s10 + $0x90] sm:$0xfc] }
 0x2ac   : > { %1893 = vmatprep.mubr.bf16.mxu0 %v5857_v41  ;;  %v1309_v37 = vor.u32 %v1308_v19, %v1305_v18  ;;  %v1101_v38 = vor.u32 %v1100_v20, %v1096_v15  ;;  %v1105_v39 = vrot.slane %v1103_v21, 1  ;;  %v5884_v40 = vsel %vm1431_vm3, %v1541_v23, %v1549_v24  ;;  %v1814_v15 = vld [vmem:[#allocation3 + $0x230] sm:$0xff]  ;;  %v3801_v18 = vld [vmem:[%s5600_s10 + $0x98] sm:$0x7] }
 0x2ad   : > { %1983 = vmatmul.mubr.bf16.gmra.mrb[32].mxu1 %v5853_v36  ;;  %v1554_v45 = vrot.slane %v1552_v25, 2  ;;  %v1557_v46 = vrot.slane %v1555_v26, 3  ;;  %v1562_v48 = vrot.slane %v1560_v0, 2  ;;  %v1565_v42 = vrot.slane %v1563_v27, 3  ;;  %v3780_v19 = vld [vmem:[%s5600_s10 + $0xb0] sm:$0xfe] }
 0x2ae   : > { %1990 = vmatprep.mubr.bf16.mxu1 %v5860_v44  ;;  %v1310_v43 = vsel %vm572_vm1, %v1301_v29, %v1309_v37  ;;  %v5888_v49 = vsel %vm970_vm2, %v1101_v38, %v1105_v39  ;;  %v1345_v8 = vshrl.u32 %v3778_v6, 16  ;;  %v3781_v23 = vld [vmem:[%s5600_s10 + $0xb8] sm:$0x3]  ;;  %v1585_v24 = vshrl.u32 %v3800_v14, 16 }
 0x2af   : > { %v1558_v52 = vor.u32 %v1557_v46, %v1554_v45  ;;  %v1566_v54 = vor.u32 %v1565_v42, %v1562_v48  ;;  %v1588_v25 = vshll.u32 %v3800_v14, 16  ;;  %v1593_v26 = vshrl.u32 %v3801_v18, 16  ;;  %v1815_v37 = vld [vmem:[#allocation3 + $0x238] sm:$0xff] }
 0x2b0   : > { %v1347_v16 = vrot.slane %v1345_v8, 1  ;;  %v1596_v0 = vshll.u32 %v3801_v18, 16  ;;  %v1362_v27 = vshrl.u32 %v3780_v19, 16  ;;  %v1365_v29 = vshll.u32 %v3780_v19, 16 }
 0x2b1   : > { %v5894_v56 = vsel %vm1431_vm3, %v1558_v52, %v1566_v54  ;;  %v1370_v38 = vshrl.u32 %v3781_v23, 16  ;;  %v1373_v39 = vshll.u32 %v3781_v23, 16  ;;  %v1587_v48 = vrot.slane %v1585_v24, 2 }
 0x2b2   : > { %v1595_v42 = vrot.slane %v1593_v26, 2  ;;  %v1364_v52 = vrot.slane %v1362_v27, 1  ;;  %v1367_v54 = vrot.slane %v1365_v29, 2 }
 0x2b3   : > { %1894 = vmatmul.mubr.bf16.gmra.mrb[24].mxu0 %v5802_v63 }
 0x2b4   : > { %1901 = vmatprep.mubr.bf16.mxu0 %v1293_v9 }
 0x2b5   : > { %1991 = vmatmul.mubr.bf16.gmra.mrb[36].mxu1 %v5871_v7 }
 0x2b6   : > { %1998 = vmatprep.mubr.bf16.mxu1 %v5876_v10 }
 0x2bb   : > { %1902 = vmatmul.mubr.bf16.gmra.mrb[28].mxu0 %v5830_v28 }
 0x2bc   : > { %1909 = vmatprep.mubr.bf16.mxu0 %v1310_v43 }
 0x2bd   : > { %1999 = vmatmul.mubr.bf16.gmra.mrb[40].mxu1 %v5884_v40 }
 0x2be   : > { %2006 = vmatprep.mubr.bf16.mxu1 %v5888_v49 }
 0x2c3   : > { %1910 = vmatmul.mubr.bf16.gmra.mrb[32].mxu0 %v5860_v44 }
 0x2c4   : > { %2047 = vmatprep.mubr.bf16.mxu0 %v5796_v47  ;;  %v1811_v47 = vld [vmem:[#allocation3 + $0x218] sm:$0xff] }
 0x2c5   : > { %2007 = vmatmul.mubr.bf16.gmra.mrb[44].mxu1 %v5894_v56 }
 0x2c6   : > { %2144 = vmatprep.mubr.bf16.mxu1 %v5820_v35  ;;  %v1336_v35 = vshrl.u32 %v3777_v62, 16 }
 0x2c8   : > { %v1338_v4 = vrot.slane %v1336_v35, 1  ;;  %v3782_v35 = vld [vmem:[%s5600_s10 + $0xc0] sm:$0xfe] }
 0x2cb   : > { %2048 = vmatmul.mubr.bf16.vlgmr.msra.gmra.mrb[36].mxu0 %v5615_v31 }
 0x2cc   : > { %4447 = vmatpush3.bf16.msra.mxu0 %v5850_v34  ;;  %2055 = vmatprep.mubr.bf16.mxu0 %v5813_v17  ;;  %v1331_v17 = vshll.u32 %v3776_v53, 16  ;;  %v1339_v34 = vshll.u32 %v3777_v62, 16  ;;  %v3802_v62 = vld [vmem:[%s5600_s10 + $0xa0] sm:$0xfc] }
 0x2cd   : > { %2145 = vmatmul.mubr.bf16.vlgmr.msra.gmra.mrb[48].mxu1 %v5785_v11  ;;  %4448 = vmatprep.subr.bf16.mxu0 %v1809_v57  ;;  %v1328_v11 = vshrl.u32 %v3776_v53, 16  ;;  %v3756_v53 = vld [vmem:[%s5600_s10 + $0xb0] sm:$0xff] }
 0x2ce   : > { %2152 = vmatprep.mubr.bf16.mxu1 %v5857_v41  ;;  %v1812_v41 = vld [vmem:[#allocation3 + $0x220] sm:$0xff]  ;;  %v1333_v3 = vrot.slane %v1331_v17, 2  ;;  %v1341_v5 = vrot.slane %v1339_v34, 2  ;;  %v3783_v34 = vld [vmem:[%s5600_s10 + $0xc8] sm:$0x3] }
 0x2cf   : > { %v1330_v1 = vrot.slane %v1328_v11, 1  ;;  %v3803_v11 = vld [vmem:[%s5600_s10 + $0xa8] sm:$0x7] }
 0x2d0   : > { %4449 = vmatpush3.bf16.msra.mxu0 %v1809_v57  ;;  %v1342_v30 = vor.u32 %v1341_v5, %v1338_v4  ;;  %v1372_v57 = vrot.slane %v1370_v38, 1  ;;  %v1602_v4 = vshrl.u32 %v3802_v62, 16  ;;  %v1613_v8 = vshll.u32 %v3803_v11, 16 }
 0x2d1   : > { %4450 = vmatprep.subr.bf16.mxu0 %v1810_v61  ;;  %v1334_v50 = vor.u32 %v1333_v3, %v1330_v1  ;;  %v1368_v1 = vor.u32 %v1367_v54, %v1364_v52  ;;  %v1120_v3 = vshll.u32 %v3756_v53, 16 }
 0x2d3   : > { %2056 = vmatmul.mubr.bf16.gmra.mrb[40].mxu0 %v5625_v2  ;;  %v1122_v14 = vrot.slane %v1120_v3, 1 }
 0x2d4   : > { %2063 = vmatprep.mubr.bf16.mxu0 %v5853_v36  ;;  %4451 = vmatpush3.bf16.msra.mxu0 %v1810_v61  ;;  %v1375_v61 = vrot.slane %v1373_v39, 2 }
 0x2d5   : > { %2153 = vmatmul.mubr.bf16.gmra.mrb[52].mxu1 %v5802_v63  ;;  %4452 = vmatprep.subr.bf16.mxu0 %v1811_v47  ;;  %v3779_v63 = vld [vmem:[%s5600_s10 + $0xa8] sm:$0x3] }
 0x2d6   : > { %2160 = vmatprep.mubr.bf16.mxu1 %v1293_v9  ;;  %v1348_v9 = vshll.u32 %v3778_v6, 16  ;;  %v1353_v60 = vshrl.u32 %v3779_v63, 16  ;;  %v1356_v13 = vshll.u32 %v3779_v63, 16  ;;  %v1376_v5 = vor.u32 %v1375_v61, %v1372_v57  ;;  %v3757_v6 = vld [vmem:[%s5600_s10 + $0xb8] sm:$0x1] }
 0x2d7   : > { %v1605_v63 = vshll.u32 %v3802_v62, 16  ;;  %v3804_v61 = vld [vmem:[%s5600_s10 + $0xb0] sm:$0xfc] }
 0x2d8   : > { %4453 = vmatpush3.bf16.msra.mxu0 %v1811_v47  ;;  %v1350_v20 = vrot.slane %v1348_v9, 2  ;;  %v1355_v21 = vrot.slane %v1353_v60, 1  ;;  %v1358_v22 = vrot.slane %v1356_v13, 2  ;;  %v1379_v9 = vshrl.u32 %v3782_v35, 16 }
 0x2d9   : > { %4454 = vmatprep.subr.bf16.mxu0 %v1812_v41  ;;  %v1390_v60 = vshll.u32 %v3783_v34, 16  ;;  %v1118_v13 = vshrl.u32 %v3756_v53, 16  ;;  %v1377_v18 = vsel %vm572_vm1, %v1368_v1, %v1376_v5  ;;  %v1607_v19 = vrot.slane %v1605_v63, 3  ;;  %v3805_v53 = vld [vmem:[%s5600_s10 + $0xb8] sm:$0x7] }
 0x2da   : > { %v1351_v45 = vor.u32 %v1350_v20, %v1347_v16  ;;  %v1359_v46 = vor.u32 %v1358_v22, %v1355_v21  ;;  %v1604_v16 = vrot.slane %v1602_v4, 2  ;;  %v1615_v20 = vrot.slane %v1613_v8, 3  ;;  %v3807_v4 = vld [vmem:[%s5600_s10 + $0xc8] sm:$0x7] }
 0x2db   : > { %2064 = vmatmul.mubr.bf16.gmra.mrb[44].mxu0 %v5630_v12  ;;  %v1381_v21 = vrot.slane %v1379_v9, 1  ;;  %v1392_v24 = vrot.slane %v1390_v60, 2  ;;  %v1123_v26 = vor.u32 %v1122_v14, %v1118_v13  ;;  %v1629_v62 = vshrl.u32 %v3804_v61, 16 }
 0x2dc   : > { %2071 = vmatprep.mubr.bf16.mxu0 %v5871_v7  ;;  %4455 = vmatpush3.bf16.msra.mxu0 %v1812_v41  ;;  %v1360_v47 = vsel %vm572_vm1, %v1351_v45, %v1359_v46  ;;  %v1608_v29 = vor.u32 %v1607_v19, %v1604_v16  ;;  %v3759_v45 = vld [vmem:[%s5600_s10 + $0xc8] sm:$0x1]  ;;  %v1657_v63 = vshll.u32 %v3807_v4, 16 }
 0x2dd   : > { %2161 = vmatmul.mubr.bf16.gmra.mrb[56].mxu1 %v5830_v28  ;;  %4456 = vmatprep.subr.bf16.mxu0 %v1813_v59  ;;  %v1343_v28 = vsel %vm572_vm1, %v1334_v50, %v1342_v30  ;;  %v1382_v50 = vshll.u32 %v3782_v35, 16  ;;  %v1387_v30 = vshrl.u32 %v3783_v34, 16  ;;  %v3806_v35 = vld [vmem:[%s5600_s10 + $0xc0] sm:$0xfc]  ;;  %v1631_v34 = vrot.slane %v1629_v62, 2 }
 0x2de   : > { %2168 = vmatprep.mubr.bf16.mxu1 %v1310_v43  ;;  %v1598_v43 = vrot.slane %v1596_v0, 3  ;;  %v1649_v5 = vshll.u32 %v3806_v35, 16 }
 0x2df   : > { %v1384_v22 = vrot.slane %v1382_v50, 2  ;;  %v1389_v23 = vrot.slane %v1387_v30, 1  ;;  %v1659_v50 = vrot.slane %v1657_v63, 3 }
 0x2e0   : > { %4457 = vmatpush3.bf16.msra.mxu0 %v1813_v59  ;;  %v1599_v41 = vor.u32 %v1598_v43, %v1595_v42  ;;  %v1610_v59 = vshrl.u32 %v3803_v11, 16  ;;  %v1137_v42 = vshll.u32 %v3759_v45, 16  ;;  %v1637_v11 = vshrl.u32 %v3805_v53, 16 }
 0x2e1   : > { %4458 = vmatprep.subr.bf16.mxu0 %v1814_v15  ;;  %v1385_v38 = vor.u32 %v1384_v22, %v1381_v21  ;;  %v1393_v39 = vor.u32 %v1392_v24, %v1389_v23  ;;  %v1651_v8 = vrot.slane %v1649_v5, 3 }
 0x2e2   : > { %v1139_v54 = vrot.slane %v1137_v42, 1  ;;  %v1639_v1 = vrot.slane %v1637_v11, 2 }
 0x2e3   : > { %2072 = vmatmul.mubr.bf16.gmra.mrb[48].mxu0 %v5640_v32 }
 0x2e4   : > { %2079 = vmatprep.mubr.bf16.mxu0 %v5884_v40  ;;  %4459 = vmatpush3.bf16.msra.mxu0 %v1814_v15  ;;  %v1125_v15 = vshll.u32 %v3757_v6, 16  ;;  %v1654_v6 = vshrl.u32 %v3807_v4, 16 }
 0x2e5   : > { %2169 = vmatmul.mubr.bf16.gmra.mrb[60].mxu1 %v5860_v44  ;;  %v1590_v44 = vrot.slane %v1588_v25, 3  ;;  %4460 = vmatprep.subr.bf16.mxu0 %v1815_v37  ;;  %v3758_v25 = vld [vmem:[%s5600_s10 + $0xc0] sm:$0xff] }
 0x2e6   : > { %2176 = vmatprep.mubr.bf16.mxu1 %v1343_v28  ;;  %v1612_v28 = vrot.slane %v1610_v59, 2  ;;  %v1127_v0 = vrot.slane %v1125_v15, 1  ;;  %v1132_v27 = vshll.u32 %v3758_v25, 16  ;;  %v1656_v9 = vrot.slane %v1654_v6, 2  ;;  %v5955_v15 = vld [vmem:[#allocation16] ss:$0 sm:$0xff] }
 0x2e7   : > { %v1591_v17 = vor.u32 %v1590_v44, %v1587_v48  ;;  %v1130_v48 = vshrl.u32 %v3758_v25, 16 }
 0x2e8   : > { %4461 = vmatpush3.bf16.msra.mxu0 %v1815_v37  ;;  %v1616_v37 = vor.u32 %v1615_v20, %v1612_v28  ;;  %v1128_v46 = vsel %vm970_vm2, %v1123_v26, %v1127_v0  ;;  %v1134_v44 = vrot.slane %v1132_v27, 1  ;;  %v1660_v13 = vor.u32 %v1659_v50, %v1656_v9 }
 0x2ea   : > { %v1617_v43 = vsel %vm1431_vm3, %v1608_v29, %v1616_v37  ;;  %v1135_v52 = vor.u32 %v1134_v44, %v1130_v48 }
 0x2eb   : > { %2080 = vmatmul.mubr.bf16.gmra.mrb[52].mxu0 %v5643_v33 }
 0x2ec   : > { %2087 = vmatprep.mubr.bf16.mxu0 %v5894_v56  ;;  %v1140_v57 = vsel %vm970_vm2, %v1135_v52, %v1139_v54 }
 0x2ed   : > { %2177 = vmatmul.mubr.bf16.gmra.mrb[64].mxu1 %v5876_v10  ;;  %v1600_v10 = vsel %vm1431_vm3, %v1591_v17, %v1599_v41  ;;  %v1640_v17 = vshll.u32 %v3805_v53, 16 }
 0x2ee   : > { %2184 = vmatprep.mubr.bf16.mxu1 %v1360_v47  ;;  %v1632_v47 = vshll.u32 %v3804_v61, 16 }
 0x2ef   : > { %v1642_v3 = vrot.slane %v1640_v17, 3 }
 0x2f0   : > { %v1634_v41 = vrot.slane %v1632_v47, 3 }
 0x2f1   : > { %v1643_v59 = vor.u32 %v1642_v3, %v1639_v1 }
 0x2f3   : > { %2088 = vmatmul.mubr.bf16.gmra.mrb[56].mxu0 %v5650_v51 }
 0x2f4   : > { %2095 = vmatprep.mubr.bf16.mxu0 %v1600_v10 }
 0x2f5   : > { %2185 = vmatmul.mubr.bf16.gmra.mrb[68].mxu1 %v5888_v49  ;;  %v1394_v49 = vsel %vm572_vm1, %v1385_v38, %v1393_v39 }
 0x2f6   : > { %2192 = vmatprep.mubr.bf16.mxu1 %v1377_v18 }
 0x2fb   : > { %2096 = vmatmul.mubr.bf16.gmra.mrb[60].mxu0 %v5653_v55 }
 0x2fc   : > { %2103 = vmatprep.mubr.bf16.mxu0 %v1617_v43 }
 0x2fd   : > { %2193 = vmatmul.mubr.bf16.gmra.mrb[72].mxu1 %v1128_v46 }
 0x2fe   : > { %2200 = vmatprep.mubr.bf16.mxu1 %v1394_v49 }
 0x303   : > { %2104 = vmatmul.mubr.bf16.gmra.mrb[64].mxu0 %v5658_v58 }
 0x304   : > { %4462 = vmatprep.mubr.bf16.mxu0 %v5853_v36  ;;  %v1646_v36 = vshrl.u32 %v3806_v35, 16 }
 0x305   : > { %2201 = vmatmul.mubr.bf16.gmra.mrb[76].mxu1 %v1140_v57 }
 0x30b   : > { %4463 = vmatmul.mubr.bf16.vlgmr.msra.gmra.mrb[68].mxu0 %v5871_v7  ;;  %v1635_v7 = vor.u32 %v1634_v41, %v1631_v34 }
 0x30c   : > { %4466 = vmatprep.mubr.bf16.mxu0 %v5884_v40  ;;  %v1648_v40 = vrot.slane %v1646_v36, 2 }
 0x30d   : > { %v1644_v30 = vsel %vm1431_vm3, %v1635_v7, %v1643_v59 }
 0x30e   : > { %v1652_v60 = vor.u32 %v1651_v8, %v1648_v40 }
 0x310   : > { %v1661_v14 = vsel %vm1431_vm3, %v1652_v60, %v1660_v13 }
 0x313   : > { %4467 = vmatmul.mubr.bf16.gmra.mrb[72].mxu0 %v5894_v56 }
 0x314   : > { %4470 = vmatprep.mubr.bf16.mxu0 %v1600_v10 }
 0x31b   : > { %4471 = vmatmul.mubr.bf16.gmra.mrb[76].mxu0 %v1617_v43 }
 0x31c   : > { %4474 = vmatprep.mubr.bf16.mxu0 %v1644_v30 }
 0x323   : > { %4475 = vmatmul.mubr.bf16.gmra.mrb[80].mxu0 %v1661_v14 }
 0x35e   : > { %v3866_v56 = vpop.f32.mrb[4].mxu0 }
 0x35f   : > { %v3867_v16 = vpop.f32.mrb[5].mxu0 }
 0x360   : > { %v3930_v10 = vpop.f32.mrb[16].mxu1  ;;  %v3868_v19 = vadd.f32 %v3867_v16, %v3866_v56  ;;  %v3869_v28 = vpop.f32.mrb[6].mxu0 }
 0x361   : > { %v3931_v18 = vpop.f32.mrb[17].mxu1  ;;  %v3870_v22 = vpop.f32.mrb[7].mxu0 }
 0x362   : > { %v3932_v20 = vadd.f32 %v3931_v18, %v3930_v10  ;;  %v3933_v21 = vpop.f32.mrb[18].mxu1  ;;  %v1856_v24 = vadd.f32 %v3868_v19, %v5955_v15  ;;  %v3871_v25 = vadd.f32 %v3870_v22, %v3869_v28 }
 0x363   : > { %v3934_v23 = vpop.f32.mrb[19].mxu1 }
 0x364   : > { %v3935_v26 = vadd.f32 %v3934_v23, %v3933_v21  ;;  %v1859_v0 = vadd.f32 %v3871_v25, %v5955_v15  ;;  %v5959_v27 = vadd.f32 %v3932_v20, %v1856_v24 }
 0x366   : > { %v5961_v29 = vadd.f32 %v3935_v26, %v1859_v0  ;;  %v3872_v37 = vpop.f32.mrb[8].mxu0 }
 0x367   : > { %v3873_v39 = vpop.f32.mrb[9].mxu0 }
 0x368   : > { %v3936_v38 = vpop.f32.mrb[20].mxu1  ;;  %v3874_v46 = vadd.f32 %v3873_v39, %v3872_v37  ;;  %v3875_v48 = vpop.f32.mrb[10].mxu0 }
 0x369   : > { %v3937_v45 = vpop.f32.mrb[21].mxu1  ;;  %v3876_v43 = vpop.f32.mrb[11].mxu0 }
 0x36a   : > { %v3938_v44 = vadd.f32 %v3937_v45, %v3936_v38  ;;  %v3939_v42 = vpop.f32.mrb[22].mxu1  ;;  %v1864_v52 = vadd.f32 %v3874_v46, %v5955_v15  ;;  %v3877_v54 = vadd.f32 %v3876_v43, %v3875_v48 }
 0x36b   : > { %v3940_v49 = vpop.f32.mrb[23].mxu1 }
 0x36c   : > { %v3941_v57 = vadd.f32 %v3940_v49, %v3939_v42  ;;  %v1867_v61 = vadd.f32 %v3877_v54, %v5955_v15  ;;  %v5965_v53 = vadd.f32 %v3938_v44, %v1864_v52 }
 0x36e   : > { %v5967_v62 = vadd.f32 %v3941_v57, %v1867_v61  ;;  %v3878_v47 = vpop.f32.mrb[12].mxu0 }
 0x36f   : > { %v3879_v17 = vpop.f32.mrb[13].mxu0 }
 0x370   : > { %v3942_v11 = vpop.f32.mrb[24].mxu1  ;;  %v3880_v34 = vadd.f32 %v3879_v17, %v3878_v47  ;;  %v3881_v41 = vpop.f32.mrb[14].mxu0 }
 0x371   : > { %v3943_v35 = vpop.f32.mrb[25].mxu1  ;;  %v3882_v4 = vpop.f32.mrb[15].mxu0 }
 0x372   : > { %v3944_v1 = vadd.f32 %v3943_v35, %v3942_v11  ;;  %v3945_v3 = vpop.f32.mrb[26].mxu1  ;;  %v1872_v5 = vadd.f32 %v3880_v34, %v5955_v15  ;;  %v3883_v6 = vadd.f32 %v3882_v4, %v3881_v41 }
 0x373   : > { %v3946_v36 = vpop.f32.mrb[27].mxu1 }
 0x374   : > { %v3947_v63 = vadd.f32 %v3946_v36, %v3945_v3  ;;  %v1875_v7 = vadd.f32 %v3883_v6, %v5955_v15  ;;  %v5971_v59 = vadd.f32 %v3944_v1, %v1872_v5 }
 0x376   : > { %v5973_v40 = vadd.f32 %v3947_v63, %v1875_v7  ;;  %v3884_v8 = vpop.f32.mrb[16].mxu0 }
 0x377   : > { %v3885_v50 = vpop.f32.mrb[17].mxu0 }
 0x378   : > { %v3948_v9 = vpop.f32.mrb[28].mxu1  ;;  %v3886_v60 = vadd.f32 %v3885_v50, %v3884_v8  ;;  %v3887_v13 = vpop.f32.mrb[18].mxu0 }
 0x379   : > { %v3949_v30 = vpop.f32.mrb[29].mxu1  ;;  %v3888_v10 = vpop.f32.mrb[19].mxu0 }
 0x37a   : > { %v3950_v14 = vadd.f32 %v3949_v30, %v3948_v9  ;;  %v3951_v56 = vpop.f32.mrb[30].mxu1  ;;  %v1880_v18 = vadd.f32 %v3886_v60, %v5955_v15  ;;  %v3889_v19 = vadd.f32 %v3888_v10, %v3887_v13 }
 0x37b   : > { %v3952_v16 = vpop.f32.mrb[31].mxu1 }
 0x37c   : > { %v3953_v28 = vadd.f32 %v3952_v16, %v3951_v56  ;;  %v1883_v20 = vadd.f32 %v3889_v19, %v5955_v15  ;;  %v5977_v21 = vadd.f32 %v3950_v14, %v1880_v18 }
 0x37e   : > { %v5979_v22 = vadd.f32 %v3953_v28, %v1883_v20  ;;  %v3890_v23 = vpop.f32.mrb[20].mxu0 }
 0x37f   : > { %v3891_v25 = vpop.f32.mrb[21].mxu0 }
 0x380   : > { %v3954_v24 = vpop.f32.mrb[32].mxu1  ;;  %v3892_v0 = vadd.f32 %v3891_v25, %v3890_v23  ;;  %v3893_v37 = vpop.f32.mrb[22].mxu0 }
 0x381   : > { %v3955_v26 = vpop.f32.mrb[33].mxu1  ;;  %v3894_v45 = vpop.f32.mrb[23].mxu0 }
 0x382   : > { %v3956_v38 = vadd.f32 %v3955_v26, %v3954_v24  ;;  %v3957_v39 = vpop.f32.mrb[34].mxu1  ;;  %v1888_v48 = vadd.f32 %v3892_v0, %v5955_v15  ;;  %v3895_v44 = vadd.f32 %v3894_v45, %v3893_v37 }
 0x383   : > { %v3958_v46 = vpop.f32.mrb[35].mxu1 }
 0x384   : > { %v3959_v42 = vadd.f32 %v3958_v46, %v3957_v39  ;;  %v1891_v43 = vadd.f32 %v3895_v44, %v5955_v15  ;;  %v5983_v49 = vadd.f32 %v3956_v38, %v1888_v48 }
 0x386   : > { %v5985_v52 = vadd.f32 %v3959_v42, %v1891_v43  ;;  %v3896_v54 = vpop.f32.mrb[24].mxu0 }
 0x387   : > { %v3897_v61 = vpop.f32.mrb[25].mxu0 }
 0x388   : > { %v3960_v57 = vpop.f32.mrb[36].mxu1  ;;  %v3898_v11 = vadd.f32 %v3897_v61, %v3896_v54  ;;  %v3899_v17 = vpop.f32.mrb[26].mxu0 }
 0x389   : > { %v3961_v47 = vpop.f32.mrb[37].mxu1  ;;  %v3900_v41 = vpop.f32.mrb[27].mxu0 }
 0x38a   : > { %v3962_v35 = vadd.f32 %v3961_v47, %v3960_v57  ;;  %v3963_v34 = vpop.f32.mrb[38].mxu1  ;;  %v1896_v3 = vadd.f32 %v3898_v11, %v5955_v15  ;;  %v3901_v4 = vadd.f32 %v3900_v41, %v3899_v17 }
 0x38b   : > { %v3964_v1 = vpop.f32.mrb[39].mxu1 }
 0x38c   : > { %v3965_v36 = vadd.f32 %v3964_v1, %v3963_v34  ;;  %v1899_v5 = vadd.f32 %v3901_v4, %v5955_v15  ;;  %v5989_v6 = vadd.f32 %v3962_v35, %v1896_v3 }
 0x38e   : > { %v5991_v63 = vadd.f32 %v3965_v36, %v1899_v5  ;;  %v3902_v7 = vpop.f32.mrb[28].mxu0 }
 0x38f   : > { %v3903_v9 = vpop.f32.mrb[29].mxu0 }
 0x390   : > { %v3966_v8 = vpop.f32.mrb[40].mxu1  ;;  %v3904_v30 = vadd.f32 %v3903_v9, %v3902_v7  ;;  %v3905_v60 = vpop.f32.mrb[30].mxu0 }
 0x391   : > { %v3967_v50 = vpop.f32.mrb[41].mxu1  ;;  %v3906_v56 = vpop.f32.mrb[31].mxu0 }
 0x392   : > { %v3968_v13 = vadd.f32 %v3967_v50, %v3966_v8  ;;  %v3969_v14 = vpop.f32.mrb[42].mxu1  ;;  %v1904_v16 = vadd.f32 %v3904_v30, %v5955_v15  ;;  %v3907_v18 = vadd.f32 %v3906_v56, %v3905_v60 }
 0x393   : > { %v3970_v10 = vpop.f32.mrb[43].mxu1 }
 0x394   : > { %v3971_v19 = vadd.f32 %v3970_v10, %v3969_v14  ;;  %v1907_v28 = vadd.f32 %v3907_v18, %v5955_v15  ;;  %v5995_v20 = vadd.f32 %v3968_v13, %v1904_v16 }
 0x396   : > { %v5997_v23 = vadd.f32 %v3971_v19, %v1907_v28  ;;  %v3908_v24 = vpop.f32.mrb[32].mxu0 }
 0x397   : > { %v3909_v26 = vpop.f32.mrb[33].mxu0 }
 0x398   : > { %v3972_v25 = vpop.f32.mrb[44].mxu1  ;;  %v3910_v37 = vadd.f32 %v3909_v26, %v3908_v24  ;;  %v3911_v38 = vpop.f32.mrb[34].mxu0 }
 0x399   : > { %v3973_v0 = vpop.f32.mrb[45].mxu1  ;;  %v3912_v46 = vpop.f32.mrb[35].mxu0 }
 0x39a   : > { %v3974_v39 = vadd.f32 %v3973_v0, %v3972_v25  ;;  %v3975_v45 = vpop.f32.mrb[46].mxu1  ;;  %v1912_v44 = vadd.f32 %v3910_v37, %v5955_v15  ;;  %v3913_v42 = vadd.f32 %v3912_v46, %v3911_v38 }
 0x39b   : > { %v3976_v48 = vpop.f32.mrb[47].mxu1 }
 0x39c   : > { %v3977_v43 = vadd.f32 %v3976_v48, %v3975_v45  ;;  %v1915_v54 = vadd.f32 %v3913_v42, %v5955_v15  ;;  %v6001_v57 = vadd.f32 %v3974_v39, %v1912_v44 }
 0x39e   : > { %v6003_v61 = vadd.f32 %v3977_v43, %v1915_v54  ;;  %v3994_v47 = vpop.f32.mrb[36].mxu0 }
 0x39f   : > { %v3995_v17 = vpop.f32.mrb[37].mxu0 }
 0x3a0   : > { %v4058_v11 = vpop.f32.mrb[48].mxu1  ;;  %v3996_v34 = vadd.f32 %v3995_v17, %v3994_v47  ;;  %v3997_v41 = vpop.f32.mrb[38].mxu0 }
 0x3a1   : > { %v4059_v35 = vpop.f32.mrb[49].mxu1  ;;  %v3998_v4 = vpop.f32.mrb[39].mxu0 }
 0x3a2   : > { %v4060_v1 = vadd.f32 %v4059_v35, %v4058_v11  ;;  %v4061_v3 = vpop.f32.mrb[50].mxu1  ;;  %v2050_v5 = vadd.f32 %v3996_v34, %v5959_v27  ;;  %v3999_v7 = vadd.f32 %v3998_v4, %v3997_v41 }
 0x3a3   : > { %v4062_v36 = vpop.f32.mrb[51].mxu1 }
 0x3a4   : > { %v4063_v8 = vadd.f32 %v4062_v36, %v4061_v3  ;;  %v2053_v15 = vadd.f32 %v3999_v7, %v5961_v29  ;;  %v6007_v9 = vadd.f32 %v4060_v1, %v2050_v5 }
 0x3a6   : > { %v4000_v50 = vpop.f32.mrb[40].mxu0  ;;  %v6009_v60 = vadd.f32 %v4063_v8, %v2053_v15 }
 0x3a7   : > { %v4001_v13 = vpop.f32.mrb[41].mxu0 }
 0x3a8   : > { %v4064_v30 = vpop.f32.mrb[52].mxu1  ;;  %v4002_v56 = vadd.f32 %v4001_v13, %v4000_v50  ;;  %v4003_v10 = vpop.f32.mrb[42].mxu0 }
 0x3a9   : > { %v4065_v14 = vpop.f32.mrb[53].mxu1  ;;  %v4004_v19 = vpop.f32.mrb[43].mxu0 }
 0x3aa   : > { %v4066_v16 = vadd.f32 %v4065_v14, %v4064_v30  ;;  %v4067_v18 = vpop.f32.mrb[54].mxu1  ;;  %v2058_v27 = vadd.f32 %v4002_v56, %v5965_v53  ;;  %v4005_v24 = vadd.f32 %v4004_v19, %v4003_v10 }
 0x3ab   : > { %v4068_v28 = vpop.f32.mrb[55].mxu1 }
 0x3ac   : > { %v4069_v25 = vadd.f32 %v4068_v28, %v4067_v18  ;;  %v2061_v29 = vadd.f32 %v4005_v24, %v5967_v62  ;;  %v6013_v26 = vadd.f32 %v4066_v16, %v2058_v27 }
 0x3ae   : > { %v4006_v0 = vpop.f32.mrb[44].mxu0  ;;  %v6015_v38 = vadd.f32 %v4069_v25, %v2061_v29 }
 0x3af   : > { %v4007_v39 = vpop.f32.mrb[45].mxu0 }
 0x3b0   : > { %v4070_v37 = vpop.f32.mrb[56].mxu1  ;;  %v4008_v46 = vadd.f32 %v4007_v39, %v4006_v0  ;;  %v4009_v48 = vpop.f32.mrb[46].mxu0 }
 0x3b1   : > { %v4071_v45 = vpop.f32.mrb[57].mxu1  ;;  %v4010_v43 = vpop.f32.mrb[47].mxu0 }
 0x3b2   : > { %v4072_v44 = vadd.f32 %v4071_v45, %v4070_v37  ;;  %v4073_v42 = vpop.f32.mrb[58].mxu1  ;;  %v2066_v53 = vadd.f32 %v4008_v46, %v5971_v59  ;;  %v4011_v47 = vadd.f32 %v4010_v43, %v4009_v48 }
 0x3b3   : > { %v4074_v54 = vpop.f32.mrb[59].mxu1 }
 0x3b4   : > { %v4075_v11 = vadd.f32 %v4074_v54, %v4073_v42  ;;  %v2069_v62 = vadd.f32 %v4011_v47, %v5973_v40  ;;  %v6019_v17 = vadd.f32 %v4072_v44, %v2066_v53 }
 0x3b6   : > { %v4012_v35 = vpop.f32.mrb[48].mxu0  ;;  %v6021_v41 = vadd.f32 %v4075_v11, %v2069_v62 }
 0x3b7   : > { %v4013_v1 = vpop.f32.mrb[49].mxu0 }
 0x3b8   : > { %v4076_v34 = vpop.f32.mrb[60].mxu1  ;;  %v4014_v4 = vadd.f32 %v4013_v1, %v4012_v35  ;;  %v4015_v36 = vpop.f32.mrb[50].mxu0 }
 0x3b9   : > { %v4077_v3 = vpop.f32.mrb[61].mxu1  ;;  %v4016_v8 = vpop.f32.mrb[51].mxu0 }
 0x3ba   : > { %v4078_v5 = vadd.f32 %v4077_v3, %v4076_v34  ;;  %v4079_v7 = vpop.f32.mrb[62].mxu1  ;;  %v2074_v59 = vadd.f32 %v4014_v4, %v5977_v21  ;;  %v4017_v50 = vadd.f32 %v4016_v8, %v4015_v36 }
 0x3bb   : > { %v4080_v15 = vpop.f32.mrb[63].mxu1 }
 0x3bc   : > { %v4081_v30 = vadd.f32 %v4080_v15, %v4079_v7  ;;  %v2077_v40 = vadd.f32 %v4017_v50, %v5979_v22  ;;  %v6025_v13 = vadd.f32 %v4078_v5, %v2074_v59 }
 0x3be   : > { %v4018_v14 = vpop.f32.mrb[52].mxu0  ;;  %v6027_v10 = vadd.f32 %v4081_v30, %v2077_v40 }
 0x3bf   : > { %v4019_v16 = vpop.f32.mrb[53].mxu0 }
 0x3c0   : > { %v4082_v56 = vpop.f32.mrb[64].mxu1  ;;  %v4020_v19 = vadd.f32 %v4019_v16, %v4018_v14  ;;  %v4021_v28 = vpop.f32.mrb[54].mxu0 }
 0x3c1   : > { %v4083_v18 = vpop.f32.mrb[65].mxu1  ;;  %v4022_v25 = vpop.f32.mrb[55].mxu0 }
 0x3c2   : > { %v4084_v27 = vadd.f32 %v4083_v18, %v4082_v56  ;;  %v4085_v24 = vpop.f32.mrb[66].mxu1  ;;  %v2082_v21 = vadd.f32 %v4020_v19, %v5983_v49  ;;  %v4023_v0 = vadd.f32 %v4022_v25, %v4021_v28 }
 0x3c3   : > { %v4086_v29 = vpop.f32.mrb[67].mxu1 }
 0x3c4   : > { %v4087_v37 = vadd.f32 %v4086_v29, %v4085_v24  ;;  %v2085_v22 = vadd.f32 %v4023_v0, %v5985_v52  ;;  %v6031_v39 = vadd.f32 %v4084_v27, %v2082_v21 }
 0x3c6   : > { %v4024_v45 = vpop.f32.mrb[56].mxu0  ;;  %v6033_v48 = vadd.f32 %v4087_v37, %v2085_v22 }
 0x3c7   : > { %v4025_v44 = vpop.f32.mrb[57].mxu0 }
 0x3c8   : > { %v4088_v46 = vpop.f32.mrb[68].mxu1  ;;  %v4026_v43 = vadd.f32 %v4025_v44, %v4024_v45  ;;  %v4027_v54 = vpop.f32.mrb[58].mxu0 }
 0x3c9   : > { %v4089_v42 = vpop.f32.mrb[69].mxu1  ;;  %v4028_v11 = vpop.f32.mrb[59].mxu0 }
 0x3ca   : > { %v4090_v53 = vadd.f32 %v4089_v42, %v4088_v46  ;;  %v4091_v47 = vpop.f32.mrb[70].mxu1  ;;  %v2090_v49 = vadd.f32 %v4026_v43, %v5989_v6  ;;  %v4029_v35 = vadd.f32 %v4028_v11, %v4027_v54 }
 0x3cb   : > { %v4092_v62 = vpop.f32.mrb[71].mxu1 }
 0x3cc   : > { %v4093_v34 = vadd.f32 %v4092_v62, %v4091_v47  ;;  %v2093_v52 = vadd.f32 %v4029_v35, %v5991_v63  ;;  %v6037_v1 = vadd.f32 %v4090_v53, %v2090_v49 }
 0x3ce   : > { %v4030_v3 = vpop.f32.mrb[60].mxu0  ;;  %v6039_v36 = vadd.f32 %v4093_v34, %v2093_v52 }
 0x3cf   : > { %v4031_v5 = vpop.f32.mrb[61].mxu0 }
 0x3d0   : > { %v4094_v4 = vpop.f32.mrb[72].mxu1  ;;  %v4032_v8 = vadd.f32 %v4031_v5, %v4030_v3  ;;  %v4033_v15 = vpop.f32.mrb[62].mxu0 }
 0x3d1   : > { %v4095_v7 = vpop.f32.mrb[73].mxu1  ;;  %v4034_v30 = vpop.f32.mrb[63].mxu0 }
 0x3d2   : > { %v4096_v59 = vadd.f32 %v4095_v7, %v4094_v4  ;;  %v4097_v50 = vpop.f32.mrb[74].mxu1  ;;  %v2098_v6 = vadd.f32 %v4032_v8, %v5995_v20  ;;  %v4035_v14 = vadd.f32 %v4034_v30, %v4033_v15 }
 0x3d3   : > { %v4098_v40 = vpop.f32.mrb[75].mxu1 }
 0x3d4   : > { %v4099_v56 = vadd.f32 %v4098_v40, %v4097_v50  ;;  %v2101_v63 = vadd.f32 %v4035_v14, %v5997_v23  ;;  %v6043_v16 = vadd.f32 %v4096_v59, %v2098_v6 }
 0x3d6   : > { %v4036_v18 = vpop.f32.mrb[64].mxu0  ;;  %v6045_v28 = vadd.f32 %v4099_v56, %v2101_v63 }
 0x3d7   : > { %v4037_v27 = vpop.f32.mrb[65].mxu0 }
 0x3d8   : > { %v4100_v19 = vpop.f32.mrb[76].mxu1  ;;  %v4038_v25 = vadd.f32 %v4037_v27, %v4036_v18  ;;  %v4039_v29 = vpop.f32.mrb[66].mxu0 }
 0x3d9   : > { %v4101_v24 = vpop.f32.mrb[77].mxu1  ;;  %v4040_v37 = vpop.f32.mrb[67].mxu0 }
 0x3da   : > { %v4102_v21 = vadd.f32 %v4101_v24, %v4100_v19  ;;  %v4103_v0 = vpop.f32.mrb[78].mxu1  ;;  %v2106_v20 = vadd.f32 %v4038_v25, %v6001_v57  ;;  %v4041_v45 = vadd.f32 %v4040_v37, %v4039_v29 }
 0x3db   : > { %v4104_v22 = vpop.f32.mrb[79].mxu1 }
 0x3dc   : > { %v4105_v46 = vadd.f32 %v4104_v22, %v4103_v0  ;;  %v2109_v23 = vadd.f32 %v4041_v45, %v6003_v61  ;;  %v2203_v44 = vadd.f32 %v4102_v21, %v2106_v20 }
 0x3de   : > { %v4464_v42 = vpop.f32.mrb[68].mxu0  ;;  %v2206_v43 = vadd.f32 %v4105_v46, %v2109_v23 }
 0x3df   : > { %v2252_v54 = vadd.f32 %v4464_v42, %v6013_v26  ;;  %v2243_v53 = vpop.f32.mrb[69].mxu0 }
 0x3e0   : > { %v2244_v47 = vadd.f32 %v2243_v53, %v6007_v9  ;;  %v4465_v11 = vpop.f32.mrb[70].mxu0 }
 0x3e1   : > { %v2308_v62 = vmax.f32 %v2252_v54, 0.0  ;;  %v2255_v57 = vadd.f32 %v4465_v11, %v6015_v38  ;;  %v2246_v49 = vpop.f32.mrb[71].mxu0 }
 0x3e2   : > { %v2306_v35 = vmax.f32 %v2244_v47, 0.0  ;;  %v2247_v34 = vadd.f32 %v2246_v49, %v6009_v60 }
 0x3e3   : > { %2324 = vst [vmem:[%s5598_s27 + $0x50] sm:$0xff] %v2308_v62  ;;  %v2309_v61 = vmax.f32 %v2255_v57, 0.0 }
 0x3e4   : > { %2322 = vst [vmem:[%s5598_s27 + $0x10] sm:$0xff] %v2306_v35  ;;  %v2307_v52 = vmax.f32 %v2247_v34, 0.0 }
 0x3e5   : > { %2325 = vst [vmem:[%s5598_s27 + $0x70] sm:$0xff] %v2309_v61 }
 0x3e6   : > { %2323 = vst [vmem:[%s5598_s27 + $0x30] sm:$0xff] %v2307_v52  ;;  %v4468_v26 = vpop.f32.mrb[72].mxu0 }
 0x3e7   : > { %v2268_v9 = vadd.f32 %v4468_v26, %v6025_v13  ;;  %v2259_v3 = vpop.f32.mrb[73].mxu0 }
 0x3e8   : > { %v2260_v38 = vadd.f32 %v2259_v3, %v6019_v17  ;;  %v4469_v4 = vpop.f32.mrb[74].mxu0 }
 0x3e9   : > { %v2312_v5 = vmax.f32 %v2268_v9, 0.0  ;;  %v2271_v60 = vadd.f32 %v4469_v4, %v6027_v10  ;;  %v2262_v7 = vpop.f32.mrb[75].mxu0 }
 0x3ea   : > { %v2310_v8 = vmax.f32 %v2260_v38, 0.0  ;;  %v2263_v15 = vadd.f32 %v2262_v7, %v6021_v41 }
 0x3eb   : > { %2328 = vst [vmem:[%s5598_s27 + $0xd0] sm:$0xff] %v2312_v5  ;;  %v2313_v59 = vmax.f32 %v2271_v60, 0.0 }
 0x3ec   : > { %2326 = vst [vmem:[%s5598_s27 + $0x90] sm:$0xff] %v2310_v8  ;;  %v2311_v50 = vmax.f32 %v2263_v15, 0.0 }
 0x3ed   : > { %2329 = vst [vmem:[%s5598_s27 + $0xf0] sm:$0xff] %v2313_v59 }
 0x3ee   : > { %2327 = vst [vmem:[%s5598_s27 + $0xb0] sm:$0xff] %v2311_v50  ;;  %v4472_v13 = vpop.f32.mrb[76].mxu0 }
 0x3ef   : > { %v2284_v17 = vadd.f32 %v4472_v13, %v6037_v1  ;;  %v2275_v30 = vpop.f32.mrb[77].mxu0 }
 0x3f0   : > { %v2276_v10 = vadd.f32 %v2275_v30, %v6031_v39  ;;  %v4473_v40 = vpop.f32.mrb[78].mxu0 }
 0x3f1   : > { %v2316_v6 = vmax.f32 %v2284_v17, 0.0  ;;  %v2287_v41 = vadd.f32 %v4473_v40, %v6039_v36  ;;  %v2278_v14 = vpop.f32.mrb[79].mxu0 }
 0x3f2   : > { %v2314_v56 = vmax.f32 %v2276_v10, 0.0  ;;  %v2279_v63 = vadd.f32 %v2278_v14, %v6033_v48 }
 0x3f3   : > { %2332 = vst [vmem:[%s5598_s27 + $0x150] sm:$0xff] %v2316_v6  ;;  %v2317_v18 = vmax.f32 %v2287_v41, 0.0 }
 0x3f4   : > { %2330 = vst [vmem:[%s5598_s27 + $0x110] sm:$0xff] %v2314_v56  ;;  %v2315_v19 = vmax.f32 %v2279_v63, 0.0 }
 0x3f5   : > { %2333 = vst [vmem:[%s5598_s27 + $0x170] sm:$0xff] %v2317_v18 }
 0x3f6   : > { %2331 = vst [vmem:[%s5598_s27 + $0x130] sm:$0xff] %v2315_v19  ;;  %v4476_v1 = vpop.f32.mrb[80].mxu0 }
 0x3f7   : > { %v2300_v39 = vadd.f32 %v4476_v1, %v2203_v44  ;;  %v2291_v27 = vpop.f32.mrb[81].mxu0 }
 0x3f8   : > { %v2292_v24 = vadd.f32 %v2291_v27, %v6043_v16  ;;  %v4477_v36 = vpop.f32.mrb[82].mxu0 }
 0x3f9   : > { %v2320_v25 = vmax.f32 %v2300_v39, 0.0  ;;  %v2303_v29 = vadd.f32 %v4477_v36, %v2206_v43  ;;  %v2294_v21 = vpop.f32.mrb[83].mxu0 }
 0x3fa   : > { %v2318_v48 = vmax.f32 %v2292_v24, 0.0  ;;  %v2295_v0 = vadd.f32 %v2294_v21, %v6045_v28 }
 0x3fb   : > { %2336 = vst [vmem:[%s5598_s27 + $0x1d0] sm:$0xff] %v2320_v25  ;;  %v2321_v37 = vmax.f32 %v2303_v29, 0.0 }
 0x3fc   : > { %2334 = vst [vmem:[%s5598_s27 + $0x190] sm:$0xff] %v2318_v48  ;;  %v2319_v22 = vmax.f32 %v2295_v0, 0.0 }
 0x3fd   : > { %2337 = vst [vmem:[%s5598_s27 + $0x1f0] sm:$0xff] %v2321_v37 }
 0x3fe   : > { %2335 = vst [vmem:[%s5598_s27 + $0x1b0] sm:$0xff] %v2319_v22 }
 0x3ff   : > { %5060 = dma.done.wait [#allocation5 + $0x1], 9216 }
 0x400   : > { %5061 = vsyncadd [#allocation5 + $0x1], 4294958080  ;;  %v2891_v20 = vld [vmem:[#allocation3 + $0x280] sm:$0xff]  ;;  %v2892_v23 = vld [vmem:[#allocation3 + $0x288] sm:$0xff]  ;;  %vm2718_vm4 = vcmask 1044480   ;;  %s3824_s19 = sshll.u32 %s6526_s3, 6 }
 0x401   : > { %v2883_v45 = vld [vmem:[#allocation3 + $0x240] sm:$0xff]  ;;  %4122 = vmatprep.subr.bf16.mxu1 %v2891_v20  ;;  %v2908_v44 = vld [vmem:[#allocation3 + $0x308] sm:$0xff]  ;;  %v2893_v43 = vld [vmem:[#allocation3 + $0x290] sm:$0xff]  ;;  %s3813_s21 = sshll.u32 %s6527_s16, 7  ;;  %s3494_s16 = sshll.u32 %s5598_s27, 4  ;;  %s6374_s16 = int_to_ptr.vmem [resolvable:$true] %s3494_s16 }
 0x402   : > { %v2907_v46 = vld [vmem:[#allocation3 + $0x300] sm:$0xff]  ;;  %4123 = vmatpush3.bf16.msra.mxu1 %v2883_v45  ;;  %v2884_v28 = vld [vmem:[#allocation3 + $0x248] sm:$0xff]  ;;  %v2909_v54 = vld [vmem:[#allocation3 + $0x310] sm:$0xff]  ;;  %s3491_s26 = sadd.s32 %s3824_s19, %s3813_s21  ;;  %s6536_s4 = sld [smem:[#allocation59_spill]] }
 0x403   : > { %4186 = vmatprep.subr.bf16.mxu0 %v2907_v46  ;;  %v2899_v16 = vld [vmem:[#allocation3 + $0x2c0] sm:$0xff]  ;;  %4124 = vmatprep.subr.bf16.mxu1 %v2892_v23  ;;  %v2900_v42 = vld [vmem:[#allocation3 + $0x2c8] sm:$0xff]  ;;  %v2885_v53 = vld [vmem:[#allocation3 + $0x250] sm:$0xff]  ;;  %s3814_s3 = sshll.u32 %s3491_s26, 7  ;;  %s6537_s12 = sand.u32 1, %s5072_s28  }
 0x404   : > { %4187 = vmatpush3.bf16.msra.mxu0 %v2899_v16  ;;  %v2901_v47 = vld [vmem:[#allocation3 + $0x2d0] sm:$0xff]  ;;  %v2894_v11 = vld [vmem:[#allocation3 + $0x298] sm:$0xff]  ;;  %v2378_v57 = vld [vmem:[%s5600_s10] sm:$0xfe]  ;;  %s6381_s23 = scalar_lea.sflag [#allocation9], %s6537_s12  ;;  %s4968_s17 = scalar_lea.vmem %s6374_s16, 8192 }
 0x405   : > { %4188 = vmatprep.subr.bf16.mxu0 %v2908_v44  ;;  %v2910_v62 = vld [vmem:[#allocation3 + $0x318] sm:$0xff]  ;;  %v2379_v49 = vld [vmem:[%s5600_s10 + $0x8] sm:$0x3]  ;;  %v2407_v61 = vshrl.u32 %v2378_v57, 16  ;;  %v2410_v52 = vshll.u32 %v2378_v57, 16  ;;  %v2895_v3 = vld [vmem:[#allocation3 + $0x2a0] sm:$0xff]  ;;  %p4969_p2 = scmp.ne.s32.totalorder %s6374_s16, %s4968_s17 }
 0x406   : > { %4125 = vmatpush3.bf16.msra.mxu1 %v2884_v28  ;;  %v2886_v35 = vld [vmem:[#allocation3 + $0x258] sm:$0xff]  ;;  %v2415_v26 = vshrl.u32 %v2379_v49, 16  ;;  %v2418_v9 = vshll.u32 %v2379_v49, 16  ;;  %v2911_v38 = vld [vmem:[#allocation3 + $0x320] sm:$0xff]  ;;  %v6082_v4 = vld [vmem:[%s5600_s10 + $0x30] sm:$0xff]  ;;  %p6538_p3 = scmp.ne.s32.totalorder %s6515_s25, 0 }
 0x407   : > { %4126 = vmatprep.subr.bf16.mxu1 %v2893_v43  ;;  %v2902_v34 = vld [vmem:[#allocation3 + $0x2d8] sm:$0xff]  ;;  %v2409_v5 = vrot.slane %v2407_v61, 1  ;;  %v2412_v60 = vrot.slane %v2410_v52, 2  ;;  %3089 = vmatprep.mubr.bf16.mxu0 %v6082_v4  ;;  %v2887_v15 = vld [vmem:[#allocation3 + $0x260] sm:$0xff]  ;;  %v2896_v50 = vld [vmem:[#allocation3 + $0x2a8] sm:$0xff]  ;;  %s5123_s8 = smov [#allocation18]  }
 0x408   : > { %4189 = vmatpush3.bf16.msra.mxu0 %v2900_v42  ;;  %v2417_v7 = vrot.slane %v2415_v26, 1  ;;  %v2420_v8 = vrot.slane %v2418_v9, 2  ;;  %v2903_v59 = vld [vmem:[#allocation3 + $0x2e0] sm:$0xff]  ;;  %v2912_v30 = vld [vmem:[#allocation3 + $0x328] sm:$0xff]  ;;  %v2380_v10 = vld [vmem:[%s5600_s10 + $0x10] sm:$0xfe]  ;;  %s6372_s22 = scalar_lea.hbm %s6536_s4, %s3814_s3  ;;  %p4970_p5 = pnand %p4969_p2, %p6538_p3 }
 0x409   : > { %4190 = vmatprep.subr.bf16.mxu0 %v2909_v54  ;;  %v2413_v13 = vor.u32 %v2412_v60, %v2409_v5  ;;  %v2381_v40 = vld [vmem:[%s5600_s10 + $0x18] sm:$0x3]  ;;  %v2888_v41 = vld [vmem:[#allocation3 + $0x268] sm:$0xff]  ;;  %v2424_v56 = vshrl.u32 %v2380_v10, 16  ;;  %v2427_v63 = vshll.u32 %v2380_v10, 16  ;;  %v2897_v1 = vld [vmem:[#allocation3 + $0x2b0] sm:$0xff] }
 0x40a   : > { %4127 = vmatpush3.bf16.msra.mxu1 %v2885_v53  ;;  %v2421_v17 = vor.u32 %v2420_v8, %v2417_v7  ;;  %v2904_v14 = vld [vmem:[#allocation3 + $0x2e8] sm:$0xff]  ;;  %v2432_v18 = vshrl.u32 %v2381_v40, 16  ;;  %v2435_v19 = vshll.u32 %v2381_v40, 16  ;;  %v2913_v39 = vld [vmem:[#allocation3 + $0x330] sm:$0xff]  ;;  %v2674_v36 = vld [vmem:[%s5600_s10] sm:$0xf8]  ;;  %p4971_p13 = pneg %p4970_p5 }
 0x40b   : > { %4128 = vmatprep.subr.bf16.mxu1 %v2894_v11  ;;  %v2889_v27 = vld [vmem:[#allocation3 + $0x270] sm:$0xff]  ;;  %v2675_v25 = vld [vmem:[%s5600_s10 + $0x8] sm:$0x7]  ;;  %v2382_v29 = vld [vmem:[%s5600_s10 + $0x20] sm:$0xfe]  ;;  %v2426_v21 = vrot.slane %v2424_v56, 1 }
 0x40c   : > { %4191 = vmatpush3.bf16.msra.mxu0 %v2901_v47  ;;  %v2422_v6 = vsel %vm572_vm1, %v2413_v13, %v2421_v17  ;;  %v2905_v24 = vld [vmem:[#allocation3 + $0x2f0] sm:$0xff]  ;;  %v2429_v48 = vrot.slane %v2427_v63, 2  ;;  %v2434_v0 = vrot.slane %v2432_v18, 1  ;;  %v2437_v37 = vrot.slane %v2435_v19, 2  ;;  %v2383_v22 = vld [vmem:[%s5600_s10 + $0x28] sm:$0x3] }
 0x40d   : > { %4192 = vmatprep.subr.bf16.mxu0 %v2910_v62  ;;  %2992 = vmatprep.mubr.bf16.mxu1 %v2422_v6  ;;  %v2898_v20 = vld [vmem:[#allocation3 + $0x2b8] sm:$0xff]  ;;  %v2719_v46 = vrot.slane %v2674_v36, 3  ;;  %v2720_v16 = vrot.slane %v2675_v25, 3  ;;  %v2441_v23 = vshrl.u32 %v2382_v29, 16  ;;  %v2444_v44 = vshll.u32 %v2382_v29, 16  ;;  %v2923_v11 = vld [vmem:[#allocation3 + $0x380] sm:$0xff] }
 0x40e   : > { %4129 = vmatpush3.bf16.msra.mxu1 %v2886_v35  ;;  %v2914_v45 = vld [vmem:[#allocation3 + $0x338] sm:$0xff]  ;;  %v2449_v28 = vshrl.u32 %v2383_v22, 16  ;;  %v2452_v42 = vshll.u32 %v2383_v22, 16  ;;  %v2430_v53 = vor.u32 %v2429_v48, %v2426_v21  ;;  %v2438_v47 = vor.u32 %v2437_v37, %v2434_v0  ;;  %v2939_v62 = vld [vmem:[#allocation3 + $0x400] sm:$0xff]  ;;  %v2384_v7 = vld [vmem:[%s5600_s10 + $0x30] sm:$0xfe] }
 0x40f   : > { %4130 = vmatprep.subr.bf16.mxu1 %v2895_v3  ;;  %v2890_v43 = vld [vmem:[#allocation3 + $0x278] sm:$0xff]  ;;  %v2721_v57 = vsel %vm2718_vm4, %v2719_v46, %v2720_v16  ;;  %v2340_v49 = vld [vmem:[%s5600_s10] sm:$0xff]  ;;  %v2446_v61 = vrot.slane %v2444_v44, 2  ;;  %v2924_v3 = vld [vmem:[#allocation3 + $0x388] sm:$0xff]  ;;  %v2458_v40 = vshrl.u32 %v2384_v7, 16  ;;  %v2461_v6 = vshll.u32 %v2384_v7, 16 }
 0x410   : > { %4193 = vmatpush3.bf16.msra.mxu0 %v2902_v34  ;;  %v2906_v54 = vld [vmem:[#allocation3 + $0x2f8] sm:$0xff]  ;;  %v2915_v35 = vld [vmem:[#allocation3 + $0x340] sm:$0xff]  ;;  %v2443_v34 = vrot.slane %v2441_v23, 1  ;;  %v2451_v52 = vrot.slane %v2449_v28, 1  ;;  %v2454_v26 = vrot.slane %v2452_v42, 2  ;;  %v2439_v9 = vsel %vm572_vm1, %v2430_v53, %v2438_v47  ;;  %v2916_v10 = vld [vmem:[#allocation3 + $0x348] sm:$0xff] }
 0x411   : > { %4194 = vmatprep.subr.bf16.mxu0 %v2911_v38  ;;  %v2676_v38 = vld [vmem:[%s5600_s10 + $0x10] sm:$0xf8]  ;;  %v2677_v5 = vld [vmem:[%s5600_s10 + $0x18] sm:$0x7]  ;;  %v6098_v60 = vld [vmem:[%s5600_s10 + $0x40] sm:$0xff]  ;;  %v2460_v36 = vrot.slane %v2458_v40, 1 }
 0x412   : > { %4131 = vmatpush3.bf16.msra.mxu1 %v2887_v15  ;;  %v2385_v8 = vld [vmem:[%s5600_s10 + $0x38] sm:$0x3]  ;;  %v2931_v15 = vld [vmem:[#allocation3 + $0x3c0] sm:$0xff]  ;;  %v2447_v13 = vor.u32 %v2446_v61, %v2443_v34  ;;  %v2455_v17 = vor.u32 %v2454_v26, %v2451_v52  ;;  %v2925_v56 = vld [vmem:[#allocation3 + $0x390] sm:$0xff]  ;;  %v2463_v25 = vrot.slane %v2461_v6, 2  ;;  %s4972_s13 = sshll.u32 %s5123_s8, 4  ;;  %s4973_s13 = int_to_ptr.vmem [resolvable:$false] %s4972_s13 }
 0x413   : > { %4132 = vmatprep.subr.bf16.mxu1 %v2896_v50  ;;  %v2723_v50 = vrot.slane %v2677_v5, 3  ;;  %v2341_v63 = vld [vmem:[%s5600_s10 + $0x10] sm:$0xff]  ;;  %v2932_v18 = vld [vmem:[#allocation3 + $0x3c8] sm:$0xff]  ;;  %v2386_v48 = vld [vmem:[%s5600_s10 + $0x40] sm:$0xfe]  ;;  %s4974_s0 = scalar_lea.vmem %s4973_s13, 16384  ;;  %p4975_p6 = scmp.lt.s32.totalorder %s6374_s16, %s4973_s13 }
 0x414   : > { %4195 = vmatpush3.bf16.msra.mxu0 %v2903_v59  ;;  %v2722_v59 = vrot.slane %v2676_v38, 3  ;;  %v2917_v0 = vld [vmem:[#allocation3 + $0x350] sm:$0xff]  ;;  %v2387_v37 = vld [vmem:[%s5600_s10 + $0x48] sm:$0x3]  ;;  %v2475_v23 = vshrl.u32 %v2386_v48, 16  ;;  %v2478_v44 = vshll.u32 %v2386_v48, 16  ;;  %v2464_v42 = vor.u32 %v2463_v25, %v2460_v36  ;;  %p4976_p8 = scmp.lt.s32.totalorder %s4974_s0, %s4968_s17 }
 0x415   : > { %4196 = vmatprep.subr.bf16.mxu0 %v2912_v30  ;;  %v2940_v30 = vld [vmem:[#allocation3 + $0x408] sm:$0xff]  ;;  %v2941_v22 = vld [vmem:[#allocation3 + $0x410] sm:$0xff]  ;;  %v2942_v28 = vld [vmem:[#allocation3 + $0x418] sm:$0xff]  ;;  %v2486_v53 = vshll.u32 %v2387_v37, 16 }
 0x416   : > { %4133 = vmatpush3.bf16.msra.mxu1 %v2888_v41  ;;  %v2466_v41 = vshrl.u32 %v2385_v8, 16  ;;  %v2724_v19 = vsel %vm2718_vm4, %v2722_v59, %v2723_v50  ;;  %v2918_v47 = vld [vmem:[#allocation3 + $0x358] sm:$0xff]  ;;  %v2680_v34 = vld [vmem:[%s5600_s10 + $0x30] sm:$0xf8]  ;;  %v2477_v61 = vrot.slane %v2475_v23, 1  ;;  %v2480_v52 = vrot.slane %v2478_v44, 2  ;;  %p4977_p7 = por %p4976_p8, %p4975_p6 }
 0x417   : > { %4134 = vmatprep.subr.bf16.mxu1 %v2897_v1  ;;  %v2456_v1 = vsel %vm572_vm1, %v2447_v13, %v2455_v17  ;;  %v2488_v38 = vrot.slane %v2486_v53, 2  ;;  %v2388_v5 = vld [vmem:[%s5600_s10 + $0x50] sm:$0xfe]  ;;  %v2919_v7 = vld [vmem:[#allocation3 + $0x360] sm:$0xff]  ;;  %v2928_v59 = vld [vmem:[#allocation3 + $0x3a8] sm:$0xff]  ;;  %v2728_v13 = vrot.slane %v2680_v34, 3 }
 0x418   : > { %4197 = vmatpush3.bf16.msra.mxu0 %v2904_v14  ;;  %v2469_v14 = vshll.u32 %v2385_v8, 16  ;;  %v2468_v29 = vrot.slane %v2466_v41, 1  ;;  %v2389_v8 = vld [vmem:[%s5600_s10 + $0x58] sm:$0x3]  ;;  %v2935_v50 = vld [vmem:[#allocation3 + $0x3e0] sm:$0xff]  ;;  %v2944_v40 = vld [vmem:[#allocation3 + $0x428] sm:$0xff]  ;;  %p4978_p1 = pnand %p4977_p7, %p4971_p13 }
 0x419   : > { %4198 = vmatprep.subr.bf16.mxu0 %v2913_v39  ;;  %v6107_v39 = vld [vmem:[%s5600_s10 + $0x50] sm:$0xff]  ;;  %v2495_v41 = vshll.u32 %v2388_v5, 16  ;;  %v6145_v34 = vld [vmem:[%s5600_s10 + $0x80] sm:$0xff] }
 0x41a   : > { %4135 = vmatpush3.bf16.msra.mxu1 %v2889_v27  ;;  %v2678_v27 = vld [vmem:[%s5600_s10 + $0x20] sm:$0xf8]  ;;  %v2471_v21 = vrot.slane %v2469_v14, 2  ;;  %v2500_v14 = vshrl.u32 %v2389_v8, 16 }
 0x41b   : > { %4136 = vmatprep.subr.bf16.mxu1 %v2898_v20  ;;  %v2926_v20 = vld [vmem:[#allocation3 + $0x398] sm:$0xff]  ;;  %v2725_v46 = vrot.slane %v2678_v27, 3  ;;  %v2682_v27 = vld [vmem:[%s5600_s10 + $0x40] sm:$0xf8] }
 0x41c   : > { %4199 = vmatpush3.bf16.msra.mxu0 %v2905_v24  ;;  %v2679_v24 = vld [vmem:[%s5600_s10 + $0x28] sm:$0x7]  ;;  %v2502_v48 = vrot.slane %v2500_v14, 1  ;;  %v2731_v23 = vrot.slane %v2682_v27, 3 }
 0x41d   : > { %4200 = vmatprep.subr.bf16.mxu0 %v2914_v45  ;;  %v2933_v45 = vld [vmem:[#allocation3 + $0x3d0] sm:$0xff]  ;;  %v2726_v16 = vrot.slane %v2679_v24, 3  ;;  %v2683_v24 = vld [vmem:[%s5600_s10 + $0x48] sm:$0x7] }
 0x41e   : > { %4137 = vmatpush3.bf16.msra.mxu1 %v2890_v43  ;;  %v2472_v43 = vor.u32 %v2471_v21, %v2468_v29  ;;  %v6132_v29 = vld [vmem:[%s5600_s10 + $0x70] sm:$0xff]  ;;  %v2497_v21 = vrot.slane %v2495_v41, 2  ;;  %v2732_v44 = vrot.slane %v2683_v24, 3  ;;  %v2686_v41 = vld [vmem:[%s5600_s10 + $0x60] sm:$0xf8] }
 0x41f   : > { %4250 = vmatprep.subr.bf16.mxu1 %v2923_v11  ;;  %v2927_v11 = vld [vmem:[#allocation3 + $0x3a0] sm:$0xff]  ;;  %v2737_v24 = vrot.slane %v2686_v41, 3 }
 0x420   : > { %4201 = vmatpush3.bf16.msra.mxu0 %v2906_v54  ;;  %v2483_v54 = vshrl.u32 %v2387_v37, 16  ;;  %v2473_v26 = vsel %vm572_vm1, %v2464_v42, %v2472_v43  ;;  %v2390_v37 = vld [vmem:[%s5600_s10 + $0x60] sm:$0xfe]  ;;  %v2946_v43 = vld [vmem:[#allocation3 + $0x438] sm:$0xff] }
 0x421   : > { %4314 = vmatprep.subr.bf16.mxu0 %v2939_v62  ;;  %2993 = vmatmul.mubr.bf16.vlgmr.msra.gmra.mrb[80].mxu1 %v2340_v49  ;;  %v2934_v62 = vld [vmem:[#allocation3 + $0x3d8] sm:$0xff]  ;;  %v2727_v49 = vsel %vm2718_vm4, %v2725_v46, %v2726_v16  ;;  %v2937_v16 = vld [vmem:[#allocation3 + $0x3f0] sm:$0xff]  ;;  %v2512_v42 = vshll.u32 %v2390_v37, 16  ;;  %v2951_v41 = vld [vmem:[#allocation3 + $0x460] sm:$0xff] }
 0x422   : > { %4251 = vmatpush3.bf16.msra.mxu1 %v2915_v35  ;;  %3000 = vmatprep.mubr.bf16.mxu1 %v2439_v9  ;;  %v6117_v35 = vld [vmem:[%s5600_s10 + $0x60] sm:$0xff]  ;;  %v2681_v9 = vld [vmem:[%s5600_s10 + $0x38] sm:$0x7] }
 0x423   : > { %3090 = vmatmul.mubr.bf16.vlgmr.msra.gmra.mrb[84].mxu0 %v2721_v57  ;;  %4252 = vmatprep.subr.bf16.mxu1 %v2924_v3  ;;  %v2342_v57 = vld [vmem:[%s5600_s10 + $0x20] sm:$0xff]  ;;  %v2485_v3 = vrot.slane %v2483_v54, 1  ;;  %v2729_v17 = vrot.slane %v2681_v9, 3  ;;  %v2930_v46 = vld [vmem:[#allocation3 + $0x3b8] sm:$0xff] }
 0x424   : > { %3097 = vmatprep.mubr.bf16.mxu0 %v6098_v60  ;;  %4315 = vmatpush3.bf16.msra.mxu0 %v2931_v15  ;;  %v2943_v15 = vld [vmem:[#allocation3 + $0x420] sm:$0xff] }
 0x425   : > { %4316 = vmatprep.subr.bf16.mxu0 %v2940_v30  ;;  %v2481_v30 = vor.u32 %v2480_v52, %v2477_v61  ;;  %v2489_v6 = vor.u32 %v2488_v38, %v2485_v3  ;;  %v2684_v61 = vld [vmem:[%s5600_s10 + $0x50] sm:$0xf8]  ;;  %v2685_v3 = vld [vmem:[%s5600_s10 + $0x58] sm:$0x7] }
 0x426   : > { %4253 = vmatpush3.bf16.msra.mxu1 %v2916_v10  ;;  %v2492_v10 = vshrl.u32 %v2388_v5, 16 }
 0x427   : > { %4254 = vmatprep.subr.bf16.mxu1 %v2925_v56  ;;  %v2503_v56 = vshll.u32 %v2389_v8, 16  ;;  %v2490_v25 = vsel %vm572_vm1, %v2481_v30, %v2489_v6  ;;  %v2393_v8 = vld [vmem:[%s5600_s10 + $0x78] sm:$0x3] }
 0x428   : > { %4317 = vmatpush3.bf16.msra.mxu0 %v2932_v18  ;;  %v2929_v18 = vld [vmem:[#allocation3 + $0x3b0] sm:$0xff]  ;;  %v2494_v36 = vrot.slane %v2492_v10, 1  ;;  %v2534_v10 = vshrl.u32 %v2393_v8, 16 }
 0x429   : > { %3001 = vmatmul.mubr.bf16.gmra.mrb[84].mxu1 %v2341_v63  ;;  %4318 = vmatprep.subr.bf16.mxu0 %v2941_v22  ;;  %v2920_v63 = vld [vmem:[#allocation3 + $0x368] sm:$0xff] }
 0x42a   : > { %3008 = vmatprep.mubr.bf16.mxu1 %v2456_v1  ;;  %4255 = vmatpush3.bf16.msra.mxu1 %v2917_v0  ;;  %v6126_v1 = vsel %vm2718_vm4, %v2728_v13, %v2729_v17  ;;  %v2505_v0 = vrot.slane %v2503_v56, 2  ;;  %v2391_v22 = vld [vmem:[%s5600_s10 + $0x68] sm:$0x3]  ;;  %v2498_v54 = vor.u32 %v2497_v21, %v2494_v36  ;;  %v6162_v56 = vld [vmem:[%s5600_s10 + $0x90] sm:$0xff] }
 0x42b   : > { %3098 = vmatmul.mubr.bf16.gmra.mrb[88].mxu0 %v2724_v19  ;;  %4256 = vmatprep.subr.bf16.mxu1 %v2926_v20  ;;  %v2936_v19 = vld [vmem:[#allocation3 + $0x3e8] sm:$0xff]  ;;  %v2921_v20 = vld [vmem:[#allocation3 + $0x370] sm:$0xff] }
 0x42c   : > { %3105 = vmatprep.mubr.bf16.mxu0 %v6107_v39  ;;  %4319 = vmatpush3.bf16.msra.mxu0 %v2933_v45  ;;  %v2945_v45 = vld [vmem:[#allocation3 + $0x430] sm:$0xff]  ;;  %v2506_v53 = vor.u32 %v2505_v0, %v2502_v48 }
 0x42d   : > { %4320 = vmatprep.subr.bf16.mxu0 %v2942_v28  ;;  %v2509_v28 = vshrl.u32 %v2390_v37, 16  ;;  %v6173_v37 = vld [vmem:[%s5600_s10 + $0xa0] sm:$0xff] }
 0x42e   : > { %4257 = vmatpush3.bf16.msra.mxu1 %v2918_v47  ;;  %v2517_v47 = vshrl.u32 %v2391_v22, 16  ;;  %v2507_v9 = vsel %vm572_vm1, %v2498_v54, %v2506_v53 }
 0x42f   : > { %4258 = vmatprep.subr.bf16.mxu1 %v2927_v11  ;;  %v2520_v11 = vshll.u32 %v2391_v22, 16  ;;  %v2511_v52 = vrot.slane %v2509_v28, 1  ;;  %v2688_v22 = vld [vmem:[%s5600_s10 + $0x70] sm:$0xf8] }
 0x430   : > { %4321 = vmatpush3.bf16.msra.mxu0 %v2934_v62  ;;  %v2938_v62 = vld [vmem:[#allocation3 + $0x3f8] sm:$0xff]  ;;  %v2519_v38 = vrot.slane %v2517_v47, 1 }
 0x431   : > { %3009 = vmatmul.mubr.bf16.gmra.mrb[88].mxu1 %v2342_v57  ;;  %4322 = vmatprep.subr.bf16.mxu0 %v2943_v15  ;;  %v6139_v57 = vld [vmem:[#allocation3 + $0x440] sm:$0xff]  ;;  %v2522_v5 = vrot.slane %v2520_v11, 2  ;;  %v2734_v15 = vrot.slane %v2684_v61, 3  ;;  %v2397_v61 = vld [vmem:[%s5600_s10 + $0x98] sm:$0x3] }
 0x432   : > { %3016 = vmatprep.mubr.bf16.mxu1 %v2473_v26  ;;  %4259 = vmatpush3.bf16.msra.mxu1 %v2919_v7  ;;  %v2514_v26 = vrot.slane %v2512_v42, 2  ;;  %v2392_v7 = vld [vmem:[%s5600_s10 + $0x70] sm:$0xfe] }
 0x433   : > { %3106 = vmatmul.mubr.bf16.gmra.mrb[92].mxu0 %v2727_v49  ;;  %4260 = vmatprep.subr.bf16.mxu1 %v2928_v59  ;;  %v6142_v49 = vsel %vm2718_vm4, %v2731_v23, %v2732_v44  ;;  %v2735_v59 = vrot.slane %v2685_v3, 3  ;;  %v2526_v13 = vshrl.u32 %v2392_v7, 16  ;;  %v2523_v17 = vor.u32 %v2522_v5, %v2519_v38  ;;  %v2395_v23 = vld [vmem:[%s5600_s10 + $0x88] sm:$0x3]  ;;  %v2949_v5 = vld [vmem:[#allocation3 + $0x450] sm:$0xff] }
 0x434   : > { %3113 = vmatprep.mubr.bf16.mxu0 %v6117_v35  ;;  %4323 = vmatpush3.bf16.msra.mxu0 %v2935_v50  ;;  %v2515_v50 = vor.u32 %v2514_v26, %v2511_v52  ;;  %v2529_v30 = vshll.u32 %v2392_v7, 16  ;;  %v2567_v42 = vshrl.u32 %v2395_v23, 16  ;;  %v2584_v3 = vshrl.u32 %v2397_v61, 16 }
 0x435   : > { %4324 = vmatprep.subr.bf16.mxu0 %v2944_v40  ;;  %v2537_v40 = vshll.u32 %v2393_v8, 16  ;;  %v6157_v6 = vsel %vm2718_vm4, %v2734_v15, %v2735_v59  ;;  %v2587_v38 = vshll.u32 %v2397_v61, 16  ;;  %v2399_v15 = vld [vmem:[%s5600_s10 + $0xa8] sm:$0x3]  ;;  %v2950_v59 = vld [vmem:[#allocation3 + $0x458] sm:$0xff] }
 0x436   : > { %4261 = vmatpush3.bf16.msra.mxu1 %v2920_v63  ;;  %v2524_v14 = vsel %vm572_vm1, %v2515_v50, %v2523_v17  ;;  %v2687_v63 = vld [vmem:[%s5600_s10 + $0x68] sm:$0x7]  ;;  %v2569_v47 = vrot.slane %v2567_v42, 1  ;;  %v2954_v42 = vld [vmem:[#allocation3 + $0x478] sm:$0xff] }
 0x437   : > { %4262 = vmatprep.subr.bf16.mxu1 %v2929_v18  ;;  %v2531_v18 = vrot.slane %v2529_v30, 2  ;;  %v2539_v27 = vrot.slane %v2537_v40, 2  ;;  %v2738_v36 = vrot.slane %v2687_v63, 3  ;;  %v2589_v8 = vrot.slane %v2587_v38, 2 }
 0x438   : > { %4325 = vmatpush3.bf16.msra.mxu0 %v2936_v19  ;;  %v2536_v19 = vrot.slane %v2534_v10, 1  ;;  %v2601_v10 = vshrl.u32 %v2399_v15, 16  ;;  %v2604_v40 = vshll.u32 %v2399_v15, 16 }
 0x439   : > { %3017 = vmatmul.mubr.bf16.gmra.mrb[92].mxu1 %v6082_v4  ;;  %4326 = vmatprep.subr.bf16.mxu0 %v2945_v45  ;;  %v2922_v4 = vld [vmem:[#allocation3 + $0x378] sm:$0xff]  ;;  %v6169_v48 = vsel %vm2718_vm4, %v2737_v24, %v2738_v36 }
 0x43a   : > { %3024 = vmatprep.mubr.bf16.mxu1 %v2490_v25  ;;  %4263 = vmatpush3.bf16.msra.mxu1 %v2921_v20  ;;  %v2540_v21 = vor.u32 %v2539_v27, %v2536_v19  ;;  %v2740_v20 = vrot.slane %v2688_v22, 3  ;;  %v2606_v63 = vrot.slane %v2604_v40, 2  ;;  %v2952_v19 = vld [vmem:[#allocation3 + $0x468] sm:$0xff]  ;;  %v2953_v22 = vld [vmem:[#allocation3 + $0x470] sm:$0xff] }
 0x43b   : > { %3114 = vmatmul.mubr.bf16.gmra.mrb[96].mxu0 %v6126_v1  ;;  %4264 = vmatprep.subr.bf16.mxu1 %v2930_v46 }
 0x43c   : > { %3121 = vmatprep.mubr.bf16.mxu0 %v6132_v29  ;;  %4327 = vmatpush3.bf16.msra.mxu0 %v2937_v16  ;;  %v2394_v16 = vld [vmem:[%s5600_s10 + $0x80] sm:$0xfe] }
 0x43d   : > { %4328 = vmatprep.subr.bf16.mxu0 %v2946_v43  ;;  %v2559_v44 = vshrl.u32 %v2394_v16, 16  ;;  %v2562_v28 = vshll.u32 %v2394_v16, 16  ;;  %v2570_v43 = vshll.u32 %v2395_v23, 16 }
 0x43e   : > { %4265 = vmatpush3.bf16.msra.mxu1 %v2922_v4  ;;  %v2396_v4 = vld [vmem:[%s5600_s10 + $0x90] sm:$0xfe] }
 0x43f   : > { %4478 = vmatprep.subr.bf16.mxu1 %v6139_v57  ;;  %v2561_v54 = vrot.slane %v2559_v44, 1  ;;  %v2564_v53 = vrot.slane %v2562_v28, 2  ;;  %v2572_v11 = vrot.slane %v2570_v43, 2  ;;  %v2579_v52 = vshll.u32 %v2396_v4, 16  ;;  %v2402_v44 = vld [vmem:[%s5600_s10 + $0xc0] sm:$0xfe] }
 0x440   : > { %4329 = vmatpush3.bf16.msra.mxu0 %v2938_v62  ;;  %v2948_v62 = vld [vmem:[#allocation3 + $0x448] sm:$0xff] }
 0x441   : > { %3025 = vmatmul.mubr.bf16.gmra.mrb[96].mxu1 %v6098_v60  ;;  %v2528_v60 = vrot.slane %v2526_v13, 1  ;;  %v2565_v26 = vor.u32 %v2564_v53, %v2561_v54  ;;  %v2403_v28 = vld [vmem:[%s5600_s10 + $0xc8] sm:$0x3] }
 0x442   : > { %3032 = vmatprep.mubr.bf16.mxu1 %v2507_v9  ;;  %v2573_v9 = vor.u32 %v2572_v11, %v2569_v47  ;;  %v2627_v47 = vshrl.u32 %v2402_v44, 16  ;;  %v2638_v61 = vshll.u32 %v2403_v28, 16 }
 0x443   : > { %3122 = vmatmul.mubr.bf16.gmra.mrb[100].mxu0 %v6142_v49  ;;  %v2532_v25 = vor.u32 %v2531_v18, %v2528_v60  ;;  %v2401_v18 = vld [vmem:[%s5600_s10 + $0xb8] sm:$0x3] }
 0x444   : > { %3129 = vmatprep.mubr.bf16.mxu0 %v6145_v34  ;;  %v2640_v38 = vrot.slane %v2638_v61, 2 }
 0x445   : > { %v2541_v0 = vsel %vm572_vm1, %v2532_v25, %v2540_v21  ;;  %v2618_v21 = vshrl.u32 %v2401_v18, 16 }
 0x447   : > { %v2620_v16 = vrot.slane %v2618_v21, 1 }
 0x449   : > { %3033 = vmatmul.mubr.bf16.gmra.mrb[100].mxu1 %v6107_v39  ;;  %v2689_v39 = vld [vmem:[%s5600_s10 + $0x78] sm:$0x7] }
 0x44a   : > { %3040 = vmatprep.mubr.bf16.mxu1 %v2524_v14  ;;  %v2741_v45 = vrot.slane %v2689_v39, 3  ;;  %v2690_v39 = vld [vmem:[%s5600_s10 + $0x80] sm:$0xf8] }
 0x44b   : > { %3130 = vmatmul.mubr.bf16.gmra.mrb[104].mxu0 %v6157_v6  ;;  %v2765_v43 = vrot.slane %v2690_v39, 3 }
 0x44c   : > { %3137 = vmatprep.mubr.bf16.mxu0 %v6162_v56  ;;  %v6181_v46 = vsel %vm2718_vm4, %v2740_v20, %v2741_v45  ;;  %v2691_v45 = vld [vmem:[%s5600_s10 + $0x88] sm:$0x7] }
 0x44d   : > { %v2766_v54 = vrot.slane %v2691_v45, 3 }
 0x451   : > { %3041 = vmatmul.mubr.bf16.gmra.mrb[104].mxu1 %v6117_v35 }
 0x452   : > { %3048 = vmatprep.mubr.bf16.mxu1 %v2541_v0 }
 0x453   : > { %3138 = vmatmul.mubr.bf16.gmra.mrb[108].mxu0 %v6169_v48 }
 0x454   : > { %3145 = vmatprep.mubr.bf16.mxu0 %v6173_v37 }
 0x459   : > { %3049 = vmatmul.mubr.bf16.gmra.mrb[108].mxu1 %v6132_v29 }
 0x45a   : > { %3186 = vmatprep.mubr.bf16.mxu1 %v6126_v1  ;;  %v2576_v1 = vshrl.u32 %v2396_v4, 16  ;;  %v2630_v4 = vshll.u32 %v2402_v44, 16 }
 0x45b   : > { %3146 = vmatmul.mubr.bf16.gmra.mrb[112].mxu0 %v6181_v46 }
 0x45c   : > { %3283 = vmatprep.mubr.bf16.mxu0 %v2524_v14  ;;  %v2578_v7 = vrot.slane %v2576_v1, 1  ;;  %v2603_v14 = vrot.slane %v2601_v10, 1  ;;  %v2693_v1 = vld [vmem:[%s5600_s10 + $0x98] sm:$0x7] }
 0x45e   : > { %v2607_v25 = vor.u32 %v2606_v63, %v2603_v14 }
 0x461   : > { %3187 = vmatmul.mubr.bf16.vlgmr.msra.gmra.mrb[112].mxu1 %v5615_v31  ;;  %v2574_v31 = vsel %vm572_vm1, %v2565_v26, %v2573_v9  ;;  %v2632_v9 = vrot.slane %v2630_v4, 2 }
 0x462   : > { %4479 = vmatpush3.bf16.msra.mxu1 %v6139_v57  ;;  %3194 = vmatprep.mubr.bf16.mxu1 %v6142_v49  ;;  %v2586_v57 = vrot.slane %v2584_v3, 1  ;;  %v2398_v49 = vld [vmem:[%s5600_s10 + $0xa0] sm:$0xfe] }
 0x463   : > { %3284 = vmatmul.mubr.bf16.vlgmr.msra.gmra.mrb[116].mxu0 %v6117_v35  ;;  %4480 = vmatprep.subr.bf16.mxu1 %v2948_v62  ;;  %v2581_v35 = vrot.slane %v2579_v52, 2  ;;  %v2593_v50 = vshrl.u32 %v2398_v49, 16  ;;  %v2596_v13 = vshll.u32 %v2398_v49, 16  ;;  %v2629_v52 = vrot.slane %v2627_v47, 1 }
 0x464   : > { %3291 = vmatprep.mubr.bf16.mxu0 %v2541_v0  ;;  %v2590_v30 = vor.u32 %v2589_v8, %v2586_v57  ;;  %v2621_v0 = vshll.u32 %v2401_v18, 16 }
 0x465   : > { %v2582_v17 = vor.u32 %v2581_v35, %v2578_v7  ;;  %v2595_v60 = vrot.slane %v2593_v50, 1  ;;  %v2405_v7 = vld [vmem:[%s5600_s10 + $0xd8] sm:$0x3]  ;;  %v2769_v35 = vrot.slane %v2693_v1, 3  ;;  %v2633_v49 = vor.u32 %v2632_v9, %v2629_v52 }
 0x466   : > { %4481 = vmatpush3.bf16.msra.mxu1 %v2948_v62  ;;  %v2623_v23 = vrot.slane %v2621_v0, 2  ;;  %v2635_v62 = vshrl.u32 %v2403_v28, 16  ;;  %v2655_v50 = vshll.u32 %v2405_v7, 16 }
 0x467   : > { %4482 = vmatprep.subr.bf16.mxu1 %v2949_v5 }
 0x468   : > { %v2624_v11 = vor.u32 %v2623_v23, %v2620_v16  ;;  %v2637_v3 = vrot.slane %v2635_v62, 1  ;;  %v2657_v40 = vrot.slane %v2655_v50, 2  ;;  %v6245_v23 = vld [vmem:[#allocation16 + $0x1] ss:$0 sm:$0xff] }
 0x469   : > { %3195 = vmatmul.mubr.bf16.gmra.mrb[116].mxu1 %v5625_v2  ;;  %v2591_v2 = vsel %vm572_vm1, %v2582_v17, %v2590_v30 }
 0x46a   : > { %3202 = vmatprep.mubr.bf16.mxu1 %v6157_v6  ;;  %4483 = vmatpush3.bf16.msra.mxu1 %v2949_v5  ;;  %v2400_v6 = vld [vmem:[%s5600_s10 + $0xb0] sm:$0xfe]  ;;  %v2641_v15 = vor.u32 %v2640_v38, %v2637_v3 }
 0x46b   : > { %3292 = vmatmul.mubr.bf16.gmra.mrb[120].mxu0 %v6132_v29  ;;  %4484 = vmatprep.subr.bf16.mxu1 %v2950_v59  ;;  %v2598_v29 = vrot.slane %v2596_v13, 2  ;;  %v2610_v27 = vshrl.u32 %v2400_v6, 16  ;;  %v2613_v24 = vshll.u32 %v2400_v6, 16  ;;  %v2404_v5 = vld [vmem:[%s5600_s10 + $0xd0] sm:$0xfe]  ;;  %v2352_v6 = vld [vmem:[%s5600_s10 + $0xc0] sm:$0xff] }
 0x46c   : > { %3299 = vmatprep.mubr.bf16.mxu0 %v2574_v31  ;;  %v2644_v57 = vshrl.u32 %v2404_v5, 16  ;;  %v2647_v8 = vshll.u32 %v2404_v5, 16  ;;  %v2351_v13 = vld [vmem:[%s5600_s10 + $0xb0] sm:$0xff] }
 0x46d   : > { %v2599_v36 = vor.u32 %v2598_v29, %v2595_v60  ;;  %v2615_v20 = vrot.slane %v2613_v24, 2  ;;  %v2695_v60 = vld [vmem:[%s5600_s10 + $0xa8] sm:$0x7]  ;;  %v2697_v24 = vld [vmem:[%s5600_s10 + $0xb8] sm:$0x7] }
 0x46e   : > { %4485 = vmatpush3.bf16.msra.mxu1 %v2950_v59  ;;  %v2652_v59 = vshrl.u32 %v2405_v7, 16  ;;  %v2646_v30 = vrot.slane %v2644_v57, 1  ;;  %v2772_v29 = vrot.slane %v2695_v60, 3  ;;  %v2792_v21 = vrot.slane %v2697_v24, 3 }
 0x46f   : > { %4486 = vmatprep.subr.bf16.mxu1 %v2951_v41 }
 0x470   : > { %v2654_v10 = vrot.slane %v2652_v59, 1 }
 0x471   : > { %3203 = vmatmul.mubr.bf16.gmra.mrb[120].mxu1 %v5630_v12  ;;  %v2612_v12 = vrot.slane %v2610_v27, 1  ;;  %v2696_v27 = vld [vmem:[%s5600_s10 + $0xb0] sm:$0xf8] }
 0x472   : > { %3210 = vmatprep.mubr.bf16.mxu1 %v6169_v48  ;;  %4487 = vmatpush3.bf16.msra.mxu1 %v2951_v41  ;;  %v2694_v41 = vld [vmem:[%s5600_s10 + $0xa0] sm:$0xf8]  ;;  %v2658_v63 = vor.u32 %v2657_v40, %v2654_v10 }
 0x473   : > { %3300 = vmatmul.mubr.bf16.gmra.mrb[124].mxu0 %v6145_v34  ;;  %4488 = vmatprep.subr.bf16.mxu1 %v2952_v19  ;;  %v2608_v34 = vsel %vm572_vm1, %v2599_v36, %v2607_v25  ;;  %v2616_v53 = vor.u32 %v2615_v20, %v2612_v12  ;;  %v2698_v36 = vld [vmem:[%s5600_s10 + $0xc0] sm:$0xf8]  ;;  %v2699_v25 = vld [vmem:[%s5600_s10 + $0xc8] sm:$0x7]  ;;  %v2700_v12 = vld [vmem:[%s5600_s10 + $0xd0] sm:$0xf8] }
 0x474   : > { %3307 = vmatprep.mubr.bf16.mxu0 %v2591_v2  ;;  %v2771_v2 = vrot.slane %v2694_v41, 3  ;;  %v2794_v0 = vrot.slane %v2698_v36, 3 }
 0x475   : > { %v2625_v26 = vsel %vm572_vm1, %v2616_v53, %v2624_v11 }
 0x476   : > { %4489 = vmatpush3.bf16.msra.mxu1 %v2952_v19  ;;  %v2773_v18 = vsel %vm2718_vm4, %v2771_v2, %v2772_v29 }
 0x477   : > { %4490 = vmatprep.subr.bf16.mxu1 %v2953_v22 }
 0x479   : > { %3211 = vmatmul.mubr.bf16.gmra.mrb[124].mxu1 %v5640_v32  ;;  %v2767_v32 = vsel %vm2718_vm4, %v2765_v43, %v2766_v54 }
 0x47a   : > { %3218 = vmatprep.mubr.bf16.mxu1 %v6181_v46  ;;  %4491 = vmatpush3.bf16.msra.mxu1 %v2953_v22  ;;  %v2795_v22 = vrot.slane %v2699_v25, 3 }
 0x47b   : > { %3308 = vmatmul.mubr.bf16.gmra.mrb[128].mxu0 %v6162_v56  ;;  %4492 = vmatprep.subr.bf16.mxu1 %v2954_v42  ;;  %v2692_v56 = vld [vmem:[%s5600_s10 + $0x90] sm:$0xf8] }
 0x47c   : > { %3315 = vmatprep.mubr.bf16.mxu0 %v2608_v34  ;;  %v2768_v31 = vrot.slane %v2692_v56, 3  ;;  %v2796_v39 = vsel %vm2718_vm4, %v2794_v0, %v2795_v22 }
 0x47e   : > { %4493 = vmatpush3.bf16.msra.mxu1 %v2954_v42  ;;  %v2770_v17 = vsel %vm2718_vm4, %v2768_v31, %v2769_v35 }
 0x481   : > { %3219 = vmatmul.mubr.bf16.gmra.mrb[128].mxu1 %v5643_v33  ;;  %v2642_v33 = vsel %vm572_vm1, %v2633_v49, %v2641_v15 }
 0x482   : > { %3226 = vmatprep.mubr.bf16.mxu1 %v2767_v32 }
 0x483   : > { %3316 = vmatmul.mubr.bf16.gmra.mrb[132].mxu0 %v6173_v37  ;;  %v2649_v37 = vrot.slane %v2647_v8, 2 }
 0x484   : > { %3323 = vmatprep.mubr.bf16.mxu0 %v2625_v26 }
 0x485   : > { %v2650_v14 = vor.u32 %v2649_v37, %v2646_v30 }
 0x487   : > { %v2659_v19 = vsel %vm572_vm1, %v2650_v14, %v2658_v63 }
 0x489   : > { %3227 = vmatmul.mubr.bf16.gmra.mrb[132].mxu1 %v5650_v51  ;;  %v2353_v51 = vld [vmem:[%s5600_s10 + $0xd0] sm:$0xff] }
 0x48a   : > { %3234 = vmatprep.mubr.bf16.mxu1 %v2770_v17 }
 0x48b   : > { %3324 = vmatmul.mubr.bf16.gmra.mrb[136].mxu0 %v2351_v13 }
 0x48c   : > { %3331 = vmatprep.mubr.bf16.mxu0 %v2642_v33 }
 0x491   : > { %3235 = vmatmul.mubr.bf16.gmra.mrb[136].mxu1 %v5653_v55  ;;  %v2791_v55 = vrot.slane %v2696_v27, 3 }
 0x492   : > { %3242 = vmatprep.mubr.bf16.mxu1 %v2773_v18 }
 0x493   : > { %3332 = vmatmul.mubr.bf16.gmra.mrb[140].mxu0 %v2352_v6 }
 0x494   : > { %3339 = vmatprep.mubr.bf16.mxu0 %v2659_v19 }
 0x499   : > { %3243 = vmatmul.mubr.bf16.gmra.mrb[140].mxu1 %v5658_v58  ;;  %v2793_v58 = vsel %vm2718_vm4, %v2791_v55, %v2792_v21 }
 0x49a   : > { %4494 = vmatprep.mubr.bf16.mxu1 %v6169_v48  ;;  %v2701_v48 = vld [vmem:[%s5600_s10 + $0xd8] sm:$0x7] }
 0x49b   : > { %3340 = vmatmul.mubr.bf16.gmra.mrb[144].mxu0 %v2353_v51  ;;  %v2798_v20 = vrot.slane %v2701_v48, 3 }
 0x4a1   : > { %4495 = vmatmul.mubr.bf16.vlgmr.msra.gmra.mrb[144].mxu1 %v6181_v46  ;;  %v2797_v46 = vrot.slane %v2700_v12, 3 }
 0x4a2   : > { %4498 = vmatprep.mubr.bf16.mxu1 %v2767_v32 }
 0x4a3   : > { %v2799_v34 = vsel %vm2718_vm4, %v2797_v46, %v2798_v20 }
 0x4a9   : > { %4499 = vmatmul.mubr.bf16.gmra.mrb[148].mxu1 %v2770_v17 }
 0x4aa   : > { %4502 = vmatprep.mubr.bf16.mxu1 %v2773_v18 }
 0x4b1   : > { %4503 = vmatmul.mubr.bf16.gmra.mrb[152].mxu1 %v2793_v58 }
 0x4b2   : > { %4506 = vmatprep.mubr.bf16.mxu1 %v2796_v39 }
 0x4b9   : > { %4507 = vmatmul.mubr.bf16.gmra.mrb[156].mxu1 %v2799_v34 }
 0x4f4   : > { %v4138_v45 = vpop.f32.mrb[80].mxu1 }
 0x4f5   : > { %v4139_v44 = vpop.f32.mrb[81].mxu1 }
 0x4f6   : > { %v4202_v16 = vpop.f32.mrb[84].mxu0  ;;  %v4140_v42 = vadd.f32 %v4139_v44, %v4138_v45  ;;  %v4141_v43 = vpop.f32.mrb[82].mxu1 }
 0x4f7   : > { %v4203_v28 = vpop.f32.mrb[85].mxu0  ;;  %v4142_v47 = vpop.f32.mrb[83].mxu1 }
 0x4f8   : > { %v4204_v54 = vadd.f32 %v4203_v28, %v4202_v16  ;;  %v4205_v53 = vpop.f32.mrb[86].mxu0  ;;  %v2995_v4 = vadd.f32 %v4140_v42, %v6245_v23  ;;  %v4143_v62 = vadd.f32 %v4142_v47, %v4141_v43 }
 0x4f9   : > { %v4206_v11 = vpop.f32.mrb[87].mxu0 }
 0x4fa   : > { %v4207_v61 = vadd.f32 %v4206_v11, %v4205_v53  ;;  %v2998_v32 = vadd.f32 %v4143_v62, %v6245_v23  ;;  %v6249_v56 = vadd.f32 %v4204_v54, %v2995_v4 }
 0x4fc   : > { %v6251_v1 = vadd.f32 %v4207_v61, %v2998_v32  ;;  %v4144_v52 = vpop.f32.mrb[84].mxu1 }
 0x4fd   : > { %v4145_v9 = vpop.f32.mrb[85].mxu1 }
 0x4fe   : > { %v4208_v26 = vpop.f32.mrb[88].mxu0  ;;  %v4146_v38 = vadd.f32 %v4145_v9, %v4144_v52  ;;  %v4147_v5 = vpop.f32.mrb[86].mxu1 }
 0x4ff   : > { %v4209_v3 = vpop.f32.mrb[89].mxu0  ;;  %v4148_v35 = vpop.f32.mrb[87].mxu1 }
 0x500   : > { %v4210_v7 = vadd.f32 %v4209_v3, %v4208_v26  ;;  %v4211_v31 = vpop.f32.mrb[90].mxu0  ;;  %v3003_v8 = vadd.f32 %v4146_v38, %v6245_v23  ;;  %v4149_v49 = vadd.f32 %v4148_v35, %v4147_v5 }
 0x501   : > { %v4212_v57 = vpop.f32.mrb[91].mxu0 }
 0x502   : > { %v4213_v15 = vadd.f32 %v4212_v57, %v4211_v31  ;;  %v3006_v59 = vadd.f32 %v4149_v49, %v6245_v23  ;;  %v6255_v50 = vadd.f32 %v4210_v7, %v3003_v8 }
 0x504   : > { %v6257_v13 = vadd.f32 %v4213_v15, %v3006_v59  ;;  %v4150_v17 = vpop.f32.mrb[88].mxu1 }
 0x505   : > { %v4151_v33 = vpop.f32.mrb[89].mxu1 }
 0x506   : > { %v4214_v30 = vpop.f32.mrb[92].mxu0  ;;  %v4152_v10 = vadd.f32 %v4151_v33, %v4150_v17  ;;  %v4153_v40 = vpop.f32.mrb[90].mxu1 }
 0x507   : > { %v4215_v37 = vpop.f32.mrb[93].mxu0  ;;  %v4154_v2 = vpop.f32.mrb[91].mxu1 }
 0x508   : > { %v4216_v41 = vadd.f32 %v4215_v37, %v4214_v30  ;;  %v4217_v60 = vpop.f32.mrb[94].mxu0  ;;  %v3011_v14 = vadd.f32 %v4152_v10, %v6245_v23  ;;  %v4155_v63 = vadd.f32 %v4154_v2, %v4153_v40 }
 0x509   : > { %v4218_v29 = vpop.f32.mrb[95].mxu0 }
 0x50a   : > { %v4219_v6 = vadd.f32 %v4218_v29, %v4217_v60  ;;  %v3014_v18 = vadd.f32 %v4155_v63, %v6245_v23  ;;  %v6261_v19 = vadd.f32 %v4216_v41, %v3011_v14 }
 0x50c   : > { %v6263_v51 = vadd.f32 %v4219_v6, %v3014_v18  ;;  %v4156_v27 = vpop.f32.mrb[92].mxu1 }
 0x50d   : > { %v4157_v36 = vpop.f32.mrb[93].mxu1 }
 0x50e   : > { %v4220_v24 = vpop.f32.mrb[96].mxu0  ;;  %v4158_v55 = vadd.f32 %v4157_v36, %v4156_v27  ;;  %v4159_v21 = vpop.f32.mrb[94].mxu1 }
 0x50f   : > { %v4221_v25 = vpop.f32.mrb[97].mxu0  ;;  %v4160_v58 = vpop.f32.mrb[95].mxu1 }
 0x510   : > { %v4222_v0 = vadd.f32 %v4221_v25, %v4220_v24  ;;  %v4223_v22 = vpop.f32.mrb[98].mxu0  ;;  %v3019_v12 = vadd.f32 %v4158_v55, %v6245_v23  ;;  %v4161_v48 = vadd.f32 %v4160_v58, %v4159_v21 }
 0x511   : > { %v4224_v39 = vpop.f32.mrb[99].mxu0 }
 0x512   : > { %v4225_v46 = vadd.f32 %v4224_v39, %v4223_v22  ;;  %v3022_v20 = vadd.f32 %v4161_v48, %v6245_v23  ;;  %v6267_v34 = vadd.f32 %v4222_v0, %v3019_v12 }
 0x514   : > { %v6269_v45 = vadd.f32 %v4225_v46, %v3022_v20  ;;  %v4162_v16 = vpop.f32.mrb[96].mxu1 }
 0x515   : > { %v4163_v28 = vpop.f32.mrb[97].mxu1 }
 0x516   : > { %v4226_v44 = vpop.f32.mrb[100].mxu0  ;;  %v4164_v43 = vadd.f32 %v4163_v28, %v4162_v16  ;;  %v4165_v54 = vpop.f32.mrb[98].mxu1 }
 0x517   : > { %v4227_v42 = vpop.f32.mrb[101].mxu0  ;;  %v4166_v11 = vpop.f32.mrb[99].mxu1 }
 0x518   : > { %v4228_v53 = vadd.f32 %v4227_v42, %v4226_v44  ;;  %v4229_v47 = vpop.f32.mrb[102].mxu0  ;;  %v3027_v62 = vadd.f32 %v4164_v43, %v6245_v23  ;;  %v4167_v61 = vadd.f32 %v4166_v11, %v4165_v54 }
 0x519   : > { %v4230_v4 = vpop.f32.mrb[103].mxu0 }
 0x51a   : > { %v4231_v32 = vadd.f32 %v4230_v4, %v4229_v47  ;;  %v3030_v52 = vadd.f32 %v4167_v61, %v6245_v23  ;;  %v6273_v26 = vadd.f32 %v4228_v53, %v3027_v62 }
 0x51c   : > { %v6275_v9 = vadd.f32 %v4231_v32, %v3030_v52  ;;  %v4168_v3 = vpop.f32.mrb[100].mxu1 }
 0x51d   : > { %v4169_v5 = vpop.f32.mrb[101].mxu1 }
 0x51e   : > { %v4232_v38 = vpop.f32.mrb[104].mxu0  ;;  %v4170_v31 = vadd.f32 %v4169_v5, %v4168_v3  ;;  %v4171_v35 = vpop.f32.mrb[102].mxu1 }
 0x51f   : > { %v4233_v7 = vpop.f32.mrb[105].mxu0  ;;  %v4172_v49 = vpop.f32.mrb[103].mxu1 }
 0x520   : > { %v4234_v57 = vadd.f32 %v4233_v7, %v4232_v38  ;;  %v4235_v8 = vpop.f32.mrb[106].mxu0  ;;  %v3035_v59 = vadd.f32 %v4170_v31, %v6245_v23  ;;  %v4173_v17 = vadd.f32 %v4172_v49, %v4171_v35 }
 0x521   : > { %v4236_v15 = vpop.f32.mrb[107].mxu0 }
 0x522   : > { %v4237_v30 = vadd.f32 %v4236_v15, %v4235_v8  ;;  %v3038_v33 = vadd.f32 %v4173_v17, %v6245_v23  ;;  %v6279_v37 = vadd.f32 %v4234_v57, %v3035_v59 }
 0x524   : > { %v6281_v10 = vadd.f32 %v4237_v30, %v3038_v33  ;;  %v4174_v40 = vpop.f32.mrb[104].mxu1 }
 0x525   : > { %v4175_v60 = vpop.f32.mrb[105].mxu1 }
 0x526   : > { %v4238_v41 = vpop.f32.mrb[108].mxu0  ;;  %v4176_v29 = vadd.f32 %v4175_v60, %v4174_v40  ;;  %v4177_v14 = vpop.f32.mrb[106].mxu1 }
 0x527   : > { %v4239_v2 = vpop.f32.mrb[109].mxu0  ;;  %v4178_v18 = vpop.f32.mrb[107].mxu1 }
 0x528   : > { %v4240_v63 = vadd.f32 %v4239_v2, %v4238_v41  ;;  %v4241_v6 = vpop.f32.mrb[110].mxu0  ;;  %v3043_v24 = vadd.f32 %v4176_v29, %v6245_v23  ;;  %v4179_v36 = vadd.f32 %v4178_v18, %v4177_v14 }
 0x529   : > { %v4242_v27 = vpop.f32.mrb[111].mxu0 }
 0x52a   : > { %v4243_v25 = vadd.f32 %v4242_v27, %v4241_v6  ;;  %v3046_v55 = vadd.f32 %v4179_v36, %v6245_v23  ;;  %v6285_v21 = vadd.f32 %v4240_v63, %v3043_v24 }
 0x52c   : > { %v6287_v0 = vadd.f32 %v4243_v25, %v3046_v55  ;;  %v4180_v22 = vpop.f32.mrb[108].mxu1 }
 0x52d   : > { %v4181_v39 = vpop.f32.mrb[109].mxu1 }
 0x52e   : > { %v4244_v58 = vpop.f32.mrb[112].mxu0  ;;  %v4182_v48 = vadd.f32 %v4181_v39, %v4180_v22  ;;  %v4183_v46 = vpop.f32.mrb[110].mxu1 }
 0x52f   : > { %v4245_v12 = vpop.f32.mrb[113].mxu0  ;;  %v4184_v44 = vpop.f32.mrb[111].mxu1 }
 0x530   : > { %v4246_v20 = vadd.f32 %v4245_v12, %v4244_v58  ;;  %v4247_v16 = vpop.f32.mrb[114].mxu0  ;;  %v3051_v42 = vadd.f32 %v4182_v48, %v6245_v23  ;;  %v4185_v43 = vadd.f32 %v4184_v44, %v4183_v46 }
 0x531   : > { %v4248_v28 = vpop.f32.mrb[115].mxu0 }
 0x532   : > { %v4249_v54 = vadd.f32 %v4248_v28, %v4247_v16  ;;  %v3054_v53 = vadd.f32 %v4185_v43, %v6245_v23  ;;  %v6291_v47 = vadd.f32 %v4246_v20, %v3051_v42 }
 0x534   : > { %v6293_v11 = vadd.f32 %v4249_v54, %v3054_v53  ;;  %v4266_v4 = vpop.f32.mrb[112].mxu1 }
 0x535   : > { %v4267_v61 = vpop.f32.mrb[113].mxu1 }
 0x536   : > { %v4330_v62 = vpop.f32.mrb[116].mxu0  ;;  %v4268_v52 = vadd.f32 %v4267_v61, %v4266_v4  ;;  %v4269_v3 = vpop.f32.mrb[114].mxu1 }
 0x537   : > { %v4331_v32 = vpop.f32.mrb[117].mxu0  ;;  %v4270_v7 = vpop.f32.mrb[115].mxu1 }
 0x538   : > { %v4332_v38 = vadd.f32 %v4331_v32, %v4330_v62  ;;  %v4333_v5 = vpop.f32.mrb[118].mxu0  ;;  %v3189_v35 = vadd.f32 %v4268_v52, %v6249_v56  ;;  %v4271_v57 = vadd.f32 %v4270_v7, %v4269_v3 }
 0x539   : > { %v4334_v31 = vpop.f32.mrb[119].mxu0 }
 0x53a   : > { %v4335_v8 = vadd.f32 %v4334_v31, %v4333_v5  ;;  %v3192_v23 = vadd.f32 %v4271_v57, %v6251_v1  ;;  %v6297_v49 = vadd.f32 %v4332_v38, %v3189_v35 }
 0x53c   : > { %v4272_v15 = vpop.f32.mrb[116].mxu1  ;;  %v6299_v17 = vadd.f32 %v4335_v8, %v3192_v23 }
 0x53d   : > { %v4273_v30 = vpop.f32.mrb[117].mxu1 }
 0x53e   : > { %v4336_v59 = vpop.f32.mrb[120].mxu0  ;;  %v4274_v40 = vadd.f32 %v4273_v30, %v4272_v15  ;;  %v4275_v41 = vpop.f32.mrb[118].mxu1 }
 0x53f   : > { %v4337_v33 = vpop.f32.mrb[121].mxu0  ;;  %v4276_v29 = vpop.f32.mrb[119].mxu1 }
 0x540   : > { %v4338_v60 = vadd.f32 %v4337_v33, %v4336_v59  ;;  %v4339_v2 = vpop.f32.mrb[122].mxu0  ;;  %v3197_v56 = vadd.f32 %v4274_v40, %v6255_v50  ;;  %v4277_v63 = vadd.f32 %v4276_v29, %v4275_v41 }
 0x541   : > { %v4340_v14 = vpop.f32.mrb[123].mxu0 }
 0x542   : > { %v4341_v6 = vadd.f32 %v4340_v14, %v4339_v2  ;;  %v3200_v1 = vadd.f32 %v4277_v63, %v6257_v13  ;;  %v6303_v18 = vadd.f32 %v4338_v60, %v3197_v56 }
 0x544   : > { %v4278_v27 = vpop.f32.mrb[120].mxu1  ;;  %v6305_v36 = vadd.f32 %v4341_v6, %v3200_v1 }
 0x545   : > { %v4279_v25 = vpop.f32.mrb[121].mxu1 }
 0x546   : > { %v4342_v24 = vpop.f32.mrb[124].mxu0  ;;  %v4280_v22 = vadd.f32 %v4279_v25, %v4278_v27  ;;  %v4281_v58 = vpop.f32.mrb[122].mxu1 }
 0x547   : > { %v4343_v55 = vpop.f32.mrb[125].mxu0  ;;  %v4282_v48 = vpop.f32.mrb[123].mxu1 }
 0x548   : > { %v4344_v39 = vadd.f32 %v4343_v55, %v4342_v24  ;;  %v4345_v12 = vpop.f32.mrb[126].mxu0  ;;  %v3205_v50 = vadd.f32 %v4280_v22, %v6261_v19  ;;  %v4283_v20 = vadd.f32 %v4282_v48, %v4281_v58 }
 0x549   : > { %v4346_v46 = vpop.f32.mrb[127].mxu0 }
 0x54a   : > { %v4347_v16 = vadd.f32 %v4346_v46, %v4345_v12  ;;  %v3208_v13 = vadd.f32 %v4283_v20, %v6263_v51  ;;  %v6309_v44 = vadd.f32 %v4344_v39, %v3205_v50 }
 0x54c   : > { %v4284_v28 = vpop.f32.mrb[124].mxu1  ;;  %v6311_v43 = vadd.f32 %v4347_v16, %v3208_v13 }
 0x54d   : > { %v4285_v54 = vpop.f32.mrb[125].mxu1 }
 0x54e   : > { %v4348_v42 = vpop.f32.mrb[128].mxu0  ;;  %v4286_v4 = vadd.f32 %v4285_v54, %v4284_v28  ;;  %v4287_v62 = vpop.f32.mrb[126].mxu1 }
 0x54f   : > { %v4349_v53 = vpop.f32.mrb[129].mxu0  ;;  %v4288_v52 = vpop.f32.mrb[127].mxu1 }
 0x550   : > { %v4350_v61 = vadd.f32 %v4349_v53, %v4348_v42  ;;  %v4351_v32 = vpop.f32.mrb[130].mxu0  ;;  %v3213_v19 = vadd.f32 %v4286_v4, %v6267_v34  ;;  %v4289_v38 = vadd.f32 %v4288_v52, %v4287_v62 }
 0x551   : > { %v4352_v3 = vpop.f32.mrb[131].mxu0 }
 0x552   : > { %v4353_v5 = vadd.f32 %v4352_v3, %v4351_v32  ;;  %v3216_v51 = vadd.f32 %v4289_v38, %v6269_v45  ;;  %v6315_v7 = vadd.f32 %v4350_v61, %v3213_v19 }
 0x554   : > { %v4290_v31 = vpop.f32.mrb[128].mxu1  ;;  %v6317_v57 = vadd.f32 %v4353_v5, %v3216_v51 }
 0x555   : > { %v4291_v8 = vpop.f32.mrb[129].mxu1 }
 0x556   : > { %v4354_v35 = vpop.f32.mrb[132].mxu0  ;;  %v4292_v15 = vadd.f32 %v4291_v8, %v4290_v31  ;;  %v4293_v59 = vpop.f32.mrb[130].mxu1 }
 0x557   : > { %v4355_v23 = vpop.f32.mrb[133].mxu0  ;;  %v4294_v40 = vpop.f32.mrb[131].mxu1 }
 0x558   : > { %v4356_v30 = vadd.f32 %v4355_v23, %v4354_v35  ;;  %v4357_v33 = vpop.f32.mrb[134].mxu0  ;;  %v3221_v34 = vadd.f32 %v4292_v15, %v6273_v26  ;;  %v4295_v60 = vadd.f32 %v4294_v40, %v4293_v59 }
 0x559   : > { %v4358_v41 = vpop.f32.mrb[135].mxu0 }
 0x55a   : > { %v4359_v2 = vadd.f32 %v4358_v41, %v4357_v33  ;;  %v3224_v45 = vadd.f32 %v4295_v60, %v6275_v9  ;;  %v6321_v29 = vadd.f32 %v4356_v30, %v3221_v34 }
 0x55c   : > { %v4296_v14 = vpop.f32.mrb[132].mxu1  ;;  %v6323_v63 = vadd.f32 %v4359_v2, %v3224_v45 }
 0x55d   : > { %v4297_v6 = vpop.f32.mrb[133].mxu1 }
 0x55e   : > { %v4360_v56 = vpop.f32.mrb[136].mxu0  ;;  %v4298_v27 = vadd.f32 %v4297_v6, %v4296_v14  ;;  %v4299_v24 = vpop.f32.mrb[134].mxu1 }
 0x55f   : > { %v4361_v1 = vpop.f32.mrb[137].mxu0  ;;  %v4300_v22 = vpop.f32.mrb[135].mxu1 }
 0x560   : > { %v4362_v25 = vadd.f32 %v4361_v1, %v4360_v56  ;;  %v4363_v55 = vpop.f32.mrb[138].mxu0  ;;  %v3229_v26 = vadd.f32 %v4298_v27, %v6279_v37  ;;  %v4301_v39 = vadd.f32 %v4300_v22, %v4299_v24 }
 0x561   : > { %v4364_v58 = vpop.f32.mrb[139].mxu0 }
 0x562   : > { %v4365_v12 = vadd.f32 %v4364_v58, %v4363_v55  ;;  %v3232_v9 = vadd.f32 %v4301_v39, %v6281_v10  ;;  %v6327_v48 = vadd.f32 %v4362_v25, %v3229_v26 }
 0x564   : > { %v4302_v46 = vpop.f32.mrb[136].mxu1  ;;  %v6329_v20 = vadd.f32 %v4365_v12, %v3232_v9 }
 0x565   : > { %v4303_v16 = vpop.f32.mrb[137].mxu1 }
 0x566   : > { %v4366_v50 = vpop.f32.mrb[140].mxu0  ;;  %v4304_v28 = vadd.f32 %v4303_v16, %v4302_v46  ;;  %v4305_v42 = vpop.f32.mrb[138].mxu1 }
 0x567   : > { %v4367_v13 = vpop.f32.mrb[141].mxu0  ;;  %v4306_v4 = vpop.f32.mrb[139].mxu1 }
 0x568   : > { %v4368_v54 = vadd.f32 %v4367_v13, %v4366_v50  ;;  %v4369_v53 = vpop.f32.mrb[142].mxu0  ;;  %v3237_v37 = vadd.f32 %v4304_v28, %v6285_v21  ;;  %v4307_v61 = vadd.f32 %v4306_v4, %v4305_v42 }
 0x569   : > { %v4370_v62 = vpop.f32.mrb[143].mxu0 }
 0x56a   : > { %v4371_v32 = vadd.f32 %v4370_v62, %v4369_v53  ;;  %v3240_v10 = vadd.f32 %v4307_v61, %v6287_v0  ;;  %v6333_v52 = vadd.f32 %v4368_v54, %v3237_v37 }
 0x56c   : > { %v4308_v3 = vpop.f32.mrb[140].mxu1  ;;  %v6335_v38 = vadd.f32 %v4371_v32, %v3240_v10 }
 0x56d   : > { %v4309_v5 = vpop.f32.mrb[141].mxu1 }
 0x56e   : > { %v4372_v19 = vpop.f32.mrb[144].mxu0  ;;  %v4310_v31 = vadd.f32 %v4309_v5, %v4308_v3  ;;  %v4311_v35 = vpop.f32.mrb[142].mxu1 }
 0x56f   : > { %v4373_v51 = vpop.f32.mrb[145].mxu0  ;;  %v4312_v15 = vpop.f32.mrb[143].mxu1 }
 0x570   : > { %v4374_v8 = vadd.f32 %v4373_v51, %v4372_v19  ;;  %v4375_v23 = vpop.f32.mrb[146].mxu0  ;;  %v3245_v21 = vadd.f32 %v4310_v31, %v6291_v47  ;;  %v4313_v30 = vadd.f32 %v4312_v15, %v4311_v35 }
 0x571   : > { %v4376_v59 = vpop.f32.mrb[147].mxu0 }
 0x572   : > { %v4377_v33 = vadd.f32 %v4376_v59, %v4375_v23  ;;  %v3248_v0 = vadd.f32 %v4313_v30, %v6293_v11  ;;  %v3342_v40 = vadd.f32 %v4374_v8, %v3245_v21 }
 0x574   : > { %v4496_v41 = vpop.f32.mrb[144].mxu1  ;;  %v3345_v34 = vadd.f32 %v4377_v33, %v3248_v0 }
 0x575   : > { %v3391_v60 = vadd.f32 %v4496_v41, %v6303_v18  ;;  %v3382_v2 = vpop.f32.mrb[145].mxu1 }
 0x576   : > { %v3383_v45 = vadd.f32 %v3382_v2, %v6297_v49  ;;  %v4497_v14 = vpop.f32.mrb[146].mxu1 }
 0x577   : > { %v3447_v56 = vmax.f32 %v3391_v60, 0.0  ;;  %v3394_v47 = vadd.f32 %v4497_v14, %v6305_v36  ;;  %v3385_v6 = vpop.f32.mrb[147].mxu1 }
 0x578   : > { %v3445_v1 = vmax.f32 %v3383_v45, 0.0  ;;  %v3386_v27 = vadd.f32 %v3385_v6, %v6299_v17 }
 0x579   : > { %3463 = vst [vmem:[%s5598_s27 + $0x58] sm:$0xff] %v3447_v56  ;;  %v3448_v11 = vmax.f32 %v3394_v47, 0.0 }
 0x57a   : > { %3461 = vst [vmem:[%s5598_s27 + $0x18] sm:$0xff] %v3445_v1  ;;  %v3446_v24 = vmax.f32 %v3386_v27, 0.0 }
 0x57b   : > { %3464 = vst [vmem:[%s5598_s27 + $0x78] sm:$0xff] %v3448_v11 }
 0x57c   : > { %3462 = vst [vmem:[%s5598_s27 + $0x38] sm:$0xff] %v3446_v24  ;;  %v4500_v18 = vpop.f32.mrb[148].mxu1 }
 0x57d   : > { %v3407_v49 = vadd.f32 %v4500_v18, %v6315_v7  ;;  %v3398_v25 = vpop.f32.mrb[149].mxu1 }
 0x57e   : > { %v3399_v36 = vadd.f32 %v3398_v25, %v6309_v44  ;;  %v4501_v55 = vpop.f32.mrb[150].mxu1 }
 0x57f   : > { %v3451_v22 = vmax.f32 %v3407_v49, 0.0  ;;  %v3410_v17 = vadd.f32 %v4501_v55, %v6317_v57  ;;  %v3401_v58 = vpop.f32.mrb[151].mxu1 }
 0x580   : > { %v3449_v26 = vmax.f32 %v3399_v36, 0.0  ;;  %v3402_v39 = vadd.f32 %v3401_v58, %v6311_v43 }
 0x581   : > { %3467 = vst [vmem:[%s5598_s27 + $0xd8] sm:$0xff] %v3451_v22  ;;  %v3452_v12 = vmax.f32 %v3410_v17, 0.0 }
 0x582   : > { %3465 = vst [vmem:[%s5598_s27 + $0x98] sm:$0xff] %v3449_v26  ;;  %v3450_v9 = vmax.f32 %v3402_v39, 0.0 }
 0x583   : > { %3468 = vst [vmem:[%s5598_s27 + $0xf8] sm:$0xff] %v3452_v12 }
 0x584   : > { %3466 = vst [vmem:[%s5598_s27 + $0xb8] sm:$0xff] %v3450_v9  ;;  %v4504_v7 = vpop.f32.mrb[152].mxu1 }
 0x585   : > { %v3423_v44 = vadd.f32 %v4504_v7, %v6327_v48  ;;  %v3414_v46 = vpop.f32.mrb[153].mxu1 }
 0x586   : > { %v3415_v57 = vadd.f32 %v3414_v46, %v6321_v29  ;;  %v4505_v50 = vpop.f32.mrb[154].mxu1 }
 0x587   : > { %v3455_v43 = vmax.f32 %v3423_v44, 0.0  ;;  %v3426_v16 = vadd.f32 %v4505_v50, %v6329_v20  ;;  %v3417_v13 = vpop.f32.mrb[155].mxu1 }
 0x588   : > { %v3453_v28 = vmax.f32 %v3415_v57, 0.0  ;;  %v3418_v42 = vadd.f32 %v3417_v13, %v6323_v63 }
 0x589   : > { %3471 = vst [vmem:[%s5598_s27 + $0x158] sm:$0xff] %v3455_v43  ;;  %v3456_v54 = vmax.f32 %v3426_v16, 0.0 }
 0x58a   : > { %3469 = vst [vmem:[%s5598_s27 + $0x118] sm:$0xff] %v3453_v28  ;;  %v3454_v53 = vmax.f32 %v3418_v42, 0.0 }
 0x58b   : > { %3472 = vst [vmem:[%s5598_s27 + $0x178] sm:$0xff] %v3456_v54 }
 0x58c   : > { %3470 = vst [vmem:[%s5598_s27 + $0x138] sm:$0xff] %v3454_v53  ;;  %v4508_v29 = vpop.f32.mrb[156].mxu1 }
 0x58d   : > { %v3439_v48 = vadd.f32 %v4508_v29, %v3342_v40  ;;  %v3430_v4 = vpop.f32.mrb[157].mxu1 }
 0x58e   : > { %v3431_v20 = vadd.f32 %v3430_v4, %v6333_v52  ;;  %v4509_v63 = vpop.f32.mrb[158].mxu1 }
 0x58f   : > { %v3459_v62 = vmax.f32 %v3439_v48, 0.0  ;;  %v3442_v37 = vadd.f32 %v4509_v63, %v3345_v34  ;;  %v3433_v61 = vpop.f32.mrb[159].mxu1 }
 0x590   : > { %v3457_v32 = vmax.f32 %v3431_v20, 0.0  ;;  %v3434_v10 = vadd.f32 %v3433_v61, %v6335_v38 }
 0x591   : > { %3475 = vst [vmem:[%s5598_s27 + $0x1d8] sm:$0xff] %v3459_v62  ;;  %v3460_v3 = vmax.f32 %v3442_v37, 0.0 }
 0x592   : > { %3473 = vst [vmem:[%s5598_s27 + $0x198] sm:$0xff] %v3457_v32  ;;  %v3458_v52 = vmax.f32 %v3434_v10, 0.0 }
 0x593   : > { %3476 = vst [vmem:[%s5598_s27 + $0x1f8] sm:$0xff] %v3460_v3 }
 0x594   : > { %3474 = vst [vmem:[%s5598_s27 + $0x1b8] sm:$0xff] %v3458_v52 }
 0x595   : > { %4981 = shalt.err (!%p4978_p1)
}
 0x596   : > { %s4982_s29 = scalar_lea.hbm %s6372_s22, 8192  ;;  %s4986_s10 = scalar_lea.hbm %s6536_s4, 32768 }
 0x597   : > { %p4983_p4 = scmp.ne.s32.totalorder %s6372_s22, %s4982_s29  ;;  %p4987_p12 = scmp.lt.u32.totalorder %s6372_s22, %s6536_s4 }
 0x598   : > { %p4988_p0 = scmp.lt.u32.totalorder %s4986_s10, %s4982_s29  ;;  %p4990_p2 = scmp.lt.u32.totalorder %s4982_s29, %s6372_s22 }
 0x599   : > { %p4984_p10 = pnand %p4983_p4, %p6538_p3 }
 0x59a   : > { %p4989_p11 = por %p4988_p0, %p4987_p12 }
 0x59b   : > { %p4985_p9 = pneg %p4984_p10 }
 0x59c   : > { %p4991_p5 = por %p4990_p2, %p4989_p11 }
 0x59e   : > { %p4992_p13 = pnand %p4991_p5, %p4985_p9 }
 0x5a0   : > { %4995 = shalt.err (!%p4992_p13)
}
 0x5a1   : > { %s5124_s24 = smov 512   ;;  %s5125_s30 = smov 32  }
 0x5a2   : > { %4536 = dma.vmem_to_hbm [thread:$0]  (%p6538_p3), %s6374_s16, 8192, %s6372_s22, %s6381_s23, %s5124_s24, %s5124_s24, %s5125_s30  }
 0x5a3 PF: > { %s6539_s20 = sld [smem:[#allocation37_spill]]  ;;  %s6540_s18 = sld [smem:[#allocation45_spill]] }
 0x5a4   : > { %p4575_p6 = scmp.ge.s32.totalorder %s5108_s15, 2 }
 0x5a9   : > { %s3509_s11 = sand.u32 1, %s6539_s20   ;;  %p6541_p8 = scmp.ne.s32.totalorder %s6540_s18, 0 }
 0x5aa   : > { %s3510_s19 = scalar_lea.sflag [#allocation9], %s3509_s11 }
 0x5ab   : > { %p4559_p7 = pnand %p4575_p6, %p6541_p8 }
 0x5ad   : > { %5063 = dma.done.wait (!%p4559_p7), %s3510_s19, 8192  }
 0x5ae   : > { %5065 = vsyncadd (!%p4559_p7), %s3510_s19, 4294959104  ;;  %s27_s15 = sadd.s32 1, %s5108_s15   ;;  %s6542_s21 = sld [smem:[#allocation38_spill]] }
 0x5af   : > { %p24_p1 = scmp.ge.s32.totalorder %s27_s15, 6   ;;  %s6543_s29 = sld [smem:[#allocation50_spill]] }
 0x5b0   : > { %s6544_s30 = sld [smem:[#allocation39_spill]]  ;;  %s6545_s9 = sld [smem:[#allocation40_spill]] }
 0x5b1   : > { %s6546_s10 = sld [smem:[#allocation49_spill]]  ;;  %s6547_s11 = sld [smem:[#allocation43_spill]] }
 0x5b2   : > { %s6548_s12 = sld [smem:[#allocation44_spill]]  ;;  %s6549_s13 = sld [smem:[#allocation47_spill]] }
 0x5b3   : > { %s6550_s14 = sld [smem:[#allocation48_spill]]  ;;  %s6551_s27 = smov %s5072_s28 }
 0x5b4   : > { %s6552_s28 = smov %s6542_s21  ;;  %26 = sbr.rel (!%p24_p1) target bundleno = 22 (0x16), region = 146 }
 0x5bb   :  { %3515 = vsyncpa [#allocation8], 1 }
 0x5bc   :  { %3517 = vsyncpa [#allocation8 + $0x1], 1 }
 0x5bd   :  { %3518 = vsyncpa [#allocation11], 1 }
 0x5be   :  { %3519 = vsyncpa [#allocation14], 1 }
 0x5bf   :  { %3520 = vsyncpa [#allocation17], 1 }
 0x5c0   :  { %3521 = vsyncpa [#allocation9], 1 }
 0x5c1   :  { %3523 = vsyncpa [#allocation9 + $0x1], 1 }
 0x5c2   :  { %3524 = vsyncmov [#allocation4] }
 0x5c5   :  { %s3525_s25 = vpop.sfrf %3524 }
 0x5c6   :  { %p3817_p3 = scmp.ne.s32.totalorder %s3525_s25, 0 }
 0x5c8   :  { %3529 = shalt.err (%p3817_p3)  }
 0x5c9   :  { %3531 = vsyncmov [#allocation4 + $0x1] }
 0x5cc   :  { %s3532_s26 = vpop.sfrf %3531 }
 0x5cd   :  { %p3818_p4 = scmp.ne.s32.totalorder %s3532_s26, 0 }
 0x5cf   :  { %3536 = shalt.err (%p3818_p4)  }
 0x5d0   :  { %3537 = vsyncmov [#allocation5] }
 0x5d3   :  { %s3538_s3 = vpop.sfrf %3537 }
 0x5d4   :  { %p3819_p10 = scmp.ne.s32.totalorder %s3538_s3, 0 }
 0x5d6   :  { %3542 = shalt.err (%p3819_p10)  }
 0x5d7   :  { %3544 = vsyncmov [#allocation5 + $0x1] }
 0x5da   :  { %s3545_s28 = vpop.sfrf %3544 }
 0x5db   :  { %p3820_p9 = scmp.ne.s32.totalorder %s3545_s28, 0 }
 0x5dd   :  { %3549 = shalt.err (%p3820_p9)  }

</bundles_post_ra>
